<compile_context>
chip_gen: v5e
topology: v5e:2x2
jax: 0.10.0
libtpu: 0.0.40
codegen_flags: <defaults>
</compile_context>

<pallas_src>
import functools
import math

import jax
import jax.numpy as jnp
from jax.experimental import pallas as pl
from jax.experimental.pallas import tpu as pltpu


def _layer_norm(v, g, b, eps=1e-5):
    mu = jnp.mean(v, axis=-1, keepdims=True)
    var = jnp.mean((v - mu) ** 2, axis=-1, keepdims=True)
    return (v - mu) * jax.lax.rsqrt(var + eps) * g + b


def encoder_kernel(x_ref, mask_ref, pos_ref,
                   cln_g_ref, cln_b_ref, dw_ref, pw_w_ref, pw_b_ref,
                   ln1_g_ref, ln1_b_ref, k_w_ref, v_w_ref, qry_w_ref,
                   ln2_g_ref, ln2_b_ref, ff1_w_ref, ff1_b_ref,
                   ff2_w_ref, ff2_b_ref,
                   out_ref,
                   *, num_heads, num_convs, ksize):
    B, T, H = x_ref.shape
    N = B * T
    bf16 = jnp.bfloat16

    x = x_ref[...]                                   # (B, T, H) f32
    # ---- add positional encoding, then work on the flat (N, H) slab ----
    out = (x + pos_ref[...]).reshape(N, H)

    # Hoisted per-tap boundary masks for the depthwise conv (shared by all
    # convs).  t_idx = position within each length-T segment of the flat slab,
    # so rolled values that wrapped across segment/array boundaries are zeroed.
    pad = ksize // 2
    t_idx = jax.lax.broadcasted_iota(jnp.int32, (B, T, 1), 1).reshape(N, 1)
    tap_valid = []
    for k in range(ksize):
        s = pad - k
        tap_valid.append(jnp.logical_and(t_idx >= s, t_idx < T + s))

    # ---- encoding depthwise-separable conv blocks ----
    # (eval mode: F.dropout and layer-dropout degrade to identity / residual add)
    for i in range(num_convs):
        res = out
        h = _layer_norm(out, cln_g_ref[i:i + 1, :], cln_b_ref[i:i + 1, :])
        dw_i = dw_ref[i]                             # (K, H), hoisted per conv
        acc = jnp.zeros((N, H), jnp.float32)
        for k in range(ksize):
            s = pad - k
            rolled = h if s == 0 else pltpu.roll(h, shift=s % N, axis=0)
            acc = acc + jnp.where(tap_valid[k], rolled, 0.0) * dw_i[k:k + 1, :]
        # pointwise 1x1 conv (+ bias) then relu; bf16 MXU, f32 accumulate
        h = jnp.dot(acc.astype(bf16), pw_w_ref[i],
                    preferred_element_type=jnp.float32) + pw_b_ref[i:i + 1, :]
        out = jnp.maximum(h, 0.0) + res

    # ---- self-attention block ----
    res = out
    h = _layer_norm(out, ln1_g_ref[...], ln1_b_ref[...]).astype(bf16)
    k_all = jnp.dot(h, k_w_ref[...], preferred_element_type=jnp.float32)   # (N, H)
    v_all = jnp.dot(h, v_w_ref[...], preferred_element_type=jnp.float32)   # (N, H)
    dh = H // num_heads
    scale = 1.0 / math.sqrt(dh)
    # fold the 1/sqrt(dh) scale into the query once (T*H mults, not heads*T*T)
    qry = jnp.dot(h, qry_w_ref[...], preferred_element_type=jnp.float32) * scale

    q3 = qry.reshape(B, T, H)
    k3 = k_all.reshape(B, T, H)
    v3 = v_all.reshape(B, T, H)

    # masked softmax bias, hoisted out of the head loop (QANet masks keys only)
    mask_b = jnp.broadcast_to(mask_ref[...] > 0.0, (B, T, T))
    neg = jnp.float32(-1e30)

    head_outs = []
    for hh in range(num_heads):
        lo = hh * dh
        q_h = q3[:, :, lo:lo + dh].astype(bf16)
        k_h = k3[:, :, lo:lo + dh].astype(bf16)
        v_h = v3[:, :, lo:lo + dh].astype(bf16)
        att = jnp.einsum('btd,bsd->bts', q_h, k_h,
                         preferred_element_type=jnp.float32)     # (B, T, T)
        att = jnp.where(mask_b, att, neg)
        att = att - jnp.max(att, axis=-1, keepdims=True)
        p = jnp.exp(att)
        p = p * pl.reciprocal(jnp.sum(p, axis=-1, keepdims=True), approx=True)
        head_outs.append(jnp.einsum('bts,bsd->btd', p.astype(bf16), v_h,
                                    preferred_element_type=jnp.float32))
    out = jnp.concatenate(head_outs, axis=-1).reshape(N, H) + res

    # ---- feed-forward block (two 1x1 convs, first with GELU) ----
    res = out
    h = _layer_norm(out, ln2_g_ref[...], ln2_b_ref[...])
    h = jnp.dot(h.astype(bf16), ff1_w_ref[...],
                preferred_element_type=jnp.float32) + ff1_b_ref[...]
    # TODO(synk): PyTorch nn.GELU defaults to the exact erf form; tanh
    # approximation is used here to guarantee Mosaic lowering of the transcendental.
    h = jax.nn.gelu(h, approximate=True)
    h = jnp.dot(h.astype(bf16), ff2_w_ref[...],
                preferred_element_type=jnp.float32) + ff2_b_ref[...]
    out_ref[...] = (h + res).reshape(B, T, H)


def positional_encoding(T, H, denominator_power=10000.0):
    position = jnp.arange(T, dtype=jnp.float32)
    num_timescales = H / 2.0
    log_timescale_increment = math.log(denominator_power) / (num_timescales - 1.0)
    inv_timescales = jnp.exp(-jnp.arange(int(num_timescales), dtype=jnp.float32)
                             * log_timescale_increment)
    scaled_time = position[:, None] * inv_timescales[None, :]          # (T, H/2)
    return jnp.concatenate([jnp.sin(scaled_time), jnp.cos(scaled_time)], axis=1)


def make_params(key, H, num_convs=4, K=7):
    """Deterministic synthetic parameters (shapes mirror the PyTorch module).

    Conv weights are stored pre-transposed for channels-last matmuls:
      pointwise / 1x1 conv weights : (C_in, C_out)
      depthwise conv weights       : (K, C)
    """
    keys = jax.random.split(key, 9)
    w = lambda k, shape, s=0.05: jax.random.normal(k, shape, jnp.float32) * s
    return dict(
        cln_g=jnp.ones((num_convs, H), jnp.float32),
        cln_b=jnp.zeros((num_convs, H), jnp.float32),
        dw_w=w(keys[0], (num_convs, K, H)),
        pw_w=w(keys[1], (num_convs, H, H)),
        pw_b=w(keys[2], (num_convs, H), 0.01),
        ln1_g=jnp.ones((1, H), jnp.float32),
        ln1_b=jnp.zeros((1, H), jnp.float32),
        mem_w=w(keys[3], (H, 2 * H)),
        qry_w=w(keys[4], (H, H)),
        ln2_g=jnp.ones((1, H), jnp.float32),
        ln2_b=jnp.zeros((1, H), jnp.float32),
        ff1_w=w(keys[5], (H, H)),
        ff1_b=w(keys[6], (1, H), 0.01),
        ff2_w=w(keys[7], (H, H)),
        ff2_b=w(keys[8], (1, H), 0.01),
    )


def encoder_forward(x, mask, params, *, num_heads=8, num_convs=4, K=7,
                    b_chunk=None):
    """x: (bs, H, T) float32 (PyTorch NCW); mask: (bs, T) float32 {0,1}."""
    bs, H, T = x.shape
    assert H % num_heads == 0
    if b_chunk is None:
        b_chunk = bs            # whole batch per grid step at small sizes
    assert bs % b_chunk == 0
    # NOTE: T should be a multiple of 8 so the (B,T,H)<->(B*T,H) reshapes in the
    # kernel are layout-free.  On v7x, pick b_chunk so bs//b_chunk is a
    # multiple of 2 to keep both TensorCores busy on the "parallel" batch axis.

    x_tl = jnp.transpose(x, (0, 2, 1)).astype(jnp.float32)   # (bs, T, H)
    mask3 = mask.reshape(bs, 1, T).astype(jnp.float32)        # (bs, 1, T)
    pos = positional_encoding(T, H)                           # (T, H)

    # matmul weights cast to bf16 (halves DMA/VMEM; native MXU path);
    # mem_w split into K / V projections so the kernel avoids a lane-offset
    # slice of the fused (N, 2H) result.
    bf16 = jnp.bfloat16
    pw_w = params["pw_w"].astype(bf16)
    k_w = params["mem_w"][:, :H].astype(bf16)
    v_w = params["mem_w"][:, H:].astype(bf16)
    qry_w = params["qry_w"].astype(bf16)
    ff1_w = params["ff1_w"].astype(bf16)
    ff2_w = params["ff2_w"].astype(bf16)

    kernel = functools.partial(encoder_kernel, num_heads=num_heads,
                               num_convs=num_convs, ksize=K)

    def full(shape):
        n = len(shape)
        return pl.BlockSpec(shape, lambda b, n=n: (0,) * n)

    grid_spec = pltpu.PrefetchScalarGridSpec(
        num_scalar_prefetch=0,
        grid=(bs // b_chunk,),
        in_specs=[
            pl.BlockSpec((b_chunk, T, H), lambda b: (b, 0, 0)),   # x
            pl.BlockSpec((b_chunk, 1, T), lambda b: (b, 0, 0)),   # mask
            full((T, H)),                                         # positional table
            full((num_convs, H)), full((num_convs, H)),           # conv LN gamma/beta
            full((num_convs, K, H)),                              # depthwise weights (f32)
            full((num_convs, H, H)), full((num_convs, H)),        # pointwise W (bf16) / b
            full((1, H)), full((1, H)),                           # LN1 gamma/beta
            full((H, H)), full((H, H)), full((H, H)),             # K / V / Q proj (bf16)
            full((1, H)), full((1, H)),                           # LN2 gamma/beta
            full((H, H)), full((1, H)),                           # FFN1 W (bf16) / b
            full((H, H)), full((1, H)),                           # FFN2 W (bf16) / b
        ],
        out_specs=pl.BlockSpec((b_chunk, T, H), lambda b: (b, 0, 0)),
    )

    out_tl = pl.pallas_call(
        kernel,
        out_shape=jax.ShapeDtypeStruct((bs, T, H), jnp.float32),
        grid_spec=grid_spec,
        compiler_params=pltpu.CompilerParams(dimension_semantics=("parallel",)),
    )(x_tl, mask3, pos,
      params["cln_g"], params["cln_b"], params["dw_w"], pw_w, params["pw_b"],
      params["ln1_g"], params["ln1_b"], k_w, v_w, qry_w,
      params["ln2_g"], params["ln2_b"], ff1_w, params["ff1_b"],
      ff2_w, params["ff2_b"])

    return jnp.transpose(out_tl, (0, 2, 1))   # back to (bs, H, T)


if __name__ == "__main__":
    bs, H, T = 2, 32, 16          # small shapes: hidden=32, seq=16, heads=8 -> dh=4
    num_heads, num_convs, K = 8, 4, 7

    key = jax.random.PRNGKey(0)
    kx, kp = jax.random.split(key)
    x = jax.random.normal(kx, (bs, H, T), jnp.float32)
    lengths = jnp.array([12, 16])
    mask = (jnp.arange(T)[None, :] < lengths[:, None]).astype(jnp.float32)   # (bs, T)

    params = make_params(kp, H, num_convs, K)

    out = encoder_forward(x, mask, params,
                          num_heads=num_heads, num_convs=num_convs, K=K)
    out = jax.block_until_ready(out)
    assert out.shape == (bs, H, T) and out.dtype == jnp.float32
    print("KERNEL_OK")
</pallas_src>

<mosaic_0001>
module attributes {stable_mosaic.version = 11 : i64} {
  func.func @encoder_kernel(%arg0: i32, %arg1: memref<2x16x32xf32, #tpu.memory_space<vmem>>, %arg2: memref<2x1x16xf32, #tpu.memory_space<vmem>>, %arg3: memref<16x32xf32, #tpu.memory_space<vmem>>, %arg4: memref<4x32xf32, #tpu.memory_space<vmem>>, %arg5: memref<4x32xf32, #tpu.memory_space<vmem>>, %arg6: memref<4x7x32xf32, #tpu.memory_space<vmem>>, %arg7: memref<4x32x32xbf16, #tpu.memory_space<vmem>>, %arg8: memref<4x32xf32, #tpu.memory_space<vmem>>, %arg9: memref<1x32xf32, #tpu.memory_space<vmem>>, %arg10: memref<1x32xf32, #tpu.memory_space<vmem>>, %arg11: memref<32x32xbf16, #tpu.memory_space<vmem>>, %arg12: memref<32x32xbf16, #tpu.memory_space<vmem>>, %arg13: memref<32x32xbf16, #tpu.memory_space<vmem>>, %arg14: memref<1x32xf32, #tpu.memory_space<vmem>>, %arg15: memref<1x32xf32, #tpu.memory_space<vmem>>, %arg16: memref<32x32xbf16, #tpu.memory_space<vmem>>, %arg17: memref<1x32xf32, #tpu.memory_space<vmem>>, %arg18: memref<32x32xbf16, #tpu.memory_space<vmem>>, %arg19: memref<1x32xf32, #tpu.memory_space<vmem>>, %arg20: memref<2x16x32xf32, #tpu.memory_space<vmem>>) attributes {dimension_semantics = [#tpu.dimension_semantics<parallel>], iteration_bounds = array<i64: 1>, scalar_prefetch = 0 : i64, scratch_operands = 0 : i64, tpu.core_type = #tpu.core_type<tc>, window_params = [{transform_indices = @transform_0, window_bounds = array<i64: 2, 16, 32>}, {transform_indices = @transform_1, window_bounds = array<i64: 2, 1, 16>}, {pipeline_mode = #tpu.pipeline_mode<synchronous>, transform_indices = @transform_2, window_bounds = array<i64: 16, 32>}, {pipeline_mode = #tpu.pipeline_mode<synchronous>, transform_indices = @transform_3, window_bounds = array<i64: 4, 32>}, {pipeline_mode = #tpu.pipeline_mode<synchronous>, transform_indices = @transform_4, window_bounds = array<i64: 4, 32>}, {pipeline_mode = #tpu.pipeline_mode<synchronous>, transform_indices = @transform_5, window_bounds = array<i64: 4, 7, 32>}, {pipeline_mode = #tpu.pipeline_mode<synchronous>, transform_indices = @transform_6, window_bounds = array<i64: 4, 32, 32>}, {pipeline_mode = #tpu.pipeline_mode<synchronous>, transform_indices = @transform_7, window_bounds = array<i64: 4, 32>}, {pipeline_mode = #tpu.pipeline_mode<synchronous>, transform_indices = @transform_8, window_bounds = array<i64: 1, 32>}, {pipeline_mode = #tpu.pipeline_mode<synchronous>, transform_indices = @transform_9, window_bounds = array<i64: 1, 32>}, {pipeline_mode = #tpu.pipeline_mode<synchronous>, transform_indices = @transform_10, window_bounds = array<i64: 32, 32>}, {pipeline_mode = #tpu.pipeline_mode<synchronous>, transform_indices = @transform_11, window_bounds = array<i64: 32, 32>}, {pipeline_mode = #tpu.pipeline_mode<synchronous>, transform_indices = @transform_12, window_bounds = array<i64: 32, 32>}, {pipeline_mode = #tpu.pipeline_mode<synchronous>, transform_indices = @transform_13, window_bounds = array<i64: 1, 32>}, {pipeline_mode = #tpu.pipeline_mode<synchronous>, transform_indices = @transform_14, window_bounds = array<i64: 1, 32>}, {pipeline_mode = #tpu.pipeline_mode<synchronous>, transform_indices = @transform_15, window_bounds = array<i64: 32, 32>}, {pipeline_mode = #tpu.pipeline_mode<synchronous>, transform_indices = @transform_16, window_bounds = array<i64: 1, 32>}, {pipeline_mode = #tpu.pipeline_mode<synchronous>, transform_indices = @transform_17, window_bounds = array<i64: 32, 32>}, {pipeline_mode = #tpu.pipeline_mode<synchronous>, transform_indices = @transform_18, window_bounds = array<i64: 1, 32>}, {transform_indices = @transform_19, window_bounds = array<i64: 2, 16, 32>}]} {
    %c0 = arith.constant 0 : index
    %c0_0 = arith.constant 0 : index
    %c0_1 = arith.constant 0 : index
    %0 = vector.load %arg1[%c0, %c0_0, %c0_1] : memref<2x16x32xf32, #tpu.memory_space<vmem>>, vector<2x16x32xf32>
    %c0_2 = arith.constant 0 : index
    %c0_3 = arith.constant 0 : index
    %1 = vector.load %arg3[%c0_2, %c0_3] : memref<16x32xf32, #tpu.memory_space<vmem>>, vector<16x32xf32>
    %2 = vector.shape_cast %1 : vector<16x32xf32> to vector<1x16x32xf32>
    %3 = vector.broadcast %2 : vector<1x16x32xf32> to vector<2x16x32xf32>
    %4 = arith.addf %0, %3 : vector<2x16x32xf32>
    %5 = vector.shape_cast %4 : vector<2x16x32xf32> to vector<32x32xf32>
    %6 = tpu.iota {dimensions = array<i32: 1>} : vector<2x16x1xi32>
    %7 = vector.shape_cast %6 : vector<2x16x1xi32> to vector<32x1xi32>
    %c3_i32 = arith.constant 3 : i32
    %8 = vector.broadcast %c3_i32 : i32 to vector<32x1xi32>
    %9 = arith.cmpi sge, %7, %8 : vector<32x1xi32>
    %c19_i32 = arith.constant 19 : i32
    %10 = vector.broadcast %c19_i32 : i32 to vector<32x1xi32>
    %11 = arith.cmpi slt, %7, %10 : vector<32x1xi32>
    %12 = arith.andi %9, %11 : vector<32x1xi1>
    %c2_i32 = arith.constant 2 : i32
    %13 = vector.broadcast %c2_i32 : i32 to vector<32x1xi32>
    %14 = arith.cmpi sge, %7, %13 : vector<32x1xi32>
    %c18_i32 = arith.constant 18 : i32
    %15 = vector.broadcast %c18_i32 : i32 to vector<32x1xi32>
    %16 = arith.cmpi slt, %7, %15 : vector<32x1xi32>
    %17 = arith.andi %14, %16 : vector<32x1xi1>
    %c1_i32 = arith.constant 1 : i32
    %18 = vector.broadcast %c1_i32 : i32 to vector<32x1xi32>
    %19 = arith.cmpi sge, %7, %18 : vector<32x1xi32>
    %c17_i32 = arith.constant 17 : i32
    %20 = vector.broadcast %c17_i32 : i32 to vector<32x1xi32>
    %21 = arith.cmpi slt, %7, %20 : vector<32x1xi32>
    %22 = arith.andi %19, %21 : vector<32x1xi1>
    %c0_i32 = arith.constant 0 : i32
    %23 = vector.broadcast %c0_i32 : i32 to vector<32x1xi32>
    %24 = arith.cmpi sge, %7, %23 : vector<32x1xi32>
    %c16_i32 = arith.constant 16 : i32
    %25 = vector.broadcast %c16_i32 : i32 to vector<32x1xi32>
    %26 = arith.cmpi slt, %7, %25 : vector<32x1xi32>
    %27 = arith.andi %24, %26 : vector<32x1xi1>
    %c-1_i32 = arith.constant -1 : i32
    %28 = vector.broadcast %c-1_i32 : i32 to vector<32x1xi32>
    %29 = arith.cmpi sge, %7, %28 : vector<32x1xi32>
    %c15_i32 = arith.constant 15 : i32
    %30 = vector.broadcast %c15_i32 : i32 to vector<32x1xi32>
    %31 = arith.cmpi slt, %7, %30 : vector<32x1xi32>
    %32 = arith.andi %29, %31 : vector<32x1xi1>
    %c-2_i32 = arith.constant -2 : i32
    %33 = vector.broadcast %c-2_i32 : i32 to vector<32x1xi32>
    %34 = arith.cmpi sge, %7, %33 : vector<32x1xi32>
    %c14_i32 = arith.constant 14 : i32
    %35 = vector.broadcast %c14_i32 : i32 to vector<32x1xi32>
    %36 = arith.cmpi slt, %7, %35 : vector<32x1xi32>
    %37 = arith.andi %34, %36 : vector<32x1xi1>
    %c-3_i32 = arith.constant -3 : i32
    %38 = vector.broadcast %c-3_i32 : i32 to vector<32x1xi32>
    %39 = arith.cmpi sge, %7, %38 : vector<32x1xi32>
    %c13_i32 = arith.constant 13 : i32
    %40 = vector.broadcast %c13_i32 : i32 to vector<32x1xi32>
    %41 = arith.cmpi slt, %7, %40 : vector<32x1xi32>
    %42 = arith.andi %39, %41 : vector<32x1xi1>
    %c0_4 = arith.constant 0 : index
    %c0_5 = arith.constant 0 : index
    %43 = vector.load %arg4[%c0_4, %c0_5] : memref<4x32xf32, #tpu.memory_space<vmem>>, vector<1x32xf32>
    %c0_6 = arith.constant 0 : index
    %c0_7 = arith.constant 0 : index
    %44 = vector.load %arg5[%c0_6, %c0_7] : memref<4x32xf32, #tpu.memory_space<vmem>>, vector<1x32xf32>
    %cst = arith.constant dense<0.000000e+00> : vector<32xf32>
    %45 = vector.multi_reduction <add>, %5, %cst [1] : vector<32x32xf32> to vector<32xf32>
    %46 = vector.shape_cast %45 : vector<32xf32> to vector<32x1xf32>
    %cst_8 = arith.constant 3.200000e+01 : f32
    %47 = vector.broadcast %cst_8 : f32 to vector<32x1xf32>
    %48 = arith.divf %46, %47 : vector<32x1xf32>
    %49 = vector.broadcast %48 : vector<32x1xf32> to vector<32x32xf32>
    %50 = arith.subf %5, %49 : vector<32x32xf32>
    %51 = arith.mulf %50, %50 : vector<32x32xf32>
    %cst_9 = arith.constant dense<0.000000e+00> : vector<32xf32>
    %52 = vector.multi_reduction <add>, %51, %cst_9 [1] : vector<32x32xf32> to vector<32xf32>
    %53 = vector.shape_cast %52 : vector<32xf32> to vector<32x1xf32>
    %cst_10 = arith.constant 3.200000e+01 : f32
    %54 = vector.broadcast %cst_10 : f32 to vector<32x1xf32>
    %55 = arith.divf %53, %54 : vector<32x1xf32>
    %56 = vector.broadcast %48 : vector<32x1xf32> to vector<32x32xf32>
    %57 = arith.subf %5, %56 : vector<32x32xf32>
    %cst_11 = arith.constant 9.99999974E-6 : f32
    %58 = vector.broadcast %cst_11 : f32 to vector<32x1xf32>
    %59 = arith.addf %55, %58 : vector<32x1xf32>
    %60 = math.rsqrt %59 : vector<32x1xf32>
    %61 = vector.broadcast %60 : vector<32x1xf32> to vector<32x32xf32>
    %62 = arith.mulf %57, %61 : vector<32x32xf32>
    %63 = vector.broadcast %43 : vector<1x32xf32> to vector<32x32xf32>
    %64 = arith.mulf %62, %63 : vector<32x32xf32>
    %65 = vector.broadcast %44 : vector<1x32xf32> to vector<32x32xf32>
    %66 = arith.addf %64, %65 : vector<32x32xf32>
    %c0_12 = arith.constant 0 : index
    %c0_13 = arith.constant 0 : index
    %c0_14 = arith.constant 0 : index
    %67 = vector.load %arg6[%c0_12, %c0_13, %c0_14] : memref<4x7x32xf32, #tpu.memory_space<vmem>>, vector<1x7x32xf32>
    %68 = vector.shape_cast %67 : vector<1x7x32xf32> to vector<7x32xf32>
    %cst_15 = arith.constant 0.000000e+00 : f32
    %69 = vector.broadcast %cst_15 : f32 to vector<32x32xf32>
    %c3_i32_16 = arith.constant 3 : i32
    %70 = tpu.dynamic_rotate %66 by %c3_i32_16 dim 0 : vector<32x32xf32>, i32 -> vector<32x32xf32>
    %cst_17 = arith.constant 0.000000e+00 : f32
    %71 = vector.shape_cast %12 : vector<32x1xi1> to vector<32x1xi1>
    %72 = vector.broadcast %71 : vector<32x1xi1> to vector<32x32xi1>
    %73 = vector.broadcast %cst_17 : f32 to vector<32x32xf32>
    %74 = arith.select %72, %70, %73 : vector<32x32xi1>, vector<32x32xf32>
    %75 = vector.extract_strided_slice %68 {offsets = [0, 0], sizes = [1, 32], strides = [1, 1]} : vector<7x32xf32> to vector<1x32xf32>
    %76 = vector.broadcast %75 : vector<1x32xf32> to vector<32x32xf32>
    %77 = arith.mulf %74, %76 : vector<32x32xf32>
    %78 = arith.addf %69, %77 : vector<32x32xf32>
    %c2_i32_18 = arith.constant 2 : i32
    %79 = tpu.dynamic_rotate %66 by %c2_i32_18 dim 0 : vector<32x32xf32>, i32 -> vector<32x32xf32>
    %cst_19 = arith.constant 0.000000e+00 : f32
    %80 = vector.shape_cast %17 : vector<32x1xi1> to vector<32x1xi1>
    %81 = vector.broadcast %80 : vector<32x1xi1> to vector<32x32xi1>
    %82 = vector.broadcast %cst_19 : f32 to vector<32x32xf32>
    %83 = arith.select %81, %79, %82 : vector<32x32xi1>, vector<32x32xf32>
    %84 = vector.extract_strided_slice %68 {offsets = [1, 0], sizes = [1, 32], strides = [1, 1]} : vector<7x32xf32> to vector<1x32xf32>
    %85 = vector.broadcast %84 : vector<1x32xf32> to vector<32x32xf32>
    %86 = arith.mulf %83, %85 : vector<32x32xf32>
    %87 = arith.addf %78, %86 : vector<32x32xf32>
    %c1_i32_20 = arith.constant 1 : i32
    %88 = tpu.dynamic_rotate %66 by %c1_i32_20 dim 0 : vector<32x32xf32>, i32 -> vector<32x32xf32>
    %cst_21 = arith.constant 0.000000e+00 : f32
    %89 = vector.shape_cast %22 : vector<32x1xi1> to vector<32x1xi1>
    %90 = vector.broadcast %89 : vector<32x1xi1> to vector<32x32xi1>
    %91 = vector.broadcast %cst_21 : f32 to vector<32x32xf32>
    %92 = arith.select %90, %88, %91 : vector<32x32xi1>, vector<32x32xf32>
    %93 = vector.extract_strided_slice %68 {offsets = [2, 0], sizes = [1, 32], strides = [1, 1]} : vector<7x32xf32> to vector<1x32xf32>
    %94 = vector.broadcast %93 : vector<1x32xf32> to vector<32x32xf32>
    %95 = arith.mulf %92, %94 : vector<32x32xf32>
    %96 = arith.addf %87, %95 : vector<32x32xf32>
    %cst_22 = arith.constant 0.000000e+00 : f32
    %97 = vector.shape_cast %27 : vector<32x1xi1> to vector<32x1xi1>
    %98 = vector.broadcast %97 : vector<32x1xi1> to vector<32x32xi1>
    %99 = vector.broadcast %cst_22 : f32 to vector<32x32xf32>
    %100 = arith.select %98, %66, %99 : vector<32x32xi1>, vector<32x32xf32>
    %101 = vector.extract_strided_slice %68 {offsets = [3, 0], sizes = [1, 32], strides = [1, 1]} : vector<7x32xf32> to vector<1x32xf32>
    %102 = vector.broadcast %101 : vector<1x32xf32> to vector<32x32xf32>
    %103 = arith.mulf %100, %102 : vector<32x32xf32>
    %104 = arith.addf %96, %103 : vector<32x32xf32>
    %c31_i32 = arith.constant 31 : i32
    %105 = tpu.dynamic_rotate %66 by %c31_i32 dim 0 : vector<32x32xf32>, i32 -> vector<32x32xf32>
    %cst_23 = arith.constant 0.000000e+00 : f32
    %106 = vector.shape_cast %32 : vector<32x1xi1> to vector<32x1xi1>
    %107 = vector.broadcast %106 : vector<32x1xi1> to vector<32x32xi1>
    %108 = vector.broadcast %cst_23 : f32 to vector<32x32xf32>
    %109 = arith.select %107, %105, %108 : vector<32x32xi1>, vector<32x32xf32>
    %110 = vector.extract_strided_slice %68 {offsets = [4, 0], sizes = [1, 32], strides = [1, 1]} : vector<7x32xf32> to vector<1x32xf32>
    %111 = vector.broadcast %110 : vector<1x32xf32> to vector<32x32xf32>
    %112 = arith.mulf %109, %111 : vector<32x32xf32>
    %113 = arith.addf %104, %112 : vector<32x32xf32>
    %c30_i32 = arith.constant 30 : i32
    %114 = tpu.dynamic_rotate %66 by %c30_i32 dim 0 : vector<32x32xf32>, i32 -> vector<32x32xf32>
    %cst_24 = arith.constant 0.000000e+00 : f32
    %115 = vector.shape_cast %37 : vector<32x1xi1> to vector<32x1xi1>
    %116 = vector.broadcast %115 : vector<32x1xi1> to vector<32x32xi1>
    %117 = vector.broadcast %cst_24 : f32 to vector<32x32xf32>
    %118 = arith.select %116, %114, %117 : vector<32x32xi1>, vector<32x32xf32>
    %119 = vector.extract_strided_slice %68 {offsets = [5, 0], sizes = [1, 32], strides = [1, 1]} : vector<7x32xf32> to vector<1x32xf32>
    %120 = vector.broadcast %119 : vector<1x32xf32> to vector<32x32xf32>
    %121 = arith.mulf %118, %120 : vector<32x32xf32>
    %122 = arith.addf %113, %121 : vector<32x32xf32>
    %c29_i32 = arith.constant 29 : i32
    %123 = tpu.dynamic_rotate %66 by %c29_i32 dim 0 : vector<32x32xf32>, i32 -> vector<32x32xf32>
    %cst_25 = arith.constant 0.000000e+00 : f32
    %124 = vector.shape_cast %42 : vector<32x1xi1> to vector<32x1xi1>
    %125 = vector.broadcast %124 : vector<32x1xi1> to vector<32x32xi1>
    %126 = vector.broadcast %cst_25 : f32 to vector<32x32xf32>
    %127 = arith.select %125, %123, %126 : vector<32x32xi1>, vector<32x32xf32>
    %128 = vector.extract_strided_slice %68 {offsets = [6, 0], sizes = [1, 32], strides = [1, 1]} : vector<7x32xf32> to vector<1x32xf32>
    %129 = vector.broadcast %128 : vector<1x32xf32> to vector<32x32xf32>
    %130 = arith.mulf %127, %129 : vector<32x32xf32>
    %131 = arith.addf %122, %130 : vector<32x32xf32>
    %132 = arith.truncf %131 : vector<32x32xf32> to vector<32x32xbf16>
    %c0_26 = arith.constant 0 : index
    %c0_27 = arith.constant 0 : index
    %c0_28 = arith.constant 0 : index
    %133 = vector.load %arg7[%c0_26, %c0_27, %c0_28] : memref<4x32x32xbf16, #tpu.memory_space<vmem>>, vector<1x32x32xbf16>
    %134 = vector.shape_cast %133 : vector<1x32x32xbf16> to vector<32x32xbf16>
    %cst_29 = arith.constant dense<0.000000e+00> : vector<32x32xf32>
    %135 = tpu.matmul %132, %134, %cst_29 {dimension_numbers = #tpu.dot_dimension_numbers<[1], [0], [0], [1], [0, 0, 1, 1], [], []>} : vector<32x32xbf16>, vector<32x32xbf16>, vector<32x32xf32> -> vector<32x32xf32>
    %c0_30 = arith.constant 0 : index
    %c0_31 = arith.constant 0 : index
    %136 = vector.load %arg8[%c0_30, %c0_31] : memref<4x32xf32, #tpu.memory_space<vmem>>, vector<1x32xf32>
    %137 = vector.broadcast %136 : vector<1x32xf32> to vector<32x32xf32>
    %138 = arith.addf %135, %137 : vector<32x32xf32>
    %cst_32 = arith.constant 0.000000e+00 : f32
    %139 = vector.broadcast %cst_32 : f32 to vector<32x32xf32>
    %140 = arith.maximumf %138, %139 : vector<32x32xf32>
    %141 = arith.addf %140, %5 : vector<32x32xf32>
    %c1 = arith.constant 1 : index
    %c0_33 = arith.constant 0 : index
    %142 = vector.load %arg4[%c1, %c0_33] : memref<4x32xf32, #tpu.memory_space<vmem>>, vector<1x32xf32>
    %c1_34 = arith.constant 1 : index
    %c0_35 = arith.constant 0 : index
    %143 = vector.load %arg5[%c1_34, %c0_35] : memref<4x32xf32, #tpu.memory_space<vmem>>, vector<1x32xf32>
    %cst_36 = arith.constant dense<0.000000e+00> : vector<32xf32>
    %144 = vector.multi_reduction <add>, %141, %cst_36 [1] : vector<32x32xf32> to vector<32xf32>
    %145 = vector.shape_cast %144 : vector<32xf32> to vector<32x1xf32>
    %cst_37 = arith.constant 3.200000e+01 : f32
    %146 = vector.broadcast %cst_37 : f32 to vector<32x1xf32>
    %147 = arith.divf %145, %146 : vector<32x1xf32>
    %148 = vector.broadcast %147 : vector<32x1xf32> to vector<32x32xf32>
    %149 = arith.subf %141, %148 : vector<32x32xf32>
    %150 = arith.mulf %149, %149 : vector<32x32xf32>
    %cst_38 = arith.constant dense<0.000000e+00> : vector<32xf32>
    %151 = vector.multi_reduction <add>, %150, %cst_38 [1] : vector<32x32xf32> to vector<32xf32>
    %152 = vector.shape_cast %151 : vector<32xf32> to vector<32x1xf32>
    %cst_39 = arith.constant 3.200000e+01 : f32
    %153 = vector.broadcast %cst_39 : f32 to vector<32x1xf32>
    %154 = arith.divf %152, %153 : vector<32x1xf32>
    %155 = vector.broadcast %147 : vector<32x1xf32> to vector<32x32xf32>
    %156 = arith.subf %141, %155 : vector<32x32xf32>
    %cst_40 = arith.constant 9.99999974E-6 : f32
    %157 = vector.broadcast %cst_40 : f32 to vector<32x1xf32>
    %158 = arith.addf %154, %157 : vector<32x1xf32>
    %159 = math.rsqrt %158 : vector<32x1xf32>
    %160 = vector.broadcast %159 : vector<32x1xf32> to vector<32x32xf32>
    %161 = arith.mulf %156, %160 : vector<32x32xf32>
    %162 = vector.broadcast %142 : vector<1x32xf32> to vector<32x32xf32>
    %163 = arith.mulf %161, %162 : vector<32x32xf32>
    %164 = vector.broadcast %143 : vector<1x32xf32> to vector<32x32xf32>
    %165 = arith.addf %163, %164 : vector<32x32xf32>
    %c1_41 = arith.constant 1 : index
    %c0_42 = arith.constant 0 : index
    %c0_43 = arith.constant 0 : index
    %166 = vector.load %arg6[%c1_41, %c0_42, %c0_43] : memref<4x7x32xf32, #tpu.memory_space<vmem>>, vector<1x7x32xf32>
    %167 = vector.shape_cast %166 : vector<1x7x32xf32> to vector<7x32xf32>
    %cst_44 = arith.constant 0.000000e+00 : f32
    %168 = vector.broadcast %cst_44 : f32 to vector<32x32xf32>
    %c3_i32_45 = arith.constant 3 : i32
    %169 = tpu.dynamic_rotate %165 by %c3_i32_45 dim 0 : vector<32x32xf32>, i32 -> vector<32x32xf32>
    %cst_46 = arith.constant 0.000000e+00 : f32
    %170 = vector.shape_cast %12 : vector<32x1xi1> to vector<32x1xi1>
    %171 = vector.broadcast %170 : vector<32x1xi1> to vector<32x32xi1>
    %172 = vector.broadcast %cst_46 : f32 to vector<32x32xf32>
    %173 = arith.select %171, %169, %172 : vector<32x32xi1>, vector<32x32xf32>
    %174 = vector.extract_strided_slice %167 {offsets = [0, 0], sizes = [1, 32], strides = [1, 1]} : vector<7x32xf32> to vector<1x32xf32>
    %175 = vector.broadcast %174 : vector<1x32xf32> to vector<32x32xf32>
    %176 = arith.mulf %173, %175 : vector<32x32xf32>
    %177 = arith.addf %168, %176 : vector<32x32xf32>
    %c2_i32_47 = arith.constant 2 : i32
    %178 = tpu.dynamic_rotate %165 by %c2_i32_47 dim 0 : vector<32x32xf32>, i32 -> vector<32x32xf32>
    %cst_48 = arith.constant 0.000000e+00 : f32
    %179 = vector.shape_cast %17 : vector<32x1xi1> to vector<32x1xi1>
    %180 = vector.broadcast %179 : vector<32x1xi1> to vector<32x32xi1>
    %181 = vector.broadcast %cst_48 : f32 to vector<32x32xf32>
    %182 = arith.select %180, %178, %181 : vector<32x32xi1>, vector<32x32xf32>
    %183 = vector.extract_strided_slice %167 {offsets = [1, 0], sizes = [1, 32], strides = [1, 1]} : vector<7x32xf32> to vector<1x32xf32>
    %184 = vector.broadcast %183 : vector<1x32xf32> to vector<32x32xf32>
    %185 = arith.mulf %182, %184 : vector<32x32xf32>
    %186 = arith.addf %177, %185 : vector<32x32xf32>
    %c1_i32_49 = arith.constant 1 : i32
    %187 = tpu.dynamic_rotate %165 by %c1_i32_49 dim 0 : vector<32x32xf32>, i32 -> vector<32x32xf32>
    %cst_50 = arith.constant 0.000000e+00 : f32
    %188 = vector.shape_cast %22 : vector<32x1xi1> to vector<32x1xi1>
    %189 = vector.broadcast %188 : vector<32x1xi1> to vector<32x32xi1>
    %190 = vector.broadcast %cst_50 : f32 to vector<32x32xf32>
    %191 = arith.select %189, %187, %190 : vector<32x32xi1>, vector<32x32xf32>
    %192 = vector.extract_strided_slice %167 {offsets = [2, 0], sizes = [1, 32], strides = [1, 1]} : vector<7x32xf32> to vector<1x32xf32>
    %193 = vector.broadcast %192 : vector<1x32xf32> to vector<32x32xf32>
    %194 = arith.mulf %191, %193 : vector<32x32xf32>
    %195 = arith.addf %186, %194 : vector<32x32xf32>
    %cst_51 = arith.constant 0.000000e+00 : f32
    %196 = vector.shape_cast %27 : vector<32x1xi1> to vector<32x1xi1>
    %197 = vector.broadcast %196 : vector<32x1xi1> to vector<32x32xi1>
    %198 = vector.broadcast %cst_51 : f32 to vector<32x32xf32>
    %199 = arith.select %197, %165, %198 : vector<32x32xi1>, vector<32x32xf32>
    %200 = vector.extract_strided_slice %167 {offsets = [3, 0], sizes = [1, 32], strides = [1, 1]} : vector<7x32xf32> to vector<1x32xf32>
    %201 = vector.broadcast %200 : vector<1x32xf32> to vector<32x32xf32>
    %202 = arith.mulf %199, %201 : vector<32x32xf32>
    %203 = arith.addf %195, %202 : vector<32x32xf32>
    %c31_i32_52 = arith.constant 31 : i32
    %204 = tpu.dynamic_rotate %165 by %c31_i32_52 dim 0 : vector<32x32xf32>, i32 -> vector<32x32xf32>
    %cst_53 = arith.constant 0.000000e+00 : f32
    %205 = vector.shape_cast %32 : vector<32x1xi1> to vector<32x1xi1>
    %206 = vector.broadcast %205 : vector<32x1xi1> to vector<32x32xi1>
    %207 = vector.broadcast %cst_53 : f32 to vector<32x32xf32>
    %208 = arith.select %206, %204, %207 : vector<32x32xi1>, vector<32x32xf32>
    %209 = vector.extract_strided_slice %167 {offsets = [4, 0], sizes = [1, 32], strides = [1, 1]} : vector<7x32xf32> to vector<1x32xf32>
    %210 = vector.broadcast %209 : vector<1x32xf32> to vector<32x32xf32>
    %211 = arith.mulf %208, %210 : vector<32x32xf32>
    %212 = arith.addf %203, %211 : vector<32x32xf32>
    %c30_i32_54 = arith.constant 30 : i32
    %213 = tpu.dynamic_rotate %165 by %c30_i32_54 dim 0 : vector<32x32xf32>, i32 -> vector<32x32xf32>
    %cst_55 = arith.constant 0.000000e+00 : f32
    %214 = vector.shape_cast %37 : vector<32x1xi1> to vector<32x1xi1>
    %215 = vector.broadcast %214 : vector<32x1xi1> to vector<32x32xi1>
    %216 = vector.broadcast %cst_55 : f32 to vector<32x32xf32>
    %217 = arith.select %215, %213, %216 : vector<32x32xi1>, vector<32x32xf32>
    %218 = vector.extract_strided_slice %167 {offsets = [5, 0], sizes = [1, 32], strides = [1, 1]} : vector<7x32xf32> to vector<1x32xf32>
    %219 = vector.broadcast %218 : vector<1x32xf32> to vector<32x32xf32>
    %220 = arith.mulf %217, %219 : vector<32x32xf32>
    %221 = arith.addf %212, %220 : vector<32x32xf32>
    %c29_i32_56 = arith.constant 29 : i32
    %222 = tpu.dynamic_rotate %165 by %c29_i32_56 dim 0 : vector<32x32xf32>, i32 -> vector<32x32xf32>
    %cst_57 = arith.constant 0.000000e+00 : f32
    %223 = vector.shape_cast %42 : vector<32x1xi1> to vector<32x1xi1>
    %224 = vector.broadcast %223 : vector<32x1xi1> to vector<32x32xi1>
    %225 = vector.broadcast %cst_57 : f32 to vector<32x32xf32>
    %226 = arith.select %224, %222, %225 : vector<32x32xi1>, vector<32x32xf32>
    %227 = vector.extract_strided_slice %167 {offsets = [6, 0], sizes = [1, 32], strides = [1, 1]} : vector<7x32xf32> to vector<1x32xf32>
    %228 = vector.broadcast %227 : vector<1x32xf32> to vector<32x32xf32>
    %229 = arith.mulf %226, %228 : vector<32x32xf32>
    %230 = arith.addf %221, %229 : vector<32x32xf32>
    %231 = arith.truncf %230 : vector<32x32xf32> to vector<32x32xbf16>
    %c1_58 = arith.constant 1 : index
    %c0_59 = arith.constant 0 : index
    %c0_60 = arith.constant 0 : index
    %232 = vector.load %arg7[%c1_58, %c0_59, %c0_60] : memref<4x32x32xbf16, #tpu.memory_space<vmem>>, vector<1x32x32xbf16>
    %233 = vector.shape_cast %232 : vector<1x32x32xbf16> to vector<32x32xbf16>
    %cst_61 = arith.constant dense<0.000000e+00> : vector<32x32xf32>
    %234 = tpu.matmul %231, %233, %cst_61 {dimension_numbers = #tpu.dot_dimension_numbers<[1], [0], [0], [1], [0, 0, 1, 1], [], []>} : vector<32x32xbf16>, vector<32x32xbf16>, vector<32x32xf32> -> vector<32x32xf32>
    %c1_62 = arith.constant 1 : index
    %c0_63 = arith.constant 0 : index
    %235 = vector.load %arg8[%c1_62, %c0_63] : memref<4x32xf32, #tpu.memory_space<vmem>>, vector<1x32xf32>
    %236 = vector.broadcast %235 : vector<1x32xf32> to vector<32x32xf32>
    %237 = arith.addf %234, %236 : vector<32x32xf32>
    %cst_64 = arith.constant 0.000000e+00 : f32
    %238 = vector.broadcast %cst_64 : f32 to vector<32x32xf32>
    %239 = arith.maximumf %237, %238 : vector<32x32xf32>
    %240 = arith.addf %239, %141 : vector<32x32xf32>
    %c2 = arith.constant 2 : index
    %c0_65 = arith.constant 0 : index
    %241 = vector.load %arg4[%c2, %c0_65] : memref<4x32xf32, #tpu.memory_space<vmem>>, vector<1x32xf32>
    %c2_66 = arith.constant 2 : index
    %c0_67 = arith.constant 0 : index
    %242 = vector.load %arg5[%c2_66, %c0_67] : memref<4x32xf32, #tpu.memory_space<vmem>>, vector<1x32xf32>
    %cst_68 = arith.constant dense<0.000000e+00> : vector<32xf32>
    %243 = vector.multi_reduction <add>, %240, %cst_68 [1] : vector<32x32xf32> to vector<32xf32>
    %244 = vector.shape_cast %243 : vector<32xf32> to vector<32x1xf32>
    %cst_69 = arith.constant 3.200000e+01 : f32
    %245 = vector.broadcast %cst_69 : f32 to vector<32x1xf32>
    %246 = arith.divf %244, %245 : vector<32x1xf32>
    %247 = vector.broadcast %246 : vector<32x1xf32> to vector<32x32xf32>
    %248 = arith.subf %240, %247 : vector<32x32xf32>
    %249 = arith.mulf %248, %248 : vector<32x32xf32>
    %cst_70 = arith.constant dense<0.000000e+00> : vector<32xf32>
    %250 = vector.multi_reduction <add>, %249, %cst_70 [1] : vector<32x32xf32> to vector<32xf32>
    %251 = vector.shape_cast %250 : vector<32xf32> to vector<32x1xf32>
    %cst_71 = arith.constant 3.200000e+01 : f32
    %252 = vector.broadcast %cst_71 : f32 to vector<32x1xf32>
    %253 = arith.divf %251, %252 : vector<32x1xf32>
    %254 = vector.broadcast %246 : vector<32x1xf32> to vector<32x32xf32>
    %255 = arith.subf %240, %254 : vector<32x32xf32>
    %cst_72 = arith.constant 9.99999974E-6 : f32
    %256 = vector.broadcast %cst_72 : f32 to vector<32x1xf32>
    %257 = arith.addf %253, %256 : vector<32x1xf32>
    %258 = math.rsqrt %257 : vector<32x1xf32>
    %259 = vector.broadcast %258 : vector<32x1xf32> to vector<32x32xf32>
    %260 = arith.mulf %255, %259 : vector<32x32xf32>
    %261 = vector.broadcast %241 : vector<1x32xf32> to vector<32x32xf32>
    %262 = arith.mulf %260, %261 : vector<32x32xf32>
    %263 = vector.broadcast %242 : vector<1x32xf32> to vector<32x32xf32>
    %264 = arith.addf %262, %263 : vector<32x32xf32>
    %c2_73 = arith.constant 2 : index
    %c0_74 = arith.constant 0 : index
    %c0_75 = arith.constant 0 : index
    %265 = vector.load %arg6[%c2_73, %c0_74, %c0_75] : memref<4x7x32xf32, #tpu.memory_space<vmem>>, vector<1x7x32xf32>
    %266 = vector.shape_cast %265 : vector<1x7x32xf32> to vector<7x32xf32>
    %cst_76 = arith.constant 0.000000e+00 : f32
    %267 = vector.broadcast %cst_76 : f32 to vector<32x32xf32>
    %c3_i32_77 = arith.constant 3 : i32
    %268 = tpu.dynamic_rotate %264 by %c3_i32_77 dim 0 : vector<32x32xf32>, i32 -> vector<32x32xf32>
    %cst_78 = arith.constant 0.000000e+00 : f32
    %269 = vector.shape_cast %12 : vector<32x1xi1> to vector<32x1xi1>
    %270 = vector.broadcast %269 : vector<32x1xi1> to vector<32x32xi1>
    %271 = vector.broadcast %cst_78 : f32 to vector<32x32xf32>
    %272 = arith.select %270, %268, %271 : vector<32x32xi1>, vector<32x32xf32>
    %273 = vector.extract_strided_slice %266 {offsets = [0, 0], sizes = [1, 32], strides = [1, 1]} : vector<7x32xf32> to vector<1x32xf32>
    %274 = vector.broadcast %273 : vector<1x32xf32> to vector<32x32xf32>
    %275 = arith.mulf %272, %274 : vector<32x32xf32>
    %276 = arith.addf %267, %275 : vector<32x32xf32>
    %c2_i32_79 = arith.constant 2 : i32
    %277 = tpu.dynamic_rotate %264 by %c2_i32_79 dim 0 : vector<32x32xf32>, i32 -> vector<32x32xf32>
    %cst_80 = arith.constant 0.000000e+00 : f32
    %278 = vector.shape_cast %17 : vector<32x1xi1> to vector<32x1xi1>
    %279 = vector.broadcast %278 : vector<32x1xi1> to vector<32x32xi1>
    %280 = vector.broadcast %cst_80 : f32 to vector<32x32xf32>
    %281 = arith.select %279, %277, %280 : vector<32x32xi1>, vector<32x32xf32>
    %282 = vector.extract_strided_slice %266 {offsets = [1, 0], sizes = [1, 32], strides = [1, 1]} : vector<7x32xf32> to vector<1x32xf32>
    %283 = vector.broadcast %282 : vector<1x32xf32> to vector<32x32xf32>
    %284 = arith.mulf %281, %283 : vector<32x32xf32>
    %285 = arith.addf %276, %284 : vector<32x32xf32>
    %c1_i32_81 = arith.constant 1 : i32
    %286 = tpu.dynamic_rotate %264 by %c1_i32_81 dim 0 : vector<32x32xf32>, i32 -> vector<32x32xf32>
    %cst_82 = arith.constant 0.000000e+00 : f32
    %287 = vector.shape_cast %22 : vector<32x1xi1> to vector<32x1xi1>
    %288 = vector.broadcast %287 : vector<32x1xi1> to vector<32x32xi1>
    %289 = vector.broadcast %cst_82 : f32 to vector<32x32xf32>
    %290 = arith.select %288, %286, %289 : vector<32x32xi1>, vector<32x32xf32>
    %291 = vector.extract_strided_slice %266 {offsets = [2, 0], sizes = [1, 32], strides = [1, 1]} : vector<7x32xf32> to vector<1x32xf32>
    %292 = vector.broadcast %291 : vector<1x32xf32> to vector<32x32xf32>
    %293 = arith.mulf %290, %292 : vector<32x32xf32>
    %294 = arith.addf %285, %293 : vector<32x32xf32>
    %cst_83 = arith.constant 0.000000e+00 : f32
    %295 = vector.shape_cast %27 : vector<32x1xi1> to vector<32x1xi1>
    %296 = vector.broadcast %295 : vector<32x1xi1> to vector<32x32xi1>
    %297 = vector.broadcast %cst_83 : f32 to vector<32x32xf32>
    %298 = arith.select %296, %264, %297 : vector<32x32xi1>, vector<32x32xf32>
    %299 = vector.extract_strided_slice %266 {offsets = [3, 0], sizes = [1, 32], strides = [1, 1]} : vector<7x32xf32> to vector<1x32xf32>
    %300 = vector.broadcast %299 : vector<1x32xf32> to vector<32x32xf32>
    %301 = arith.mulf %298, %300 : vector<32x32xf32>
    %302 = arith.addf %294, %301 : vector<32x32xf32>
    %c31_i32_84 = arith.constant 31 : i32
    %303 = tpu.dynamic_rotate %264 by %c31_i32_84 dim 0 : vector<32x32xf32>, i32 -> vector<32x32xf32>
    %cst_85 = arith.constant 0.000000e+00 : f32
    %304 = vector.shape_cast %32 : vector<32x1xi1> to vector<32x1xi1>
    %305 = vector.broadcast %304 : vector<32x1xi1> to vector<32x32xi1>
    %306 = vector.broadcast %cst_85 : f32 to vector<32x32xf32>
    %307 = arith.select %305, %303, %306 : vector<32x32xi1>, vector<32x32xf32>
    %308 = vector.extract_strided_slice %266 {offsets = [4, 0], sizes = [1, 32], strides = [1, 1]} : vector<7x32xf32> to vector<1x32xf32>
    %309 = vector.broadcast %308 : vector<1x32xf32> to vector<32x32xf32>
    %310 = arith.mulf %307, %309 : vector<32x32xf32>
    %311 = arith.addf %302, %310 : vector<32x32xf32>
    %c30_i32_86 = arith.constant 30 : i32
    %312 = tpu.dynamic_rotate %264 by %c30_i32_86 dim 0 : vector<32x32xf32>, i32 -> vector<32x32xf32>
    %cst_87 = arith.constant 0.000000e+00 : f32
    %313 = vector.shape_cast %37 : vector<32x1xi1> to vector<32x1xi1>
    %314 = vector.broadcast %313 : vector<32x1xi1> to vector<32x32xi1>
    %315 = vector.broadcast %cst_87 : f32 to vector<32x32xf32>
    %316 = arith.select %314, %312, %315 : vector<32x32xi1>, vector<32x32xf32>
    %317 = vector.extract_strided_slice %266 {offsets = [5, 0], sizes = [1, 32], strides = [1, 1]} : vector<7x32xf32> to vector<1x32xf32>
    %318 = vector.broadcast %317 : vector<1x32xf32> to vector<32x32xf32>
    %319 = arith.mulf %316, %318 : vector<32x32xf32>
    %320 = arith.addf %311, %319 : vector<32x32xf32>
    %c29_i32_88 = arith.constant 29 : i32
    %321 = tpu.dynamic_rotate %264 by %c29_i32_88 dim 0 : vector<32x32xf32>, i32 -> vector<32x32xf32>
    %cst_89 = arith.constant 0.000000e+00 : f32
    %322 = vector.shape_cast %42 : vector<32x1xi1> to vector<32x1xi1>
    %323 = vector.broadcast %322 : vector<32x1xi1> to vector<32x32xi1>
    %324 = vector.broadcast %cst_89 : f32 to vector<32x32xf32>
    %325 = arith.select %323, %321, %324 : vector<32x32xi1>, vector<32x32xf32>
    %326 = vector.extract_strided_slice %266 {offsets = [6, 0], sizes = [1, 32], strides = [1, 1]} : vector<7x32xf32> to vector<1x32xf32>
    %327 = vector.broadcast %326 : vector<1x32xf32> to vector<32x32xf32>
    %328 = arith.mulf %325, %327 : vector<32x32xf32>
    %329 = arith.addf %320, %328 : vector<32x32xf32>
    %330 = arith.truncf %329 : vector<32x32xf32> to vector<32x32xbf16>
    %c2_90 = arith.constant 2 : index
    %c0_91 = arith.constant 0 : index
    %c0_92 = arith.constant 0 : index
    %331 = vector.load %arg7[%c2_90, %c0_91, %c0_92] : memref<4x32x32xbf16, #tpu.memory_space<vmem>>, vector<1x32x32xbf16>
    %332 = vector.shape_cast %331 : vector<1x32x32xbf16> to vector<32x32xbf16>
    %cst_93 = arith.constant dense<0.000000e+00> : vector<32x32xf32>
    %333 = tpu.matmul %330, %332, %cst_93 {dimension_numbers = #tpu.dot_dimension_numbers<[1], [0], [0], [1], [0, 0, 1, 1], [], []>} : vector<32x32xbf16>, vector<32x32xbf16>, vector<32x32xf32> -> vector<32x32xf32>
    %c2_94 = arith.constant 2 : index
    %c0_95 = arith.constant 0 : index
    %334 = vector.load %arg8[%c2_94, %c0_95] : memref<4x32xf32, #tpu.memory_space<vmem>>, vector<1x32xf32>
    %335 = vector.broadcast %334 : vector<1x32xf32> to vector<32x32xf32>
    %336 = arith.addf %333, %335 : vector<32x32xf32>
    %cst_96 = arith.constant 0.000000e+00 : f32
    %337 = vector.broadcast %cst_96 : f32 to vector<32x32xf32>
    %338 = arith.maximumf %336, %337 : vector<32x32xf32>
    %339 = arith.addf %338, %240 : vector<32x32xf32>
    %c3 = arith.constant 3 : index
    %c0_97 = arith.constant 0 : index
    %340 = vector.load %arg4[%c3, %c0_97] : memref<4x32xf32, #tpu.memory_space<vmem>>, vector<1x32xf32>
    %c3_98 = arith.constant 3 : index
    %c0_99 = arith.constant 0 : index
    %341 = vector.load %arg5[%c3_98, %c0_99] : memref<4x32xf32, #tpu.memory_space<vmem>>, vector<1x32xf32>
    %cst_100 = arith.constant dense<0.000000e+00> : vector<32xf32>
    %342 = vector.multi_reduction <add>, %339, %cst_100 [1] : vector<32x32xf32> to vector<32xf32>
    %343 = vector.shape_cast %342 : vector<32xf32> to vector<32x1xf32>
    %cst_101 = arith.constant 3.200000e+01 : f32
    %344 = vector.broadcast %cst_101 : f32 to vector<32x1xf32>
    %345 = arith.divf %343, %344 : vector<32x1xf32>
    %346 = vector.broadcast %345 : vector<32x1xf32> to vector<32x32xf32>
    %347 = arith.subf %339, %346 : vector<32x32xf32>
    %348 = arith.mulf %347, %347 : vector<32x32xf32>
    %cst_102 = arith.constant dense<0.000000e+00> : vector<32xf32>
    %349 = vector.multi_reduction <add>, %348, %cst_102 [1] : vector<32x32xf32> to vector<32xf32>
    %350 = vector.shape_cast %349 : vector<32xf32> to vector<32x1xf32>
    %cst_103 = arith.constant 3.200000e+01 : f32
    %351 = vector.broadcast %cst_103 : f32 to vector<32x1xf32>
    %352 = arith.divf %350, %351 : vector<32x1xf32>
    %353 = vector.broadcast %345 : vector<32x1xf32> to vector<32x32xf32>
    %354 = arith.subf %339, %353 : vector<32x32xf32>
    %cst_104 = arith.constant 9.99999974E-6 : f32
    %355 = vector.broadcast %cst_104 : f32 to vector<32x1xf32>
    %356 = arith.addf %352, %355 : vector<32x1xf32>
    %357 = math.rsqrt %356 : vector<32x1xf32>
    %358 = vector.broadcast %357 : vector<32x1xf32> to vector<32x32xf32>
    %359 = arith.mulf %354, %358 : vector<32x32xf32>
    %360 = vector.broadcast %340 : vector<1x32xf32> to vector<32x32xf32>
    %361 = arith.mulf %359, %360 : vector<32x32xf32>
    %362 = vector.broadcast %341 : vector<1x32xf32> to vector<32x32xf32>
    %363 = arith.addf %361, %362 : vector<32x32xf32>
    %c3_105 = arith.constant 3 : index
    %c0_106 = arith.constant 0 : index
    %c0_107 = arith.constant 0 : index
    %364 = vector.load %arg6[%c3_105, %c0_106, %c0_107] : memref<4x7x32xf32, #tpu.memory_space<vmem>>, vector<1x7x32xf32>
    %365 = vector.shape_cast %364 : vector<1x7x32xf32> to vector<7x32xf32>
    %cst_108 = arith.constant 0.000000e+00 : f32
    %366 = vector.broadcast %cst_108 : f32 to vector<32x32xf32>
    %c3_i32_109 = arith.constant 3 : i32
    %367 = tpu.dynamic_rotate %363 by %c3_i32_109 dim 0 : vector<32x32xf32>, i32 -> vector<32x32xf32>
    %cst_110 = arith.constant 0.000000e+00 : f32
    %368 = vector.shape_cast %12 : vector<32x1xi1> to vector<32x1xi1>
    %369 = vector.broadcast %368 : vector<32x1xi1> to vector<32x32xi1>
    %370 = vector.broadcast %cst_110 : f32 to vector<32x32xf32>
    %371 = arith.select %369, %367, %370 : vector<32x32xi1>, vector<32x32xf32>
    %372 = vector.extract_strided_slice %365 {offsets = [0, 0], sizes = [1, 32], strides = [1, 1]} : vector<7x32xf32> to vector<1x32xf32>
    %373 = vector.broadcast %372 : vector<1x32xf32> to vector<32x32xf32>
    %374 = arith.mulf %371, %373 : vector<32x32xf32>
    %375 = arith.addf %366, %374 : vector<32x32xf32>
    %c2_i32_111 = arith.constant 2 : i32
    %376 = tpu.dynamic_rotate %363 by %c2_i32_111 dim 0 : vector<32x32xf32>, i32 -> vector<32x32xf32>
    %cst_112 = arith.constant 0.000000e+00 : f32
    %377 = vector.shape_cast %17 : vector<32x1xi1> to vector<32x1xi1>
    %378 = vector.broadcast %377 : vector<32x1xi1> to vector<32x32xi1>
    %379 = vector.broadcast %cst_112 : f32 to vector<32x32xf32>
    %380 = arith.select %378, %376, %379 : vector<32x32xi1>, vector<32x32xf32>
    %381 = vector.extract_strided_slice %365 {offsets = [1, 0], sizes = [1, 32], strides = [1, 1]} : vector<7x32xf32> to vector<1x32xf32>
    %382 = vector.broadcast %381 : vector<1x32xf32> to vector<32x32xf32>
    %383 = arith.mulf %380, %382 : vector<32x32xf32>
    %384 = arith.addf %375, %383 : vector<32x32xf32>
    %c1_i32_113 = arith.constant 1 : i32
    %385 = tpu.dynamic_rotate %363 by %c1_i32_113 dim 0 : vector<32x32xf32>, i32 -> vector<32x32xf32>
    %cst_114 = arith.constant 0.000000e+00 : f32
    %386 = vector.shape_cast %22 : vector<32x1xi1> to vector<32x1xi1>
    %387 = vector.broadcast %386 : vector<32x1xi1> to vector<32x32xi1>
    %388 = vector.broadcast %cst_114 : f32 to vector<32x32xf32>
    %389 = arith.select %387, %385, %388 : vector<32x32xi1>, vector<32x32xf32>
    %390 = vector.extract_strided_slice %365 {offsets = [2, 0], sizes = [1, 32], strides = [1, 1]} : vector<7x32xf32> to vector<1x32xf32>
    %391 = vector.broadcast %390 : vector<1x32xf32> to vector<32x32xf32>
    %392 = arith.mulf %389, %391 : vector<32x32xf32>
    %393 = arith.addf %384, %392 : vector<32x32xf32>
    %cst_115 = arith.constant 0.000000e+00 : f32
    %394 = vector.shape_cast %27 : vector<32x1xi1> to vector<32x1xi1>
    %395 = vector.broadcast %394 : vector<32x1xi1> to vector<32x32xi1>
    %396 = vector.broadcast %cst_115 : f32 to vector<32x32xf32>
    %397 = arith.select %395, %363, %396 : vector<32x32xi1>, vector<32x32xf32>
    %398 = vector.extract_strided_slice %365 {offsets = [3, 0], sizes = [1, 32], strides = [1, 1]} : vector<7x32xf32> to vector<1x32xf32>
    %399 = vector.broadcast %398 : vector<1x32xf32> to vector<32x32xf32>
    %400 = arith.mulf %397, %399 : vector<32x32xf32>
    %401 = arith.addf %393, %400 : vector<32x32xf32>
    %c31_i32_116 = arith.constant 31 : i32
    %402 = tpu.dynamic_rotate %363 by %c31_i32_116 dim 0 : vector<32x32xf32>, i32 -> vector<32x32xf32>
    %cst_117 = arith.constant 0.000000e+00 : f32
    %403 = vector.shape_cast %32 : vector<32x1xi1> to vector<32x1xi1>
    %404 = vector.broadcast %403 : vector<32x1xi1> to vector<32x32xi1>
    %405 = vector.broadcast %cst_117 : f32 to vector<32x32xf32>
    %406 = arith.select %404, %402, %405 : vector<32x32xi1>, vector<32x32xf32>
    %407 = vector.extract_strided_slice %365 {offsets = [4, 0], sizes = [1, 32], strides = [1, 1]} : vector<7x32xf32> to vector<1x32xf32>
    %408 = vector.broadcast %407 : vector<1x32xf32> to vector<32x32xf32>
    %409 = arith.mulf %406, %408 : vector<32x32xf32>
    %410 = arith.addf %401, %409 : vector<32x32xf32>
    %c30_i32_118 = arith.constant 30 : i32
    %411 = tpu.dynamic_rotate %363 by %c30_i32_118 dim 0 : vector<32x32xf32>, i32 -> vector<32x32xf32>
    %cst_119 = arith.constant 0.000000e+00 : f32
    %412 = vector.shape_cast %37 : vector<32x1xi1> to vector<32x1xi1>
    %413 = vector.broadcast %412 : vector<32x1xi1> to vector<32x32xi1>
    %414 = vector.broadcast %cst_119 : f32 to vector<32x32xf32>
    %415 = arith.select %413, %411, %414 : vector<32x32xi1>, vector<32x32xf32>
    %416 = vector.extract_strided_slice %365 {offsets = [5, 0], sizes = [1, 32], strides = [1, 1]} : vector<7x32xf32> to vector<1x32xf32>
    %417 = vector.broadcast %416 : vector<1x32xf32> to vector<32x32xf32>
    %418 = arith.mulf %415, %417 : vector<32x32xf32>
    %419 = arith.addf %410, %418 : vector<32x32xf32>
    %c29_i32_120 = arith.constant 29 : i32
    %420 = tpu.dynamic_rotate %363 by %c29_i32_120 dim 0 : vector<32x32xf32>, i32 -> vector<32x32xf32>
    %cst_121 = arith.constant 0.000000e+00 : f32
    %421 = vector.shape_cast %42 : vector<32x1xi1> to vector<32x1xi1>
    %422 = vector.broadcast %421 : vector<32x1xi1> to vector<32x32xi1>
    %423 = vector.broadcast %cst_121 : f32 to vector<32x32xf32>
    %424 = arith.select %422, %420, %423 : vector<32x32xi1>, vector<32x32xf32>
    %425 = vector.extract_strided_slice %365 {offsets = [6, 0], sizes = [1, 32], strides = [1, 1]} : vector<7x32xf32> to vector<1x32xf32>
    %426 = vector.broadcast %425 : vector<1x32xf32> to vector<32x32xf32>
    %427 = arith.mulf %424, %426 : vector<32x32xf32>
    %428 = arith.addf %419, %427 : vector<32x32xf32>
    %429 = arith.truncf %428 : vector<32x32xf32> to vector<32x32xbf16>
    %c3_122 = arith.constant 3 : index
    %c0_123 = arith.constant 0 : index
    %c0_124 = arith.constant 0 : index
    %430 = vector.load %arg7[%c3_122, %c0_123, %c0_124] : memref<4x32x32xbf16, #tpu.memory_space<vmem>>, vector<1x32x32xbf16>
    %431 = vector.shape_cast %430 : vector<1x32x32xbf16> to vector<32x32xbf16>
    %cst_125 = arith.constant dense<0.000000e+00> : vector<32x32xf32>
    %432 = tpu.matmul %429, %431, %cst_125 {dimension_numbers = #tpu.dot_dimension_numbers<[1], [0], [0], [1], [0, 0, 1, 1], [], []>} : vector<32x32xbf16>, vector<32x32xbf16>, vector<32x32xf32> -> vector<32x32xf32>
    %c3_126 = arith.constant 3 : index
    %c0_127 = arith.constant 0 : index
    %433 = vector.load %arg8[%c3_126, %c0_127] : memref<4x32xf32, #tpu.memory_space<vmem>>, vector<1x32xf32>
    %434 = vector.broadcast %433 : vector<1x32xf32> to vector<32x32xf32>
    %435 = arith.addf %432, %434 : vector<32x32xf32>
    %cst_128 = arith.constant 0.000000e+00 : f32
    %436 = vector.broadcast %cst_128 : f32 to vector<32x32xf32>
    %437 = arith.maximumf %435, %436 : vector<32x32xf32>
    %438 = arith.addf %437, %339 : vector<32x32xf32>
    %c0_129 = arith.constant 0 : index
    %c0_130 = arith.constant 0 : index
    %439 = vector.load %arg9[%c0_129, %c0_130] : memref<1x32xf32, #tpu.memory_space<vmem>>, vector<1x32xf32>
    %c0_131 = arith.constant 0 : index
    %c0_132 = arith.constant 0 : index
    %440 = vector.load %arg10[%c0_131, %c0_132] : memref<1x32xf32, #tpu.memory_space<vmem>>, vector<1x32xf32>
    %cst_133 = arith.constant dense<0.000000e+00> : vector<32xf32>
    %441 = vector.multi_reduction <add>, %438, %cst_133 [1] : vector<32x32xf32> to vector<32xf32>
    %442 = vector.shape_cast %441 : vector<32xf32> to vector<32x1xf32>
    %cst_134 = arith.constant 3.200000e+01 : f32
    %443 = vector.broadcast %cst_134 : f32 to vector<32x1xf32>
    %444 = arith.divf %442, %443 : vector<32x1xf32>
    %445 = vector.broadcast %444 : vector<32x1xf32> to vector<32x32xf32>
    %446 = arith.subf %438, %445 : vector<32x32xf32>
    %447 = arith.mulf %446, %446 : vector<32x32xf32>
    %cst_135 = arith.constant dense<0.000000e+00> : vector<32xf32>
    %448 = vector.multi_reduction <add>, %447, %cst_135 [1] : vector<32x32xf32> to vector<32xf32>
    %449 = vector.shape_cast %448 : vector<32xf32> to vector<32x1xf32>
    %cst_136 = arith.constant 3.200000e+01 : f32
    %450 = vector.broadcast %cst_136 : f32 to vector<32x1xf32>
    %451 = arith.divf %449, %450 : vector<32x1xf32>
    %452 = vector.broadcast %444 : vector<32x1xf32> to vector<32x32xf32>
    %453 = arith.subf %438, %452 : vector<32x32xf32>
    %cst_137 = arith.constant 9.99999974E-6 : f32
    %454 = vector.broadcast %cst_137 : f32 to vector<32x1xf32>
    %455 = arith.addf %451, %454 : vector<32x1xf32>
    %456 = math.rsqrt %455 : vector<32x1xf32>
    %457 = vector.broadcast %456 : vector<32x1xf32> to vector<32x32xf32>
    %458 = arith.mulf %453, %457 : vector<32x32xf32>
    %459 = vector.broadcast %439 : vector<1x32xf32> to vector<32x32xf32>
    %460 = arith.mulf %458, %459 : vector<32x32xf32>
    %461 = vector.broadcast %440 : vector<1x32xf32> to vector<32x32xf32>
    %462 = arith.addf %460, %461 : vector<32x32xf32>
    %463 = arith.truncf %462 : vector<32x32xf32> to vector<32x32xbf16>
    %c0_138 = arith.constant 0 : index
    %c0_139 = arith.constant 0 : index
    %464 = vector.load %arg11[%c0_138, %c0_139] : memref<32x32xbf16, #tpu.memory_space<vmem>>, vector<32x32xbf16>
    %cst_140 = arith.constant dense<0.000000e+00> : vector<32x32xf32>
    %465 = tpu.matmul %463, %464, %cst_140 {dimension_numbers = #tpu.dot_dimension_numbers<[1], [0], [0], [1], [0, 0, 1, 1], [], []>} : vector<32x32xbf16>, vector<32x32xbf16>, vector<32x32xf32> -> vector<32x32xf32>
    %c0_141 = arith.constant 0 : index
    %c0_142 = arith.constant 0 : index
    %466 = vector.load %arg12[%c0_141, %c0_142] : memref<32x32xbf16, #tpu.memory_space<vmem>>, vector<32x32xbf16>
    %cst_143 = arith.constant dense<0.000000e+00> : vector<32x32xf32>
    %467 = tpu.matmul %463, %466, %cst_143 {dimension_numbers = #tpu.dot_dimension_numbers<[1], [0], [0], [1], [0, 0, 1, 1], [], []>} : vector<32x32xbf16>, vector<32x32xbf16>, vector<32x32xf32> -> vector<32x32xf32>
    %c0_144 = arith.constant 0 : index
    %c0_145 = arith.constant 0 : index
    %468 = vector.load %arg13[%c0_144, %c0_145] : memref<32x32xbf16, #tpu.memory_space<vmem>>, vector<32x32xbf16>
    %cst_146 = arith.constant dense<0.000000e+00> : vector<32x32xf32>
    %469 = tpu.matmul %463, %468, %cst_146 {dimension_numbers = #tpu.dot_dimension_numbers<[1], [0], [0], [1], [0, 0, 1, 1], [], []>} : vector<32x32xbf16>, vector<32x32xbf16>, vector<32x32xf32> -> vector<32x32xf32>
    %cst_147 = arith.constant 5.000000e-01 : f32
    %470 = vector.broadcast %cst_147 : f32 to vector<32x32xf32>
    %471 = arith.mulf %469, %470 : vector<32x32xf32>
    %472 = vector.shape_cast %471 : vector<32x32xf32> to vector<2x16x32xf32>
    %473 = vector.shape_cast %465 : vector<32x32xf32> to vector<2x16x32xf32>
    %474 = vector.shape_cast %467 : vector<32x32xf32> to vector<2x16x32xf32>
    %c0_148 = arith.constant 0 : index
    %c0_149 = arith.constant 0 : index
    %c0_150 = arith.constant 0 : index
    %475 = vector.load %arg2[%c0_148, %c0_149, %c0_150] : memref<2x1x16xf32, #tpu.memory_space<vmem>>, vector<2x1x16xf32>
    %cst_151 = arith.constant 0.000000e+00 : f32
    %476 = vector.broadcast %cst_151 : f32 to vector<2x1x16xf32>
    %477 = arith.cmpf ogt, %475, %476 : vector<2x1x16xf32>
    %478 = vector.shape_cast %477 : vector<2x1x16xi1> to vector<2x1x16xi1>
    %479 = vector.broadcast %478 : vector<2x1x16xi1> to vector<2x16x16xi1>
    %480 = vector.extract_strided_slice %472 {offsets = [0, 0, 0], sizes = [2, 16, 4], strides = [1, 1, 1]} : vector<2x16x32xf32> to vector<2x16x4xf32>
    %481 = arith.truncf %480 : vector<2x16x4xf32> to vector<2x16x4xbf16>
    %482 = vector.extract_strided_slice %473 {offsets = [0, 0, 0], sizes = [2, 16, 4], strides = [1, 1, 1]} : vector<2x16x32xf32> to vector<2x16x4xf32>
    %483 = arith.truncf %482 : vector<2x16x4xf32> to vector<2x16x4xbf16>
    %484 = vector.extract_strided_slice %474 {offsets = [0, 0, 0], sizes = [2, 16, 4], strides = [1, 1, 1]} : vector<2x16x32xf32> to vector<2x16x4xf32>
    %485 = arith.truncf %484 : vector<2x16x4xf32> to vector<2x16x4xbf16>
    "tpu.trace_start"() <{level = 10 : i32, message = "btd,bsd->bts"}> : () -> ()
    %cst_152 = arith.constant dense<0.000000e+00> : vector<2x16x16xf32>
    %486 = tpu.matmul %481, %483, %cst_152 {dimension_numbers = #tpu.dot_dimension_numbers<[2], [2], [1], [1], [0, 0, 0, 1, 1, 1], [0], [0]>} : vector<2x16x4xbf16>, vector<2x16x4xbf16>, vector<2x16x16xf32> -> vector<2x16x16xf32>
    %cst_153 = arith.constant -1.000000e+30 : f32
    "tpu.trace_stop"() : () -> ()
    %487 = vector.broadcast %cst_153 : f32 to vector<2x16x16xf32>
    %488 = arith.select %479, %486, %487 : vector<2x16x16xi1>, vector<2x16x16xf32>
    %cst_154 = arith.constant dense<0xFF800000> : vector<2x16xf32>
    %489 = vector.multi_reduction <maximumf>, %488, %cst_154 [2] : vector<2x16x16xf32> to vector<2x16xf32>
    %490 = vector.shape_cast %489 : vector<2x16xf32> to vector<2x16x1xf32>
    %491 = vector.broadcast %490 : vector<2x16x1xf32> to vector<2x16x16xf32>
    %492 = arith.subf %488, %491 : vector<2x16x16xf32>
    %493 = math.exp %492 : vector<2x16x16xf32>
    %cst_155 = arith.constant dense<0.000000e+00> : vector<2x16xf32>
    %494 = vector.multi_reduction <add>, %493, %cst_155 [2] : vector<2x16x16xf32> to vector<2x16xf32>
    %495 = vector.shape_cast %494 : vector<2x16xf32> to vector<2x16x1xf32>
    %496 = tpu.reciprocal %495 {approx = true} : vector<2x16x1xf32> -> vector<2x16x1xf32>
    %497 = vector.broadcast %496 : vector<2x16x1xf32> to vector<2x16x16xf32>
    %498 = arith.mulf %493, %497 : vector<2x16x16xf32>
    %499 = arith.truncf %498 : vector<2x16x16xf32> to vector<2x16x16xbf16>
    "tpu.trace_start"() <{level = 10 : i32, message = "bts,bsd->btd"}> : () -> ()
    %cst_156 = arith.constant dense<0.000000e+00> : vector<2x16x4xf32>
    %500 = tpu.matmul %499, %485, %cst_156 {dimension_numbers = #tpu.dot_dimension_numbers<[2], [1], [1], [2], [0, 0, 0, 1, 1, 2], [0], [0]>} : vector<2x16x16xbf16>, vector<2x16x4xbf16>, vector<2x16x4xf32> -> vector<2x16x4xf32>
    "tpu.trace_stop"() : () -> ()
    %501 = vector.extract_strided_slice %472 {offsets = [0, 0, 4], sizes = [2, 16, 4], strides = [1, 1, 1]} : vector<2x16x32xf32> to vector<2x16x4xf32>
    %502 = arith.truncf %501 : vector<2x16x4xf32> to vector<2x16x4xbf16>
    %503 = vector.extract_strided_slice %473 {offsets = [0, 0, 4], sizes = [2, 16, 4], strides = [1, 1, 1]} : vector<2x16x32xf32> to vector<2x16x4xf32>
    %504 = arith.truncf %503 : vector<2x16x4xf32> to vector<2x16x4xbf16>
    %505 = vector.extract_strided_slice %474 {offsets = [0, 0, 4], sizes = [2, 16, 4], strides = [1, 1, 1]} : vector<2x16x32xf32> to vector<2x16x4xf32>
    %506 = arith.truncf %505 : vector<2x16x4xf32> to vector<2x16x4xbf16>
    "tpu.trace_start"() <{level = 10 : i32, message = "btd,bsd->bts"}> : () -> ()
    %cst_157 = arith.constant dense<0.000000e+00> : vector<2x16x16xf32>
    %507 = tpu.matmul %502, %504, %cst_157 {dimension_numbers = #tpu.dot_dimension_numbers<[2], [2], [1], [1], [0, 0, 0, 1, 1, 1], [0], [0]>} : vector<2x16x4xbf16>, vector<2x16x4xbf16>, vector<2x16x16xf32> -> vector<2x16x16xf32>
    %cst_158 = arith.constant -1.000000e+30 : f32
    "tpu.trace_stop"() : () -> ()
    %508 = vector.broadcast %cst_158 : f32 to vector<2x16x16xf32>
    %509 = arith.select %479, %507, %508 : vector<2x16x16xi1>, vector<2x16x16xf32>
    %cst_159 = arith.constant dense<0xFF800000> : vector<2x16xf32>
    %510 = vector.multi_reduction <maximumf>, %509, %cst_159 [2] : vector<2x16x16xf32> to vector<2x16xf32>
    %511 = vector.shape_cast %510 : vector<2x16xf32> to vector<2x16x1xf32>
    %512 = vector.broadcast %511 : vector<2x16x1xf32> to vector<2x16x16xf32>
    %513 = arith.subf %509, %512 : vector<2x16x16xf32>
    %514 = math.exp %513 : vector<2x16x16xf32>
    %cst_160 = arith.constant dense<0.000000e+00> : vector<2x16xf32>
    %515 = vector.multi_reduction <add>, %514, %cst_160 [2] : vector<2x16x16xf32> to vector<2x16xf32>
    %516 = vector.shape_cast %515 : vector<2x16xf32> to vector<2x16x1xf32>
    %517 = tpu.reciprocal %516 {approx = true} : vector<2x16x1xf32> -> vector<2x16x1xf32>
    %518 = vector.broadcast %517 : vector<2x16x1xf32> to vector<2x16x16xf32>
    %519 = arith.mulf %514, %518 : vector<2x16x16xf32>
    %520 = arith.truncf %519 : vector<2x16x16xf32> to vector<2x16x16xbf16>
    "tpu.trace_start"() <{level = 10 : i32, message = "bts,bsd->btd"}> : () -> ()
    %cst_161 = arith.constant dense<0.000000e+00> : vector<2x16x4xf32>
    %521 = tpu.matmul %520, %506, %cst_161 {dimension_numbers = #tpu.dot_dimension_numbers<[2], [1], [1], [2], [0, 0, 0, 1, 1, 2], [0], [0]>} : vector<2x16x16xbf16>, vector<2x16x4xbf16>, vector<2x16x4xf32> -> vector<2x16x4xf32>
    "tpu.trace_stop"() : () -> ()
    %522 = vector.extract_strided_slice %472 {offsets = [0, 0, 8], sizes = [2, 16, 4], strides = [1, 1, 1]} : vector<2x16x32xf32> to vector<2x16x4xf32>
    %523 = arith.truncf %522 : vector<2x16x4xf32> to vector<2x16x4xbf16>
    %524 = vector.extract_strided_slice %473 {offsets = [0, 0, 8], sizes = [2, 16, 4], strides = [1, 1, 1]} : vector<2x16x32xf32> to vector<2x16x4xf32>
    %525 = arith.truncf %524 : vector<2x16x4xf32> to vector<2x16x4xbf16>
    %526 = vector.extract_strided_slice %474 {offsets = [0, 0, 8], sizes = [2, 16, 4], strides = [1, 1, 1]} : vector<2x16x32xf32> to vector<2x16x4xf32>
    %527 = arith.truncf %526 : vector<2x16x4xf32> to vector<2x16x4xbf16>
    "tpu.trace_start"() <{level = 10 : i32, message = "btd,bsd->bts"}> : () -> ()
    %cst_162 = arith.constant dense<0.000000e+00> : vector<2x16x16xf32>
    %528 = tpu.matmul %523, %525, %cst_162 {dimension_numbers = #tpu.dot_dimension_numbers<[2], [2], [1], [1], [0, 0, 0, 1, 1, 1], [0], [0]>} : vector<2x16x4xbf16>, vector<2x16x4xbf16>, vector<2x16x16xf32> -> vector<2x16x16xf32>
    %cst_163 = arith.constant -1.000000e+30 : f32
    "tpu.trace_stop"() : () -> ()
    %529 = vector.broadcast %cst_163 : f32 to vector<2x16x16xf32>
    %530 = arith.select %479, %528, %529 : vector<2x16x16xi1>, vector<2x16x16xf32>
    %cst_164 = arith.constant dense<0xFF800000> : vector<2x16xf32>
    %531 = vector.multi_reduction <maximumf>, %530, %cst_164 [2] : vector<2x16x16xf32> to vector<2x16xf32>
    %532 = vector.shape_cast %531 : vector<2x16xf32> to vector<2x16x1xf32>
    %533 = vector.broadcast %532 : vector<2x16x1xf32> to vector<2x16x16xf32>
    %534 = arith.subf %530, %533 : vector<2x16x16xf32>
    %535 = math.exp %534 : vector<2x16x16xf32>
    %cst_165 = arith.constant dense<0.000000e+00> : vector<2x16xf32>
    %536 = vector.multi_reduction <add>, %535, %cst_165 [2] : vector<2x16x16xf32> to vector<2x16xf32>
    %537 = vector.shape_cast %536 : vector<2x16xf32> to vector<2x16x1xf32>
    %538 = tpu.reciprocal %537 {approx = true} : vector<2x16x1xf32> -> vector<2x16x1xf32>
    %539 = vector.broadcast %538 : vector<2x16x1xf32> to vector<2x16x16xf32>
    %540 = arith.mulf %535, %539 : vector<2x16x16xf32>
    %541 = arith.truncf %540 : vector<2x16x16xf32> to vector<2x16x16xbf16>
    "tpu.trace_start"() <{level = 10 : i32, message = "bts,bsd->btd"}> : () -> ()
    %cst_166 = arith.constant dense<0.000000e+00> : vector<2x16x4xf32>
    %542 = tpu.matmul %541, %527, %cst_166 {dimension_numbers = #tpu.dot_dimension_numbers<[2], [1], [1], [2], [0, 0, 0, 1, 1, 2], [0], [0]>} : vector<2x16x16xbf16>, vector<2x16x4xbf16>, vector<2x16x4xf32> -> vector<2x16x4xf32>
    "tpu.trace_stop"() : () -> ()
    %543 = vector.extract_strided_slice %472 {offsets = [0, 0, 12], sizes = [2, 16, 4], strides = [1, 1, 1]} : vector<2x16x32xf32> to vector<2x16x4xf32>
    %544 = arith.truncf %543 : vector<2x16x4xf32> to vector<2x16x4xbf16>
    %545 = vector.extract_strided_slice %473 {offsets = [0, 0, 12], sizes = [2, 16, 4], strides = [1, 1, 1]} : vector<2x16x32xf32> to vector<2x16x4xf32>
    %546 = arith.truncf %545 : vector<2x16x4xf32> to vector<2x16x4xbf16>
    %547 = vector.extract_strided_slice %474 {offsets = [0, 0, 12], sizes = [2, 16, 4], strides = [1, 1, 1]} : vector<2x16x32xf32> to vector<2x16x4xf32>
    %548 = arith.truncf %547 : vector<2x16x4xf32> to vector<2x16x4xbf16>
    "tpu.trace_start"() <{level = 10 : i32, message = "btd,bsd->bts"}> : () -> ()
    %cst_167 = arith.constant dense<0.000000e+00> : vector<2x16x16xf32>
    %549 = tpu.matmul %544, %546, %cst_167 {dimension_numbers = #tpu.dot_dimension_numbers<[2], [2], [1], [1], [0, 0, 0, 1, 1, 1], [0], [0]>} : vector<2x16x4xbf16>, vector<2x16x4xbf16>, vector<2x16x16xf32> -> vector<2x16x16xf32>
    %cst_168 = arith.constant -1.000000e+30 : f32
    "tpu.trace_stop"() : () -> ()
    %550 = vector.broadcast %cst_168 : f32 to vector<2x16x16xf32>
    %551 = arith.select %479, %549, %550 : vector<2x16x16xi1>, vector<2x16x16xf32>
    %cst_169 = arith.constant dense<0xFF800000> : vector<2x16xf32>
    %552 = vector.multi_reduction <maximumf>, %551, %cst_169 [2] : vector<2x16x16xf32> to vector<2x16xf32>
    %553 = vector.shape_cast %552 : vector<2x16xf32> to vector<2x16x1xf32>
    %554 = vector.broadcast %553 : vector<2x16x1xf32> to vector<2x16x16xf32>
    %555 = arith.subf %551, %554 : vector<2x16x16xf32>
    %556 = math.exp %555 : vector<2x16x16xf32>
    %cst_170 = arith.constant dense<0.000000e+00> : vector<2x16xf32>
    %557 = vector.multi_reduction <add>, %556, %cst_170 [2] : vector<2x16x16xf32> to vector<2x16xf32>
    %558 = vector.shape_cast %557 : vector<2x16xf32> to vector<2x16x1xf32>
    %559 = tpu.reciprocal %558 {approx = true} : vector<2x16x1xf32> -> vector<2x16x1xf32>
    %560 = vector.broadcast %559 : vector<2x16x1xf32> to vector<2x16x16xf32>
    %561 = arith.mulf %556, %560 : vector<2x16x16xf32>
    %562 = arith.truncf %561 : vector<2x16x16xf32> to vector<2x16x16xbf16>
    "tpu.trace_start"() <{level = 10 : i32, message = "bts,bsd->btd"}> : () -> ()
    %cst_171 = arith.constant dense<0.000000e+00> : vector<2x16x4xf32>
    %563 = tpu.matmul %562, %548, %cst_171 {dimension_numbers = #tpu.dot_dimension_numbers<[2], [1], [1], [2], [0, 0, 0, 1, 1, 2], [0], [0]>} : vector<2x16x16xbf16>, vector<2x16x4xbf16>, vector<2x16x4xf32> -> vector<2x16x4xf32>
    "tpu.trace_stop"() : () -> ()
    %564 = vector.extract_strided_slice %472 {offsets = [0, 0, 16], sizes = [2, 16, 4], strides = [1, 1, 1]} : vector<2x16x32xf32> to vector<2x16x4xf32>
    %565 = arith.truncf %564 : vector<2x16x4xf32> to vector<2x16x4xbf16>
    %566 = vector.extract_strided_slice %473 {offsets = [0, 0, 16], sizes = [2, 16, 4], strides = [1, 1, 1]} : vector<2x16x32xf32> to vector<2x16x4xf32>
    %567 = arith.truncf %566 : vector<2x16x4xf32> to vector<2x16x4xbf16>
    %568 = vector.extract_strided_slice %474 {offsets = [0, 0, 16], sizes = [2, 16, 4], strides = [1, 1, 1]} : vector<2x16x32xf32> to vector<2x16x4xf32>
    %569 = arith.truncf %568 : vector<2x16x4xf32> to vector<2x16x4xbf16>
    "tpu.trace_start"() <{level = 10 : i32, message = "btd,bsd->bts"}> : () -> ()
    %cst_172 = arith.constant dense<0.000000e+00> : vector<2x16x16xf32>
    %570 = tpu.matmul %565, %567, %cst_172 {dimension_numbers = #tpu.dot_dimension_numbers<[2], [2], [1], [1], [0, 0, 0, 1, 1, 1], [0], [0]>} : vector<2x16x4xbf16>, vector<2x16x4xbf16>, vector<2x16x16xf32> -> vector<2x16x16xf32>
    %cst_173 = arith.constant -1.000000e+30 : f32
    "tpu.trace_stop"() : () -> ()
    %571 = vector.broadcast %cst_173 : f32 to vector<2x16x16xf32>
    %572 = arith.select %479, %570, %571 : vector<2x16x16xi1>, vector<2x16x16xf32>
    %cst_174 = arith.constant dense<0xFF800000> : vector<2x16xf32>
    %573 = vector.multi_reduction <maximumf>, %572, %cst_174 [2] : vector<2x16x16xf32> to vector<2x16xf32>
    %574 = vector.shape_cast %573 : vector<2x16xf32> to vector<2x16x1xf32>
    %575 = vector.broadcast %574 : vector<2x16x1xf32> to vector<2x16x16xf32>
    %576 = arith.subf %572, %575 : vector<2x16x16xf32>
    %577 = math.exp %576 : vector<2x16x16xf32>
    %cst_175 = arith.constant dense<0.000000e+00> : vector<2x16xf32>
    %578 = vector.multi_reduction <add>, %577, %cst_175 [2] : vector<2x16x16xf32> to vector<2x16xf32>
    %579 = vector.shape_cast %578 : vector<2x16xf32> to vector<2x16x1xf32>
    %580 = tpu.reciprocal %579 {approx = true} : vector<2x16x1xf32> -> vector<2x16x1xf32>
    %581 = vector.broadcast %580 : vector<2x16x1xf32> to vector<2x16x16xf32>
    %582 = arith.mulf %577, %581 : vector<2x16x16xf32>
    %583 = arith.truncf %582 : vector<2x16x16xf32> to vector<2x16x16xbf16>
    "tpu.trace_start"() <{level = 10 : i32, message = "bts,bsd->btd"}> : () -> ()
    %cst_176 = arith.constant dense<0.000000e+00> : vector<2x16x4xf32>
    %584 = tpu.matmul %583, %569, %cst_176 {dimension_numbers = #tpu.dot_dimension_numbers<[2], [1], [1], [2], [0, 0, 0, 1, 1, 2], [0], [0]>} : vector<2x16x16xbf16>, vector<2x16x4xbf16>, vector<2x16x4xf32> -> vector<2x16x4xf32>
    "tpu.trace_stop"() : () -> ()
    %585 = vector.extract_strided_slice %472 {offsets = [0, 0, 20], sizes = [2, 16, 4], strides = [1, 1, 1]} : vector<2x16x32xf32> to vector<2x16x4xf32>
    %586 = arith.truncf %585 : vector<2x16x4xf32> to vector<2x16x4xbf16>
    %587 = vector.extract_strided_slice %473 {offsets = [0, 0, 20], sizes = [2, 16, 4], strides = [1, 1, 1]} : vector<2x16x32xf32> to vector<2x16x4xf32>
    %588 = arith.truncf %587 : vector<2x16x4xf32> to vector<2x16x4xbf16>
    %589 = vector.extract_strided_slice %474 {offsets = [0, 0, 20], sizes = [2, 16, 4], strides = [1, 1, 1]} : vector<2x16x32xf32> to vector<2x16x4xf32>
    %590 = arith.truncf %589 : vector<2x16x4xf32> to vector<2x16x4xbf16>
    "tpu.trace_start"() <{level = 10 : i32, message = "btd,bsd->bts"}> : () -> ()
    %cst_177 = arith.constant dense<0.000000e+00> : vector<2x16x16xf32>
    %591 = tpu.matmul %586, %588, %cst_177 {dimension_numbers = #tpu.dot_dimension_numbers<[2], [2], [1], [1], [0, 0, 0, 1, 1, 1], [0], [0]>} : vector<2x16x4xbf16>, vector<2x16x4xbf16>, vector<2x16x16xf32> -> vector<2x16x16xf32>
    %cst_178 = arith.constant -1.000000e+30 : f32
    "tpu.trace_stop"() : () -> ()
    %592 = vector.broadcast %cst_178 : f32 to vector<2x16x16xf32>
    %593 = arith.select %479, %591, %592 : vector<2x16x16xi1>, vector<2x16x16xf32>
    %cst_179 = arith.constant dense<0xFF800000> : vector<2x16xf32>
    %594 = vector.multi_reduction <maximumf>, %593, %cst_179 [2] : vector<2x16x16xf32> to vector<2x16xf32>
    %595 = vector.shape_cast %594 : vector<2x16xf32> to vector<2x16x1xf32>
    %596 = vector.broadcast %595 : vector<2x16x1xf32> to vector<2x16x16xf32>
    %597 = arith.subf %593, %596 : vector<2x16x16xf32>
    %598 = math.exp %597 : vector<2x16x16xf32>
    %cst_180 = arith.constant dense<0.000000e+00> : vector<2x16xf32>
    %599 = vector.multi_reduction <add>, %598, %cst_180 [2] : vector<2x16x16xf32> to vector<2x16xf32>
    %600 = vector.shape_cast %599 : vector<2x16xf32> to vector<2x16x1xf32>
    %601 = tpu.reciprocal %600 {approx = true} : vector<2x16x1xf32> -> vector<2x16x1xf32>
    %602 = vector.broadcast %601 : vector<2x16x1xf32> to vector<2x16x16xf32>
    %603 = arith.mulf %598, %602 : vector<2x16x16xf32>
    %604 = arith.truncf %603 : vector<2x16x16xf32> to vector<2x16x16xbf16>
    "tpu.trace_start"() <{level = 10 : i32, message = "bts,bsd->btd"}> : () -> ()
    %cst_181 = arith.constant dense<0.000000e+00> : vector<2x16x4xf32>
    %605 = tpu.matmul %604, %590, %cst_181 {dimension_numbers = #tpu.dot_dimension_numbers<[2], [1], [1], [2], [0, 0, 0, 1, 1, 2], [0], [0]>} : vector<2x16x16xbf16>, vector<2x16x4xbf16>, vector<2x16x4xf32> -> vector<2x16x4xf32>
    "tpu.trace_stop"() : () -> ()
    %606 = vector.extract_strided_slice %472 {offsets = [0, 0, 24], sizes = [2, 16, 4], strides = [1, 1, 1]} : vector<2x16x32xf32> to vector<2x16x4xf32>
    %607 = arith.truncf %606 : vector<2x16x4xf32> to vector<2x16x4xbf16>
    %608 = vector.extract_strided_slice %473 {offsets = [0, 0, 24], sizes = [2, 16, 4], strides = [1, 1, 1]} : vector<2x16x32xf32> to vector<2x16x4xf32>
    %609 = arith.truncf %608 : vector<2x16x4xf32> to vector<2x16x4xbf16>
    %610 = vector.extract_strided_slice %474 {offsets = [0, 0, 24], sizes = [2, 16, 4], strides = [1, 1, 1]} : vector<2x16x32xf32> to vector<2x16x4xf32>
    %611 = arith.truncf %610 : vector<2x16x4xf32> to vector<2x16x4xbf16>
    "tpu.trace_start"() <{level = 10 : i32, message = "btd,bsd->bts"}> : () -> ()
    %cst_182 = arith.constant dense<0.000000e+00> : vector<2x16x16xf32>
    %612 = tpu.matmul %607, %609, %cst_182 {dimension_numbers = #tpu.dot_dimension_numbers<[2], [2], [1], [1], [0, 0, 0, 1, 1, 1], [0], [0]>} : vector<2x16x4xbf16>, vector<2x16x4xbf16>, vector<2x16x16xf32> -> vector<2x16x16xf32>
    %cst_183 = arith.constant -1.000000e+30 : f32
    "tpu.trace_stop"() : () -> ()
    %613 = vector.broadcast %cst_183 : f32 to vector<2x16x16xf32>
    %614 = arith.select %479, %612, %613 : vector<2x16x16xi1>, vector<2x16x16xf32>
    %cst_184 = arith.constant dense<0xFF800000> : vector<2x16xf32>
    %615 = vector.multi_reduction <maximumf>, %614, %cst_184 [2] : vector<2x16x16xf32> to vector<2x16xf32>
    %616 = vector.shape_cast %615 : vector<2x16xf32> to vector<2x16x1xf32>
    %617 = vector.broadcast %616 : vector<2x16x1xf32> to vector<2x16x16xf32>
    %618 = arith.subf %614, %617 : vector<2x16x16xf32>
    %619 = math.exp %618 : vector<2x16x16xf32>
    %cst_185 = arith.constant dense<0.000000e+00> : vector<2x16xf32>
    %620 = vector.multi_reduction <add>, %619, %cst_185 [2] : vector<2x16x16xf32> to vector<2x16xf32>
    %621 = vector.shape_cast %620 : vector<2x16xf32> to vector<2x16x1xf32>
    %622 = tpu.reciprocal %621 {approx = true} : vector<2x16x1xf32> -> vector<2x16x1xf32>
    %623 = vector.broadcast %622 : vector<2x16x1xf32> to vector<2x16x16xf32>
    %624 = arith.mulf %619, %623 : vector<2x16x16xf32>
    %625 = arith.truncf %624 : vector<2x16x16xf32> to vector<2x16x16xbf16>
    "tpu.trace_start"() <{level = 10 : i32, message = "bts,bsd->btd"}> : () -> ()
    %cst_186 = arith.constant dense<0.000000e+00> : vector<2x16x4xf32>
    %626 = tpu.matmul %625, %611, %cst_186 {dimension_numbers = #tpu.dot_dimension_numbers<[2], [1], [1], [2], [0, 0, 0, 1, 1, 2], [0], [0]>} : vector<2x16x16xbf16>, vector<2x16x4xbf16>, vector<2x16x4xf32> -> vector<2x16x4xf32>
    "tpu.trace_stop"() : () -> ()
    %627 = vector.extract_strided_slice %472 {offsets = [0, 0, 28], sizes = [2, 16, 4], strides = [1, 1, 1]} : vector<2x16x32xf32> to vector<2x16x4xf32>
    %628 = arith.truncf %627 : vector<2x16x4xf32> to vector<2x16x4xbf16>
    %629 = vector.extract_strided_slice %473 {offsets = [0, 0, 28], sizes = [2, 16, 4], strides = [1, 1, 1]} : vector<2x16x32xf32> to vector<2x16x4xf32>
    %630 = arith.truncf %629 : vector<2x16x4xf32> to vector<2x16x4xbf16>
    %631 = vector.extract_strided_slice %474 {offsets = [0, 0, 28], sizes = [2, 16, 4], strides = [1, 1, 1]} : vector<2x16x32xf32> to vector<2x16x4xf32>
    %632 = arith.truncf %631 : vector<2x16x4xf32> to vector<2x16x4xbf16>
    "tpu.trace_start"() <{level = 10 : i32, message = "btd,bsd->bts"}> : () -> ()
    %cst_187 = arith.constant dense<0.000000e+00> : vector<2x16x16xf32>
    %633 = tpu.matmul %628, %630, %cst_187 {dimension_numbers = #tpu.dot_dimension_numbers<[2], [2], [1], [1], [0, 0, 0, 1, 1, 1], [0], [0]>} : vector<2x16x4xbf16>, vector<2x16x4xbf16>, vector<2x16x16xf32> -> vector<2x16x16xf32>
    %cst_188 = arith.constant -1.000000e+30 : f32
    "tpu.trace_stop"() : () -> ()
    %634 = vector.broadcast %cst_188 : f32 to vector<2x16x16xf32>
    %635 = arith.select %479, %633, %634 : vector<2x16x16xi1>, vector<2x16x16xf32>
    %cst_189 = arith.constant dense<0xFF800000> : vector<2x16xf32>
    %636 = vector.multi_reduction <maximumf>, %635, %cst_189 [2] : vector<2x16x16xf32> to vector<2x16xf32>
    %637 = vector.shape_cast %636 : vector<2x16xf32> to vector<2x16x1xf32>
    %638 = vector.broadcast %637 : vector<2x16x1xf32> to vector<2x16x16xf32>
    %639 = arith.subf %635, %638 : vector<2x16x16xf32>
    %640 = math.exp %639 : vector<2x16x16xf32>
    %cst_190 = arith.constant dense<0.000000e+00> : vector<2x16xf32>
    %641 = vector.multi_reduction <add>, %640, %cst_190 [2] : vector<2x16x16xf32> to vector<2x16xf32>
    %642 = vector.shape_cast %641 : vector<2x16xf32> to vector<2x16x1xf32>
    %643 = tpu.reciprocal %642 {approx = true} : vector<2x16x1xf32> -> vector<2x16x1xf32>
    %644 = vector.broadcast %643 : vector<2x16x1xf32> to vector<2x16x16xf32>
    %645 = arith.mulf %640, %644 : vector<2x16x16xf32>
    %646 = arith.truncf %645 : vector<2x16x16xf32> to vector<2x16x16xbf16>
    "tpu.trace_start"() <{level = 10 : i32, message = "bts,bsd->btd"}> : () -> ()
    %cst_191 = arith.constant dense<0.000000e+00> : vector<2x16x4xf32>
    %647 = tpu.matmul %646, %632, %cst_191 {dimension_numbers = #tpu.dot_dimension_numbers<[2], [1], [1], [2], [0, 0, 0, 1, 1, 2], [0], [0]>} : vector<2x16x16xbf16>, vector<2x16x4xbf16>, vector<2x16x4xf32> -> vector<2x16x4xf32>
    "tpu.trace_stop"() : () -> ()
    %648 = tpu.concatenate %500, %521, %542, %563, %584, %605, %626, %647 in 2 : vector<2x16x4xf32>, vector<2x16x4xf32>, vector<2x16x4xf32>, vector<2x16x4xf32>, vector<2x16x4xf32>, vector<2x16x4xf32>, vector<2x16x4xf32>, vector<2x16x4xf32> -> vector<2x16x32xf32>
    %649 = vector.shape_cast %648 : vector<2x16x32xf32> to vector<32x32xf32>
    %650 = arith.addf %649, %438 : vector<32x32xf32>
    %c0_192 = arith.constant 0 : index
    %c0_193 = arith.constant 0 : index
    %651 = vector.load %arg14[%c0_192, %c0_193] : memref<1x32xf32, #tpu.memory_space<vmem>>, vector<1x32xf32>
    %c0_194 = arith.constant 0 : index
    %c0_195 = arith.constant 0 : index
    %652 = vector.load %arg15[%c0_194, %c0_195] : memref<1x32xf32, #tpu.memory_space<vmem>>, vector<1x32xf32>
    %cst_196 = arith.constant dense<0.000000e+00> : vector<32xf32>
    %653 = vector.multi_reduction <add>, %650, %cst_196 [1] : vector<32x32xf32> to vector<32xf32>
    %654 = vector.shape_cast %653 : vector<32xf32> to vector<32x1xf32>
    %cst_197 = arith.constant 3.200000e+01 : f32
    %655 = vector.broadcast %cst_197 : f32 to vector<32x1xf32>
    %656 = arith.divf %654, %655 : vector<32x1xf32>
    %657 = vector.broadcast %656 : vector<32x1xf32> to vector<32x32xf32>
    %658 = arith.subf %650, %657 : vector<32x32xf32>
    %659 = arith.mulf %658, %658 : vector<32x32xf32>
    %cst_198 = arith.constant dense<0.000000e+00> : vector<32xf32>
    %660 = vector.multi_reduction <add>, %659, %cst_198 [1] : vector<32x32xf32> to vector<32xf32>
    %661 = vector.shape_cast %660 : vector<32xf32> to vector<32x1xf32>
    %cst_199 = arith.constant 3.200000e+01 : f32
    %662 = vector.broadcast %cst_199 : f32 to vector<32x1xf32>
    %663 = arith.divf %661, %662 : vector<32x1xf32>
    %664 = vector.broadcast %656 : vector<32x1xf32> to vector<32x32xf32>
    %665 = arith.subf %650, %664 : vector<32x32xf32>
    %cst_200 = arith.constant 9.99999974E-6 : f32
    %666 = vector.broadcast %cst_200 : f32 to vector<32x1xf32>
    %667 = arith.addf %663, %666 : vector<32x1xf32>
    %668 = math.rsqrt %667 : vector<32x1xf32>
    %669 = vector.broadcast %668 : vector<32x1xf32> to vector<32x32xf32>
    %670 = arith.mulf %665, %669 : vector<32x32xf32>
    %671 = vector.broadcast %651 : vector<1x32xf32> to vector<32x32xf32>
    %672 = arith.mulf %670, %671 : vector<32x32xf32>
    %673 = vector.broadcast %652 : vector<1x32xf32> to vector<32x32xf32>
    %674 = arith.addf %672, %673 : vector<32x32xf32>
    %675 = arith.truncf %674 : vector<32x32xf32> to vector<32x32xbf16>
    %c0_201 = arith.constant 0 : index
    %c0_202 = arith.constant 0 : index
    %676 = vector.load %arg16[%c0_201, %c0_202] : memref<32x32xbf16, #tpu.memory_space<vmem>>, vector<32x32xbf16>
    %cst_203 = arith.constant dense<0.000000e+00> : vector<32x32xf32>
    %677 = tpu.matmul %675, %676, %cst_203 {dimension_numbers = #tpu.dot_dimension_numbers<[1], [0], [0], [1], [0, 0, 1, 1], [], []>} : vector<32x32xbf16>, vector<32x32xbf16>, vector<32x32xf32> -> vector<32x32xf32>
    %c0_204 = arith.constant 0 : index
    %c0_205 = arith.constant 0 : index
    %678 = vector.load %arg17[%c0_204, %c0_205] : memref<1x32xf32, #tpu.memory_space<vmem>>, vector<1x32xf32>
    %679 = vector.broadcast %678 : vector<1x32xf32> to vector<32x32xf32>
    %680 = arith.addf %677, %679 : vector<32x32xf32>
    %681 = arith.mulf %680, %680 : vector<32x32xf32>
    %682 = arith.mulf %680, %681 : vector<32x32xf32>
    %cst_206 = arith.constant 4.471500e-02 : f32
    %683 = vector.broadcast %cst_206 : f32 to vector<32x32xf32>
    %684 = arith.mulf %683, %682 : vector<32x32xf32>
    %685 = arith.addf %680, %684 : vector<32x32xf32>
    %cst_207 = arith.constant 0.797884583 : f32
    %686 = vector.broadcast %cst_207 : f32 to vector<32x32xf32>
    %687 = arith.mulf %686, %685 : vector<32x32xf32>
    %688 = math.tanh %687 : vector<32x32xf32>
    %cst_208 = arith.constant 1.000000e+00 : f32
    %689 = vector.broadcast %cst_208 : f32 to vector<32x32xf32>
    %690 = arith.addf %689, %688 : vector<32x32xf32>
    %cst_209 = arith.constant 5.000000e-01 : f32
    %691 = vector.broadcast %cst_209 : f32 to vector<32x32xf32>
    %692 = arith.mulf %691, %690 : vector<32x32xf32>
    %693 = arith.mulf %680, %692 : vector<32x32xf32>
    %694 = arith.truncf %693 : vector<32x32xf32> to vector<32x32xbf16>
    %c0_210 = arith.constant 0 : index
    %c0_211 = arith.constant 0 : index
    %695 = vector.load %arg18[%c0_210, %c0_211] : memref<32x32xbf16, #tpu.memory_space<vmem>>, vector<32x32xbf16>
    %cst_212 = arith.constant dense<0.000000e+00> : vector<32x32xf32>
    %696 = tpu.matmul %694, %695, %cst_212 {dimension_numbers = #tpu.dot_dimension_numbers<[1], [0], [0], [1], [0, 0, 1, 1], [], []>} : vector<32x32xbf16>, vector<32x32xbf16>, vector<32x32xf32> -> vector<32x32xf32>
    %c0_213 = arith.constant 0 : index
    %c0_214 = arith.constant 0 : index
    %697 = vector.load %arg19[%c0_213, %c0_214] : memref<1x32xf32, #tpu.memory_space<vmem>>, vector<1x32xf32>
    %698 = vector.broadcast %697 : vector<1x32xf32> to vector<32x32xf32>
    %699 = arith.addf %696, %698 : vector<32x32xf32>
    %700 = arith.addf %699, %650 : vector<32x32xf32>
    %701 = vector.shape_cast %700 : vector<32x32xf32> to vector<2x16x32xf32>
    %c0_215 = arith.constant 0 : index
    %c0_216 = arith.constant 0 : index
    %c0_217 = arith.constant 0 : index
    %702 = vector.load %arg20[%c0_215, %c0_216, %c0_217] : memref<2x16x32xf32, #tpu.memory_space<vmem>>, vector<2x16x32xf32>
    tpu.vector_store %arg20[%c0_215, %c0_216, %c0_217], %701 {strides = array<i32>} : memref<2x16x32xf32, #tpu.memory_space<vmem>>, vector<2x16x32xf32>,
    return
  }
  func.func @transform_0(%arg0: i32) -> (i32, i32, i32) {
    %c0_i32 = arith.constant 0 : i32
    %c0_i32_0 = arith.constant 0 : i32
    %c0_i32_1 = arith.constant 0 : i32
    return %arg0, %c0_i32, %c0_i32_0 : i32, i32, i32
  }
  func.func @transform_1(%arg0: i32) -> (i32, i32, i32) {
    %c0_i32 = arith.constant 0 : i32
    %c0_i32_0 = arith.constant 0 : i32
    %c0_i32_1 = arith.constant 0 : i32
    return %arg0, %c0_i32, %c0_i32_0 : i32, i32, i32
  }
  func.func @transform_2(%arg0: i32) -> (i32, i32) {
    %c0_i32 = arith.constant 0 : i32
    %c0_i32_0 = arith.constant 0 : i32
    %c0_i32_1 = arith.constant 0 : i32
    return %c0_i32, %c0_i32_0 : i32, i32
  }
  func.func @transform_3(%arg0: i32) -> (i32, i32) {
    %c0_i32 = arith.constant 0 : i32
    %c0_i32_0 = arith.constant 0 : i32
    %c0_i32_1 = arith.constant 0 : i32
    return %c0_i32, %c0_i32_0 : i32, i32
  }
  func.func @transform_4(%arg0: i32) -> (i32, i32) {
    %c0_i32 = arith.constant 0 : i32
    %c0_i32_0 = arith.constant 0 : i32
    %c0_i32_1 = arith.constant 0 : i32
    return %c0_i32, %c0_i32_0 : i32, i32
  }
  func.func @transform_5(%arg0: i32) -> (i32, i32, i32) {
    %c0_i32 = arith.constant 0 : i32
    %c0_i32_0 = arith.constant 0 : i32
    %c0_i32_1 = arith.constant 0 : i32
    %c0_i32_2 = arith.constant 0 : i32
    return %c0_i32, %c0_i32_0, %c0_i32_1 : i32, i32, i32
  }
  func.func @transform_6(%arg0: i32) -> (i32, i32, i32) {
    %c0_i32 = arith.constant 0 : i32
    %c0_i32_0 = arith.constant 0 : i32
    %c0_i32_1 = arith.constant 0 : i32
    %c0_i32_2 = arith.constant 0 : i32
    return %c0_i32, %c0_i32_0, %c0_i32_1 : i32, i32, i32
  }
  func.func @transform_7(%arg0: i32) -> (i32, i32) {
    %c0_i32 = arith.constant 0 : i32
    %c0_i32_0 = arith.constant 0 : i32
    %c0_i32_1 = arith.constant 0 : i32
    return %c0_i32, %c0_i32_0 : i32, i32
  }
  func.func @transform_8(%arg0: i32) -> (i32, i32) {
    %c0_i32 = arith.constant 0 : i32
    %c0_i32_0 = arith.constant 0 : i32
    %c0_i32_1 = arith.constant 0 : i32
    return %c0_i32, %c0_i32_0 : i32, i32
  }
  func.func @transform_9(%arg0: i32) -> (i32, i32) {
    %c0_i32 = arith.constant 0 : i32
    %c0_i32_0 = arith.constant 0 : i32
    %c0_i32_1 = arith.constant 0 : i32
    return %c0_i32, %c0_i32_0 : i32, i32
  }
  func.func @transform_10(%arg0: i32) -> (i32, i32) {
    %c0_i32 = arith.constant 0 : i32
    %c0_i32_0 = arith.constant 0 : i32
    %c0_i32_1 = arith.constant 0 : i32
    return %c0_i32, %c0_i32_0 : i32, i32
  }
  func.func @transform_11(%arg0: i32) -> (i32, i32) {
    %c0_i32 = arith.constant 0 : i32
    %c0_i32_0 = arith.constant 0 : i32
    %c0_i32_1 = arith.constant 0 : i32
    return %c0_i32, %c0_i32_0 : i32, i32
  }
  func.func @transform_12(%arg0: i32) -> (i32, i32) {
    %c0_i32 = arith.constant 0 : i32
    %c0_i32_0 = arith.constant 0 : i32
    %c0_i32_1 = arith.constant 0 : i32
    return %c0_i32, %c0_i32_0 : i32, i32
  }
  func.func @transform_13(%arg0: i32) -> (i32, i32) {
    %c0_i32 = arith.constant 0 : i32
    %c0_i32_0 = arith.constant 0 : i32
    %c0_i32_1 = arith.constant 0 : i32
    return %c0_i32, %c0_i32_0 : i32, i32
  }
  func.func @transform_14(%arg0: i32) -> (i32, i32) {
    %c0_i32 = arith.constant 0 : i32
    %c0_i32_0 = arith.constant 0 : i32
    %c0_i32_1 = arith.constant 0 : i32
    return %c0_i32, %c0_i32_0 : i32, i32
  }
  func.func @transform_15(%arg0: i32) -> (i32, i32) {
    %c0_i32 = arith.constant 0 : i32
    %c0_i32_0 = arith.constant 0 : i32
    %c0_i32_1 = arith.constant 0 : i32
    return %c0_i32, %c0_i32_0 : i32, i32
  }
  func.func @transform_16(%arg0: i32) -> (i32, i32) {
    %c0_i32 = arith.constant 0 : i32
    %c0_i32_0 = arith.constant 0 : i32
    %c0_i32_1 = arith.constant 0 : i32
    return %c0_i32, %c0_i32_0 : i32, i32
  }
  func.func @transform_17(%arg0: i32) -> (i32, i32) {
    %c0_i32 = arith.constant 0 : i32
    %c0_i32_0 = arith.constant 0 : i32
    %c0_i32_1 = arith.constant 0 : i32
    return %c0_i32, %c0_i32_0 : i32, i32
  }
  func.func @transform_18(%arg0: i32) -> (i32, i32) {
    %c0_i32 = arith.constant 0 : i32
    %c0_i32_0 = arith.constant 0 : i32
    %c0_i32_1 = arith.constant 0 : i32
    return %c0_i32, %c0_i32_0 : i32, i32
  }
  func.func @transform_19(%arg0: i32) -> (i32, i32, i32) {
    %c0_i32 = arith.constant 0 : i32
    %c0_i32_0 = arith.constant 0 : i32
    %c0_i32_1 = arith.constant 0 : i32
    return %arg0, %c0_i32, %c0_i32_0 : i32, i32, i32
  }
}

</mosaic_0001>

<bundles_post_ra>
// kernel: tpu_custom_call.1
= control target key start
LH: loop header
LB: loop body
LE: loop exit
PB: predicated region body
PF: predicated region fallthrough
CT: control target
= control target key end

     0   :  { %s6003_s0 = inlined_call_operand.hbm [shape: f32[2,16,32], index: 0, kind: input, shape index: {}]   ;;  %s6004_s1 = inlined_call_operand.hbm [shape: f32[2,1,16], index: 1, kind: input, shape index: {}]   ;;  %s6005_s2 = inlined_call_operand.hbm [shape: f32[16,32], index: 2, kind: input, shape index: {}]   ;;  %s6006_s3 = inlined_call_operand.hbm [shape: f32[4,32], index: 3, kind: input, shape index: {}]   ;;  %s6007_s4 = inlined_call_operand.hbm [shape: f32[4,32], index: 4, kind: input, shape index: {}]   ;;  %s6008_s5 = inlined_call_operand.vmem [shape: f32[4,7,32], index: 5, kind: input, shape index: {}]   ;;  %s6009_s6 = inlined_call_operand.vmem [shape: bf16[4,32,32], index: 6, kind: input, shape index: {}]   ;;  %s6010_s7 = inlined_call_operand.hbm [shape: f32[4,32], index: 7, kind: input, shape index: {}]   ;;  %s6011_s8 = inlined_call_operand.vmem [shape: f32[1,32], index: 8, kind: input, shape index: {}]   ;;  %s6012_s9 = inlined_call_operand.vmem [shape: f32[1,32], index: 9, kind: input, shape index: {}]   ;;  %s6013_s10 = inlined_call_operand.hbm [shape: bf16[32,32], index: 10, kind: input, shape index: {}]   ;;  %s6014_s11 = inlined_call_operand.hbm [shape: bf16[32,32], index: 11, kind: input, shape index: {}]   ;;  %s6015_s12 = inlined_call_operand.hbm [shape: bf16[32,32], index: 12, kind: input, shape index: {}]   ;;  %s6016_s13 = inlined_call_operand.vmem [shape: f32[1,32], index: 13, kind: input, shape index: {}]   ;;  %s6017_s14 = inlined_call_operand.vmem [shape: f32[1,32], index: 14, kind: input, shape index: {}]   ;;  %s6018_s15 = inlined_call_operand.hbm [shape: bf16[32,32], index: 15, kind: input, shape index: {}]   ;;  %s6019_s16 = inlined_call_operand.vmem [shape: f32[1,32], index: 16, kind: input, shape index: {}]   ;;  %s6020_s17 = inlined_call_operand.hbm [shape: bf16[32,32], index: 17, kind: input, shape index: {}]   ;;  %s6021_s18 = inlined_call_operand.vmem [shape: f32[1,32], index: 18, kind: input, shape index: {}]   ;;  %s6022_s19 = inlined_call_operand.hbm [shape: f32[2,16,32], index: 19, kind: output, shape index: {}]  }
   0x1   :  { %6027 = sst [smem:[#allocation28_spill]] %s6003_s0 }
   0x2   :  { %6028 = sst [smem:[#allocation29_spill]] %s6004_s1 }
   0x3   :  { %6029 = sst [smem:[#allocation30_spill]] %s6005_s2 }
   0x4   :  { %6030 = sst [smem:[#allocation31_spill]] %s6006_s3 }
   0x5   :  { %24 = vsyncpa [#allocation3], 0 }
   0x6   :  { %25 = vsyncpa [#allocation6], 0 }
   0x7   :  { %26 = vsyncpa [#allocation9], 0 }
   0x8   :  { %27 = vsyncpa [#allocation12], 0 }
   0x9   :  { %28 = vsyncpa [#allocation15], 0 }
   0xa   :  { %29 = vsyncpa [#allocation18], 0  ;;  %s6031_s20 = sld [smem:[#allocation29_spill]] }
  0x10   :  { %s48_s21 = sshll.u32 %s6031_s20, 4  ;;  %s49_s21 = int_to_ptr.hbm [resolvable:$true] %s48_s21 }
  0x11   :  { %30 = vsyncpa [#allocation4], 0  ;;  %s4074_s1 = smov [#allocation5]   ;;  %s6032_s24 = sld [smem:[#allocation31_spill]] }
  0x12   :  { %s50_s22 = sshll.u32 %s4074_s1, 4  ;;  %s6023_s3 = smov 16   ;;  %s51_s22 = int_to_ptr.vmem [resolvable:$true] %s50_s22 }
  0x13   :  { %s4076_s26 = smov 1   ;;  %s4077_s27 = smov [#allocation8]  }
  0x14   :  { %56 = dma.hbm_to_vmem [thread:$0]  %s49_s21, 32, %s51_s22, [#allocation6], %s6023_s3, %s6023_s3, %s4076_s26  }
  0x15   :  { %s77_s28 = sshll.u32 %s4077_s27, 4  ;;  %s101_s30 = sshll.u32 %s6010_s7, 4  ;;  %s78_s28 = int_to_ptr.vmem [resolvable:$true] %s77_s28  ;;  %s102_s30 = int_to_ptr.hbm [resolvable:$true] %s101_s30 }
  0x16   :  { %s4078_s20 = smov [#allocation11]   ;;  %s4079_s21 = smov [#allocation14]  }
  0x17   :  { %s75_s25 = sshll.u32 %s6032_s24, 4  ;;  %s103_s1 = sshll.u32 %s4078_s20, 4  ;;  %s76_s25 = int_to_ptr.hbm [resolvable:$true] %s75_s25  ;;  %s104_s1 = int_to_ptr.vmem [resolvable:$true] %s103_s1 }
  0x18   :  { %80 = dma.hbm_to_vmem [thread:$0]  %s76_s25, 64, %s78_s28, [#allocation9]  }
  0x19   :  { %s128_s24 = sshll.u32 %s6014_s11, 4  ;;  %s130_s22 = sshll.u32 %s4079_s21, 4  ;;  %s129_s24 = int_to_ptr.hbm [resolvable:$true] %s128_s24  ;;  %s131_s22 = int_to_ptr.vmem [resolvable:$true] %s130_s22 }
  0x1a   :  { %106 = dma.hbm_to_vmem [thread:$0]  %s102_s30, 64, %s104_s1, [#allocation12]  }
  0x1b   :  { %s158_s3 = sshll.u32 %s6018_s15, 4  ;;  %s4080_s7 = smov 64   ;;  %s159_s3 = int_to_ptr.hbm [resolvable:$true] %s158_s3 }
  0x1c   :  { %s4081_s29 = smov 4   ;;  %s6033_s0 = sld [smem:[#allocation28_spill]] }
  0x1d   :  { %136 = dma.hbm_to_vmem [thread:$0]  %s129_s24, 256, %s131_s22, [#allocation15], %s4080_s7, %s4080_s7, %s4081_s29  }
  0x1e   :  { %s4082_s30 = smov [#allocation17]   ;;  %s4083_s15 = smov [#allocation2]  }
  0x1f   :  { %s160_s20 = sshll.u32 %s4082_s30, 4  ;;  %s37_s1 = sshll.u32 %s4083_s15, 4  ;;  %s161_s20 = int_to_ptr.vmem [resolvable:$true] %s160_s20  ;;  %s38_s1 = int_to_ptr.vmem [resolvable:$true] %s37_s1 }
  0x20   :  { %166 = dma.hbm_to_vmem [thread:$0]  %s159_s3, 256, %s161_s20, [#allocation18], %s4080_s7, %s4080_s7, %s4081_s29  }
  0x21   :  { %s4084_s2 = smov 128   ;;  %s4085_s23 = smov 8  }
  0x22   :  { %s35_s11 = sshll.u32 %s6033_s0, 4  ;;  %s6034_s22 = sld [smem:[#allocation30_spill]]  ;;  %s36_s11 = int_to_ptr.hbm [resolvable:$true] %s35_s11 }
  0x23   :  { %43 = dma.hbm_to_vmem [thread:$0]  %s36_s11, 512, %s38_s1, [#allocation3], %s4084_s2, %s4084_s2, %s4085_s23  }
  0x24   :  { %s4086_s27 = smov [#allocation7]   ;;  %s86_s3 = sshll.u32 %s6007_s4, 4  ;;  %s87_s3 = int_to_ptr.hbm [resolvable:$true] %s86_s3 }
  0x25   :  { %s63_s25 = sshll.u32 %s4086_s27, 4  ;;  %s4087_s30 = smov [#allocation10]   ;;  %s64_s25 = int_to_ptr.vmem [resolvable:$true] %s63_s25 }
  0x26   :  { %s88_s20 = sshll.u32 %s4087_s30, 4  ;;  %s115_s1 = sshll.u32 %s6013_s10, 4  ;;  %s89_s20 = int_to_ptr.vmem [resolvable:$true] %s88_s20  ;;  %s116_s1 = int_to_ptr.hbm [resolvable:$true] %s115_s1 }
  0x27   :  { %91 = dma.hbm_to_vmem [thread:$0]  %s87_s3, 64, %s89_s20, [#allocation9]  }
  0x28   :  { %s61_s26 = sshll.u32 %s6034_s22, 4  ;;  %s141_s22 = sshll.u32 %s6015_s12, 4  ;;  %s62_s26 = int_to_ptr.hbm [resolvable:$true] %s61_s26  ;;  %s142_s22 = int_to_ptr.hbm [resolvable:$true] %s141_s22 }
  0x29   :  { %69 = dma.hbm_to_vmem [thread:$0]  %s62_s26, 256, %s64_s25, [#allocation6], %s4084_s2, %s4084_s2, %s4085_s23  }
  0x2a   :  { %s4088_s27 = smov [#allocation13]   ;;  %s4089_s26 = smov [#allocation16]  }
  0x2b   :  { %s117_s4 = sshll.u32 %s4088_s27, 4  ;;  %s143_s25 = sshll.u32 %s4089_s26, 4  ;;  %s118_s4 = int_to_ptr.vmem [resolvable:$true] %s117_s4  ;;  %s144_s25 = int_to_ptr.vmem [resolvable:$true] %s143_s25 }
  0x2c   :  { %123 = dma.hbm_to_vmem [thread:$0]  %s116_s1, 256, %s118_s4, [#allocation12], %s4080_s7, %s4080_s7, %s4081_s29  }
  0x2d   :  { %s173_s10 = sshll.u32 %s6020_s17, 4  ;;  %s4090_s12 = smov [#allocation19]   ;;  %s174_s10 = int_to_ptr.hbm [resolvable:$true] %s173_s10 }
  0x2e   :  { %149 = dma.hbm_to_vmem [thread:$0]  %s142_s22, 256, %s144_s25, [#allocation15], %s4080_s7, %s4080_s7, %s4081_s29  }
  0x2f   :  { %s175_s3 = sshll.u32 %s4090_s12, 4  ;;  %s176_s3 = int_to_ptr.vmem [resolvable:$true] %s175_s3 }
  0x30   :  { %181 = dma.hbm_to_vmem [thread:$0]  %s174_s10, 256, %s176_s3, [#allocation18], %s4080_s7, %s4080_s7, %s4081_s29  }
  0x31   :  { %4060 = dma.done.wait [#allocation3], 512  }
  0x32   :  { %4061 = vsyncadd [#allocation3], 4294966784 }
  0x33   :  { %4062 = dma.done.wait [#allocation6], 288  }
  0x34   :  { %4063 = vsyncadd [#allocation6], 4294967008 }
  0x35   :  { %4064 = dma.done.wait [#allocation9], 128  }
  0x36   :  { %4065 = vsyncadd [#allocation9], 4294967168 }
  0x37   :  { %4066 = dma.done.wait [#allocation12], 320  }
  0x38   :  { %4067 = vsyncadd [#allocation12], 4294966976 }
  0x39   :  { %4068 = dma.done.wait [#allocation15], 512  }
  0x3a   :  { %4069 = vsyncadd [#allocation15], 4294966784 }
  0x3b   :  { %4070 = dma.done.wait [#allocation18], 512  }
  0x3c   :  { %4071 = vsyncadd [#allocation18], 4294966784  ;;  %v230_v0 = vld [vmem:[#allocation2 + $0x8] sm:$0xff]  ;;  %vm6025_vm0 = vcmask 261120   ;;  %v229_v2 = vld [vmem:[#allocation2] sm:$0xff]  ;;  %v4091_v14 = vmov 32.0   ;;  %v239_v60 = vlaneseq }
  0x3d   :  { %v234_v1 = vld [vmem:[#allocation7 + $0x8] sm:$0xff]  ;;  %v233_v4 = vld [vmem:[#allocation7] sm:$0xff]  ;;  %v232_v8 = vld [vmem:[#allocation2 + $0x18] sm:$0xff]  ;;  %3586 = vrcp.f32 %v4091_v14  ;;  %s4094_s24 = smov 116   ;;  %s4095_s21 = smov 112  }
  0x3e   :  { %v4261_v3 = vadd.f32 %v234_v1, %v230_v0  ;;  %v231_v5 = vld [vmem:[#allocation2 + $0x10] sm:$0xff]  ;;  %v4263_v6 = vadd.f32 %v233_v4, %v229_v2  ;;  %v4271_v11 = vadd.f32 %v234_v1, %v232_v8  ;;  %v3520_v47 = vld [vmem:[%s6009_s6 + $0x8] sm:$0xff]  ;;  %v3519_v48 = vld [vmem:[%s6009_s6] sm:$0xff]  ;;  %v4320_v1 = vshrl.u32 %v239_v60, 7  ;;  %s4096_s22 = smov 108   ;;  %s4097_s27 = smov 104  }
  0x3f   :  { %v4269_v10 = vadd.f32 %v233_v4, %v231_v5  ;;  %598 = vmatpush.bf16.msra.mxu0 %v3520_v47  ;;  %v4325_v5 = vld [vmem:[%s6008_s5] sm:$0x7f]  ;;  %s4098_s4 = smov 100   ;;  %s4100_s26 = smov 12  }
  0x40   :  { %v290_v7 = vsel %vm6025_vm0, %v4261_v3, 0.0  ;;  %v287_v9 = vsel %vm6025_vm0, %v4263_v6, 0.0  ;;  %v296_v13 = vsel %vm6025_vm0, %v4271_v11, 0.0  ;;  %vm397_vm8 = vcmp.lt.s32.totalorder %v4320_v1, 3  ;;  %s4101_s25 = smov 20   ;;  %s4102_s28 = smov 24  }
  0x41   :  { %291 = vadd.xlane.f32.xlu1 %v290_v7  ;;  %288 = vadd.xlane.f32.xlu0 %v287_v9  ;;  %v293_v12 = vsel %vm6025_vm0, %v4269_v10, 0.0  ;;  %vm423_vm9 = vcmp.lt.s32.totalorder %v4320_v1, 2  ;;  %vm449_vm10 = vcmp.lt.s32.totalorder %v4320_v1, 1  ;;  %vm492_vm14 = vcmp.lt.s32.totalorder %v4320_v1, 7  ;;  %s4103_s0 = smov 28  }
  0x43   :  { %v3587_v15 = vpop.eup %3586  ;;  %599 = vmatpush.bf16.msra.mxu0 %v3519_v48 }
  0x44   :  { %v300_v16 = vmul.f32 32.0, %v3587_v15  ;;  %vm304_vm1 = vweird.f32 %v3587_v15 }
  0x46   :  { %v301_v17 = vsub.f32 1.0, %v300_v16 }
  0x48   :  { %v302_v18 = vmul.f32 %v3587_v15, %v301_v17  ;;  %v4330_v17 = vperm.slane %v4325_v5, 3 }
  0x49   :  { %294 = vadd.xlane.f32.xlu1 %v293_v12  ;;  %297 = vadd.xlane.f32.xlu0 %v296_v13  ;;  %v3568_v12 = vld [vmem:[#allocation8] ss:$0 sm:$0xff] }
  0x4a   :  { %v303_v19 = vadd.f32 %v3587_v15, %v302_v18  ;;  %v3569_v18 = vld [vmem:[#allocation10] ss:$0 sm:$0xff] }
  0x4c   :  { %v4277_v20 = vsel %vm304_vm1, %v3587_v15, %v303_v19 }
  0xb4   :  { %v292_v21 = vpop.xlane.xlu1 %291  ;;  %v289_v23 = vpop.xlane.xlu0 %288 }
  0xb5   :  { %v307_v22 = vmul.f32 %v4277_v20, %v292_v21  ;;  %v306_v24 = vmul.f32 %v4277_v20, %v289_v23  ;;  %v4334_v23 = vperm.slane %v4325_v5, 0 }
  0xb7   :  { %v4282_v25 = vsub.f32 %v4261_v3, %v307_v22  ;;  %v4285_v26 = vsub.f32 %v4263_v6, %v306_v24 }
  0xb9   :  { %v315_v27 = vmul.f32 %v4282_v25, %v4282_v25  ;;  %v314_v28 = vmul.f32 %v4285_v26, %v4285_v26 }
  0xbb   :  { %v321_v29 = vsel %vm6025_vm0, %v315_v27, 0.0  ;;  %v318_v31 = vsel %vm6025_vm0, %v314_v28, 0.0  ;;  %v4339_v28 = vperm.slane %v4325_v5, 1 }
  0xbc   :  { %v295_v30 = vpop.xlane.xlu1 %294  ;;  %322 = vadd.xlane.f32.xlu0 %v321_v29  ;;  %319 = vadd.xlane.f32.xlu2 %v318_v31  ;;  %v298_v33 = vpop.xlane.xlu0 %297  ;;  %v4343_v31 = vperm.slane %v4325_v5, 2 }
  0xbd   :  { %v308_v32 = vmul.f32 %v4277_v20, %v295_v30  ;;  %v309_v34 = vmul.f32 %v4277_v20, %v298_v33 }
  0xbf   :  { %v4296_v35 = vsub.f32 %v4269_v10, %v308_v32  ;;  %v4299_v36 = vsub.f32 %v4271_v11, %v309_v34  ;;  %v4348_v34 = vadd.s32 8, %v4320_v1 }
  0xc1   :  { %v316_v37 = vmul.f32 %v4296_v35, %v4296_v35  ;;  %v317_v38 = vmul.f32 %v4299_v36, %v4299_v36 }
  0xc3   :  { %v324_v39 = vsel %vm6025_vm0, %v316_v37, 0.0  ;;  %v327_v40 = vsel %vm6025_vm0, %v317_v38, 0.0 }
  0xc4   :  { %325 = vadd.xlane.f32.xlu1 %v324_v39  ;;  %328 = vadd.xlane.f32.xlu2 %v327_v40  ;;  %v4355_v39 = vperm.slane %v4325_v5, 4 }
 0x12f   :  { %v323_v41 = vpop.xlane.xlu0 %322  ;;  %v320_v42 = vpop.xlane.xlu2 %319 }
 0x130   :  { %v331_v43 = vmul.f32 %v323_v41, %v4277_v20  ;;  %v330_v44 = vmul.f32 %v320_v42, %v4277_v20 }
 0x132   :  { %v335_v45 = vadd.f32 1e-05, %v331_v43  ;;  %v334_v46 = vadd.f32 1e-05, %v330_v44 }
 0x134   :  { %3588 = vrsqrt.f32 %v335_v45  ;;  %vm354_vm2 = vweird.f32 %v335_v45  ;;  %vm344_vm5 = vweird.f32 %v334_v46 }
 0x135   :  { %3590 = vrsqrt.f32 %v334_v46 }
 0x137   :  { %v326_v49 = vpop.xlane.xlu1 %325  ;;  %v329_v51 = vpop.xlane.xlu2 %328 }
 0x138   :  { %v332_v50 = vmul.f32 %v326_v49, %v4277_v20  ;;  %v333_v52 = vmul.f32 %v329_v51, %v4277_v20 }
 0x13a   :  { %v3589_v53 = vpop.eup %3588  ;;  %v336_v54 = vadd.f32 1e-05, %v332_v50  ;;  %v4317_v57 = vadd.f32 1e-05, %v333_v52 }
 0x13b   :  { %v3591_v55 = vpop.eup %3590  ;;  %v349_v56 = vmul.f32 %v3589_v53, %v335_v45  ;;  %vm355_vm3 = vweird.f32 %v3589_v53 }
 0x13c   :  { %v339_v58 = vmul.f32 %v3591_v55, %v334_v46  ;;  %3592 = vrsqrt.f32 %v336_v54  ;;  %vm345_vm4 = vweird.f32 %v3591_v55  ;;  %vm356_vm6 = vmor %vm354_vm2, %vm355_vm3  ;;  %vm364_vm11 = vweird.f32 %v336_v54 }
 0x13d   :  { %v350_v59 = vmul.f32 %v3589_v53, %v349_v56  ;;  %3594 = vrsqrt.f32 %v4317_v57  ;;  %vm346_vm7 = vmor %vm344_vm5, %vm345_vm4  ;;  %vm374_vm15 = vweird.f32 %v4317_v57  ;;  %vm242_vm3 = vcmp.ge.s32.totalorder %v4320_v1, 3 }
 0x13e   :  { %v340_v61 = vmul.f32 %v3591_v55, %v339_v58  ;;  %vm248_vm4 = vcmp.ge.s32.totalorder %v4320_v1, 2  ;;  %vm254_vm5 = vcmp.ge.s32.totalorder %v4320_v1, 1 }
 0x13f   :  { %v351_v62 = vmul.f32 0.5, %v350_v59 }
 0x140   :  { %v341_v63 = vmul.f32 0.5, %v340_v61 }
 0x141   :  { %v352_v0 = vsub.f32 1.5, %v351_v62 }
 0x142   :  { %v3593_v2 = vpop.eup %3592  ;;  %v342_v4 = vsub.f32 1.5, %v341_v63 }
 0x143   :  { %v3595_v7 = vpop.eup %3594  ;;  %v353_v8 = vmul.f32 %v3589_v53, %v352_v0  ;;  %v359_v9 = vmul.f32 %v3593_v2, %v336_v54  ;;  %vm365_vm12 = vweird.f32 %v3593_v2 }
 0x144   :  { %v343_v13 = vmul.f32 %v3591_v55, %v342_v4  ;;  %v369_v14 = vmul.f32 %v3595_v7, %v4317_v57  ;;  %vm375_vm13 = vweird.f32 %v3595_v7  ;;  %vm366_vm1 = vmor %vm364_vm11, %vm365_vm12  ;;  %vm518_vm11 = vcmp.lt.s32.totalorder %v4320_v1, 6 }
 0x145   :  { %v357_v15 = vsel %vm356_vm6, %v3589_v53, %v353_v8  ;;  %v360_v16 = vmul.f32 %v3593_v2, %v359_v9  ;;  %vm376_vm2 = vmor %vm374_vm15, %vm375_vm13  ;;  %vm269_vm6 = vcmp.lt.s32.totalorder %v4348_v34, 15  ;;  %vm544_vm12 = vcmp.lt.s32.totalorder %v4320_v1, 5 }
 0x146   :  { %v347_v19 = vsel %vm346_vm7, %v3591_v55, %v343_v13  ;;  %v379_v21 = vmul.f32 %v357_v15, %v4282_v25  ;;  %v370_v22 = vmul.f32 %v3595_v7, %v369_v14  ;;  %vm275_vm7 = vcmp.lt.s32.totalorder %v4348_v34, 14 }
 0x147   :  { %v378_v24 = vmul.f32 %v347_v19, %v4285_v26  ;;  %v361_v27 = vmul.f32 0.5, %v360_v16  ;;  %v4382_v55 = vperm.slane %v4325_v5, 5  ;;  %vm6026_vm13 = vcmp.lt.s32.totalorder %v4348_v34, 13 }
 0x148   :  { %v384_v29 = vmul.f32 %v3568_v12, %v379_v21  ;;  %v371_v30 = vmul.f32 0.5, %v370_v22  ;;  %v4403_v4 = vperm.slane %v4325_v5, 6 }
 0x149   :  { %v383_v25 = vmul.f32 %v3568_v12, %v378_v24  ;;  %v362_v32 = vsub.f32 1.5, %v361_v27 }
 0x14a   :  { %v4345_v33 = vadd.f32 %v3569_v18, %v384_v29  ;;  %v372_v26 = vsub.f32 1.5, %v371_v30 }
 0x14b   :  { %v4351_v37 = vadd.f32 %v3569_v18, %v383_v25  ;;  %v363_v38 = vmul.f32 %v3593_v2, %v362_v32 }
 0x14c   :  { %v373_v40 = vmul.f32 %v3595_v7, %v372_v26  ;;  %v394_v41 = vrot.slane %v4345_v33, 5  ;;  %v420_v42 = vrot.slane %v4345_v33, 6  ;;  %v446_v43 = vrot.slane %v4345_v33, 7 }
 0x14d   :  { %v367_v44 = vsel %vm366_vm1, %v3593_v2, %v363_v38  ;;  %v393_v45 = vrot.slane %v4351_v37, 5  ;;  %v419_v46 = vrot.slane %v4351_v37, 6  ;;  %v445_v47 = vrot.slane %v4351_v37, 7 }
 0x14e   :  { %v380_v48 = vmul.f32 %v367_v44, %v4296_v35  ;;  %v377_v49 = vsel %vm376_vm2, %v3595_v7, %v373_v40  ;;  %v488_v57 = vrot.slane %v4351_v37, 1  ;;  %v489_v58 = vrot.slane %v4345_v33, 1 }
 0x14f   :  { %v381_v50 = vmul.f32 %v377_v49, %v4299_v36  ;;  %v400_v51 = vsel %vm397_vm8, %v393_v45, %v394_v41  ;;  %v426_v52 = vsel %vm423_vm9, %v419_v46, %v420_v42  ;;  %v452_v56 = vsel %vm449_vm10, %v445_v47, %v446_v43 }
 0x150   :  { %v385_v35 = vmul.f32 %v3568_v12, %v380_v48  ;;  %v412_v53 = vmul.f32 %v4334_v23, %v400_v51  ;;  %v438_v54 = vmul.f32 %v4339_v28, %v426_v52  ;;  %v514_v61 = vrot.slane %v4351_v37, 2 }
 0x151   :  { %v386_v36 = vmul.f32 %v3568_v12, %v381_v50  ;;  %v515_v62 = vrot.slane %v4345_v33, 2  ;;  %v480_v0 = vmul.f32 %v4330_v17, %v4351_v37  ;;  %v481_v2 = vmul.f32 %v4330_v17, %v4345_v33 }
 0x152   :  { %v4390_v59 = vadd.f32 %v3569_v18, %v385_v35  ;;  %v442_v60 = vadd.f32 %v438_v54, %v412_v53  ;;  %v464_v7 = vmul.f32 %v4343_v31, %v452_v56  ;;  %v540_v12 = vrot.slane %v4351_v37, 3 }
 0x153   :  { %v4395_v63 = vadd.f32 %v3569_v18, %v386_v36  ;;  %v495_v5 = vsel %vm492_vm14, %v488_v57, %v489_v58  ;;  %v521_v21 = vsel %vm518_vm11, %v514_v61, %v515_v62 }
 0x154   :  { %v490_v8 = vrot.slane %v4390_v59, 1  ;;  %v516_v9 = vrot.slane %v4390_v59, 2  ;;  %v468_v16 = vadd.f32 %v464_v7, %v442_v60  ;;  %v532_v48 = vmul.f32 %v4382_v55, %v521_v21 }
 0x155   :  { %v396_v13 = vrot.slane %v4395_v63, 5  ;;  %v422_v14 = vrot.slane %v4395_v63, 6  ;;  %v448_v15 = vrot.slane %v4395_v63, 7  ;;  %v542_v49 = vrot.slane %v4390_v59, 3 }
 0x156   :  { %v494_v18 = vsel %vm492_vm14, %v489_v58, %v490_v8  ;;  %v520_v19 = vsel %vm518_vm11, %v515_v62, %v516_v9  ;;  %v395_v52 = vrot.slane %v4390_v59, 5  ;;  %v421_v35 = vrot.slane %v4390_v59, 6 }
 0x157   :  { %v401_v22 = vsel %vm397_vm8, %v396_v13, %v393_v45  ;;  %v427_v24 = vsel %vm423_vm9, %v422_v14, %v419_v46  ;;  %v453_v27 = vsel %vm449_vm10, %v448_v15, %v445_v47  ;;  %v502_v29 = vsel %vm269_vm6, %v494_v18, 0.0 }
 0x158   :  { %v406_v30 = vsel %vm242_vm3, %v401_v22, 0.0  ;;  %v432_v25 = vsel %vm248_vm4, %v427_v24, 0.0  ;;  %v458_v32 = vsel %vm254_vm5, %v453_v27, 0.0  ;;  %v507_v26 = vmul.f32 %v4355_v39, %v502_v29 }
 0x159   :  { %v411_v38 = vmul.f32 %v4334_v23, %v406_v30  ;;  %v437_v40 = vmul.f32 %v4339_v28, %v432_v25  ;;  %v528_v44 = vsel %vm275_vm7, %v520_v19, 0.0  ;;  %v541_v45 = vrot.slane %v4345_v33, 3 }
 0x15a   :  { %v485_v46 = vadd.f32 %v481_v2, %v468_v16  ;;  %v506_v47 = vmul.f32 %v4355_v39, %v495_v5  ;;  %v463_v51 = vmul.f32 %v4343_v31, %v458_v32  ;;  %v533_v54 = vmul.f32 %v4382_v55, %v528_v44 }
 0x15b   :  { %v441_v50 = vadd.f32 %v437_v40, %v411_v38  ;;  %v546_v36 = vsel %vm544_vm12, %v541_v45, %v542_v49  ;;  %v447_v56 = vrot.slane %v4390_v59, 7  ;;  %v547_v60 = vsel %vm544_vm12, %v540_v12, %v541_v45 }
 0x15c   :  { %v511_v53 = vadd.f32 %v507_v26, %v485_v46  ;;  %v398_v62 = vsel %vm397_vm8, %v395_v52, %v396_v13  ;;  %v399_v2 = vsel %vm397_vm8, %v394_v41, %v395_v52  ;;  %v554_v7 = vsel %vm6026_vm13, %v546_v36, 0.0 }
 0x15d   :  { %v467_v58 = vadd.f32 %v463_v51, %v441_v50  ;;  %v408_v5 = vsel %vm242_vm3, %v399_v2, 0.0  ;;  %v414_v16 = vmul.f32 %v4334_v23, %v398_v62  ;;  %v424_v18 = vsel %vm423_vm9, %v421_v35, %v422_v14 }
 0x15e   :  { %v413_v21 = vmul.f32 %v4334_v23, %v408_v5  ;;  %v425_v13 = vsel %vm423_vm9, %v420_v42, %v421_v35  ;;  %v440_v41 = vmul.f32 %v4339_v28, %v424_v18  ;;  %v537_v22 = vadd.f32 %v533_v54, %v511_v53 }
 0x15f   :  { %v484_v19 = vadd.f32 %v480_v0, %v467_v58  ;;  %v434_v24 = vsel %vm248_vm4, %v425_v13, 0.0  ;;  %v450_v27 = vsel %vm449_vm10, %v447_v56, %v448_v15  ;;  %v451_v0 = vsel %vm449_vm10, %v446_v43, %v447_v56 }
 0x160   :  { %v439_v14 = vmul.f32 %v4339_v28, %v434_v24  ;;  %v444_v29 = vadd.f32 %v440_v41, %v414_v16  ;;  %v460_v42 = vsel %vm254_vm5, %v451_v0, 0.0  ;;  %v558_v30 = vmul.f32 %v4403_v4, %v547_v60 }
 0x161   :  { %v510_v23 = vadd.f32 %v506_v47, %v484_v19  ;;  %v559_v25 = vmul.f32 %v4403_v4, %v554_v7  ;;  %v466_v32 = vmul.f32 %v4343_v31, %v450_v27  ;;  %v491_v15 = vrot.slane %v4395_v63, 1 }
 0x162   :  { %v443_v33 = vadd.f32 %v439_v14, %v413_v21  ;;  %v465_v38 = vmul.f32 %v4343_v31, %v460_v42  ;;  %v517_v43 = vrot.slane %v4395_v63, 2  ;;  %v482_v28 = vmul.f32 %v4330_v17, %v4390_v59 }
 0x163   :  { %v536_v26 = vadd.f32 %v532_v48, %v510_v23  ;;  %v470_v40 = vadd.f32 %v466_v32, %v444_v29  ;;  %v496_v44 = vsel %vm492_vm14, %v491_v15, %v488_v57  ;;  %v563_v46 = vadd.f32 %v559_v25, %v537_v22 }
 0x164   :  { %v469_v47 = vadd.f32 %v465_v38, %v443_v33  ;;  %v483_v48 = vmul.f32 %v4330_v17, %v4395_v63  ;;  %v493_v31 = vsel %vm492_vm14, %v490_v8, %v491_v15  ;;  %v504_v50 = vsel %vm269_vm6, %v496_v44, 0.0 }
 0x165   :  { %v562_v45 = vadd.f32 %v558_v30, %v536_v26  ;;  %v543_v51 = vrot.slane %v4395_v63, 3  ;;  %v522_v57 = vsel %vm518_vm11, %v517_v43, %v514_v61  ;;  %v508_v17 = vmul.f32 %v4355_v39, %v493_v31 }
 0x166   :  { %v486_v35 = vadd.f32 %v482_v28, %v469_v47  ;;  %v487_v53 = vadd.f32 %v483_v48, %v470_v40  ;;  %v509_v54 = vmul.f32 %v4355_v39, %v504_v50  ;;  %v519_v8 = vsel %vm518_vm11, %v516_v9, %v517_v43 }
 0x167   :  { %v566_v52 = vpack.c.bf16 %v563_v46, %v562_v45  ;;  %v530_v63 = vsel %vm275_vm7, %v522_v57, 0.0  ;;  %v548_v61 = vsel %vm544_vm12, %v543_v51, %v540_v12  ;;  %v534_v58 = vmul.f32 %v4382_v55, %v519_v8  ;;  %v3570_v12 = vld [vmem:[#allocation11] ss:$0 sm:$0xff] }
 0x168   :  { %v512_v36 = vadd.f32 %v508_v17, %v486_v35  ;;  %v513_v56 = vadd.f32 %v509_v54, %v487_v53  ;;  %v535_v60 = vmul.f32 %v4382_v55, %v530_v63  ;;  %v545_v39 = vsel %vm544_vm12, %v542_v49, %v543_v51 }
 0x169   :  { %3390 = vmatmul.msk.bf16.vlgmr.msra.gmra.mxu0 %vm6025_vm0, %v566_v52  ;;  %v556_v59 = vsel %vm6026_vm13, %v548_v61, 0.0  ;;  %v560_v2 = vmul.f32 %v4403_v4, %v545_v39 }
 0x16a   :  { %v538_v9 = vadd.f32 %v534_v58, %v512_v36  ;;  %v539_v62 = vadd.f32 %v535_v60, %v513_v56  ;;  %v561_v7 = vmul.f32 %v4403_v4, %v556_v59 }
 0x16c   :  { %v564_v37 = vadd.f32 %v560_v2, %v538_v9  ;;  %v565_v5 = vadd.f32 %v561_v7, %v539_v62  ;;  %v3522_v2 = vld [vmem:[%s6009_s6 + $0x18] sm:$0xff] }
 0x16d   :  { %893 = vmatpush.bf16.msra.mxu1 %v3522_v2 }
 0x16e   :  { %v567_v16 = vpack.c.bf16 %v565_v5, %v564_v37  ;;  %v3521_v5 = vld [vmem:[%s6009_s6 + $0x10] sm:$0xff] }
 0x171   :  { %894 = vmatpush.bf16.msra.mxu1 %v3521_v5 }
 0x179   :  { %3391 = vmatmul.msk.bf16.gmra.mxu0 %vm6025_vm0, %v567_v16 }
 0x1e6   :  { %v601_v18 = vpop.f32.mrf.mxu0 }
 0x1e7   :  { %v602_v55 = vadd.f32 %v3570_v12, %v601_v18 }
 0x1e9   :  { %v611_v19 = vmax.f32 %v602_v55, 0.0 }
 0x1eb   :  { %v4540_v49 = vadd.f32 %v611_v19, %v4263_v6  ;;  %v4592_v19 = vld [vmem:[#allocation8 + $0x1] ss:$0 sm:$0xff] }
 0x1ed   :  { %v621_v21 = vsel %vm6025_vm0, %v4540_v49, 0.0 }
 0x1ee   :  { %v603_v13 = vpop.f32.mrf.mxu0  ;;  %622 = vadd.xlane.f32.xlu2 %v621_v21 }
 0x1ef   :  { %v604_v41 = vadd.f32 %v3570_v12, %v603_v13 }
 0x1f1   :  { %v612_v22 = vmax.f32 %v604_v41, 0.0 }
 0x1f3   :  { %v4545_v4 = vadd.f32 %v612_v22, %v4261_v3 }
 0x1f5   :  { %v624_v24 = vsel %vm6025_vm0, %v4545_v4, 0.0 }
 0x1f6   :  { %625 = vadd.xlane.f32.xlu1 %v624_v24  ;;  %v606_v27 = vpop.f32.mrf.mxu0 }
 0x1f7   :  { %v607_v0 = vadd.f32 %v3570_v12, %v606_v27 }
 0x1f9   :  { %v613_v23 = vmax.f32 %v607_v0, 0.0 }
 0x1fb   :  { %v4550_v6 = vadd.f32 %v613_v23, %v4269_v10  ;;  %v3572_v23 = vld [vmem:[#allocation10 + $0x1] ss:$0 sm:$0xff] }
 0x1fd   :  { %v627_v14 = vsel %vm6025_vm0, %v4550_v6, 0.0 }
 0x1fe   :  { %v608_v29 = vpop.f32.mrf.mxu0  ;;  %628 = vadd.xlane.f32.xlu2 %v627_v14 }
 0x1ff   :  { %v609_v42 = vadd.f32 %v3570_v12, %v608_v29 }
 0x201   :  { %v614_v30 = vmax.f32 %v609_v42, 0.0 }
 0x203   :  { %v4555_v3 = vadd.f32 %v614_v30, %v4271_v11 }
 0x205   :  { %v630_v25 = vsel %vm6025_vm0, %v4555_v3, 0.0 }
 0x206   :  { %631 = vadd.xlane.f32.xlu0 %v630_v25 }
 0x261   :  { %v623_v32 = vpop.xlane.xlu2 %622 }
 0x262   :  { %v633_v15 = vmul.f32 %v623_v32, %v4277_v20 }
 0x264   :  { %v637_v10 = vsub.f32 %v4540_v49, %v633_v15 }
 0x266   :  { %v641_v26 = vmul.f32 %v637_v10, %v637_v10 }
 0x268   :  { %v645_v33 = vsel %vm6025_vm0, %v641_v26, 0.0 }
 0x269   :  { %v626_v38 = vpop.xlane.xlu1 %625  ;;  %646 = vadd.xlane.f32.xlu0 %v645_v33 }
 0x26a   :  { %v634_v43 = vmul.f32 %v626_v38, %v4277_v20  ;;  %v3392_v38 = vld [vmem:[%s6008_s5 + $0x8] sm:$0x7f] }
 0x26b   :  { %v4637_v5 = vperm.slane %v3392_v38, 4 }
 0x26c   :  { %v4564_v40 = vsub.f32 %v4545_v4, %v634_v43 }
 0x26e   :  { %v642_v11 = vmul.f32 %v4564_v40, %v4564_v40 }
 0x270   :  { %v648_v28 = vsel %vm6025_vm0, %v642_v11, 0.0 }
 0x271   :  { %649 = vadd.xlane.f32.xlu2 %v648_v28  ;;  %v629_v44 = vpop.xlane.xlu2 %628  ;;  %v4605_v28 = vperm.slane %v3392_v38, 0 }
 0x272   :  { %v635_v45 = vmul.f32 %v629_v44, %v4277_v20 }
 0x274   :  { %v4571_v46 = vsub.f32 %v4550_v6, %v635_v45 }
 0x276   :  { %v643_v47 = vmul.f32 %v4571_v46, %v4571_v46 }
 0x278   :  { %v651_v48 = vsel %vm6025_vm0, %v643_v47, 0.0 }
 0x279   :  { %v632_v31 = vpop.xlane.xlu0 %631  ;;  %652 = vadd.xlane.f32.xlu0 %v651_v48 }
 0x27a   :  { %v636_v50 = vmul.f32 %v632_v31, %v4277_v20 }
 0x27c   :  { %v4578_v51 = vsub.f32 %v4555_v3, %v636_v50 }
 0x27e   :  { %v644_v52 = vmul.f32 %v4578_v51, %v4578_v51 }
 0x280   :  { %v654_v35 = vsel %vm6025_vm0, %v644_v52, 0.0 }
 0x281   :  { %655 = vadd.xlane.f32.xlu1 %v654_v35 }
 0x2dc   :  { %v647_v53 = vpop.xlane.xlu0 %646 }
 0x2dd   :  { %v657_v57 = vmul.f32 %v647_v53, %v4277_v20 }
 0x2df   :  { %v661_v17 = vadd.f32 1e-05, %v657_v57 }
 0x2e1   :  { %3596 = vrsqrt.f32 %v661_v17  ;;  %vm671_vm1 = vweird.f32 %v661_v17 }
 0x2e4   :  { %v650_v54 = vpop.xlane.xlu2 %649 }
 0x2e5   :  { %v658_v8 = vmul.f32 %v650_v54, %v4277_v20 }
 0x2e7   :  { %v3597_v63 = vpop.eup %3596  ;;  %v662_v36 = vadd.f32 1e-05, %v658_v8 }
 0x2e8   :  { %v666_v56 = vmul.f32 %v3597_v63, %v661_v17  ;;  %vm672_vm15 = vweird.f32 %v3597_v63 }
 0x2e9   :  { %3598 = vrsqrt.f32 %v662_v36  ;;  %vm673_vm2 = vmor %vm671_vm1, %vm672_vm15  ;;  %vm681_vm15 = vweird.f32 %v662_v36 }
 0x2ea   :  { %v667_v61 = vmul.f32 %v3597_v63, %v666_v56 }
 0x2ec   :  { %v668_v58 = vmul.f32 0.5, %v667_v61  ;;  %v653_v60 = vpop.xlane.xlu0 %652  ;;  %v4625_v61 = vperm.slane %v3392_v38, 2 }
 0x2ed   :  { %v659_v39 = vmul.f32 %v653_v60, %v4277_v20 }
 0x2ee   :  { %v669_v59 = vsub.f32 1.5, %v668_v58 }
 0x2ef   :  { %v3599_v9 = vpop.eup %3598  ;;  %v663_v62 = vadd.f32 1e-05, %v659_v39 }
 0x2f0   :  { %v670_v7 = vmul.f32 %v3597_v63, %v669_v59  ;;  %v676_v37 = vmul.f32 %v3599_v9, %v662_v36  ;;  %vm682_vm0 = vweird.f32 %v3599_v9  ;;  %v4631_v59 = vperm.slane %v3392_v38, 3 }
 0x2f1   :  { %3600 = vrsqrt.f32 %v663_v62  ;;  %vm683_vm1 = vmor %vm681_vm15, %vm682_vm0  ;;  %vm691_vm13 = vweird.f32 %v663_v62 }
 0x2f2   :  { %v674_v16 = vsel %vm673_vm2, %v3597_v63, %v670_v7  ;;  %v677_v12 = vmul.f32 %v3599_v9, %v676_v37 }
 0x2f3   :  { %v705_v21 = vmul.f32 %v674_v16, %v637_v10  ;;  %v4639_v16 = vperm.slane %v3392_v38, 5 }
 0x2f4   :  { %v678_v18 = vmul.f32 0.5, %v677_v12  ;;  %v656_v55 = vpop.xlane.xlu1 %655 }
 0x2f5   :  { %v660_v13 = vmul.f32 %v656_v55, %v4277_v20  ;;  %v710_v14 = vmul.f32 %v4592_v19, %v705_v21  ;;  %v4644_v21 = vperm.slane %v3392_v38, 6 }
 0x2f6   :  { %v679_v41 = vsub.f32 1.5, %v678_v18 }
 0x2f7   :  { %v3601_v22 = vpop.eup %3600  ;;  %v664_v24 = vadd.f32 1e-05, %v660_v13  ;;  %v4597_v32 = vadd.f32 %v3572_v23, %v710_v14 }
 0x2f8   :  { %v680_v27 = vmul.f32 %v3599_v9, %v679_v41  ;;  %v686_v0 = vmul.f32 %v3601_v22, %v663_v62  ;;  %vm692_vm2 = vweird.f32 %v3601_v22 }
 0x2f9   :  { %3602 = vrsqrt.f32 %v664_v24  ;;  %vm693_vm0 = vmor %vm691_vm13, %vm692_vm2  ;;  %v721_v44 = vrot.slane %v4597_v32, 5  ;;  %v742_v47 = vrot.slane %v4597_v32, 6  ;;  %v763_v56 = vrot.slane %v4597_v32, 7 }
 0x2fa   :  { %v684_v29 = vsel %vm683_vm1, %v3599_v9, %v680_v27  ;;  %v687_v42 = vmul.f32 %v3601_v22, %v686_v0  ;;  %vm701_vm15 = vweird.f32 %v664_v24  ;;  %v789_v55 = vmul.f32 %v4631_v59, %v4597_v32 }
 0x2fb   :  { %v706_v30 = vmul.f32 %v684_v29, %v4564_v40  ;;  %v4607_v40 = vperm.slane %v3392_v38, 1  ;;  %v818_v13 = vrot.slane %v4597_v32, 2  ;;  %vm6035_vm2 = vcmp.lt.s32.totalorder %v4348_v34, 13 }
 0x2fc   :  { %v688_v25 = vmul.f32 0.5, %v687_v42 }
 0x2fd   :  { %v711_v15 = vmul.f32 %v4592_v19, %v706_v30 }
 0x2fe   :  { %v689_v10 = vsub.f32 1.5, %v688_v25 }
 0x2ff   :  { %v3603_v26 = vpop.eup %3602  ;;  %v4600_v33 = vadd.f32 %v3572_v23, %v711_v15 }
 0x300   :  { %v690_v43 = vmul.f32 %v3601_v22, %v689_v10  ;;  %v696_v11 = vmul.f32 %v3603_v26, %v664_v24  ;;  %vm702_vm13 = vweird.f32 %v3603_v26 }
 0x301   :  { %v722_v45 = vrot.slane %v4600_v33, 5  ;;  %v743_v48 = vrot.slane %v4600_v33, 6  ;;  %v764_v17 = vrot.slane %v4600_v33, 7  ;;  %vm703_vm1 = vmor %vm701_vm15, %vm702_vm13  ;;  %v798_v37 = vrot.slane %v4600_v33, 1 }
 0x302   :  { %v694_v31 = vsel %vm693_vm0, %v3601_v22, %v690_v43  ;;  %v697_v50 = vmul.f32 %v3603_v26, %v696_v11  ;;  %v790_v27 = vmul.f32 %v4631_v59, %v4600_v33  ;;  %v819_v29 = vrot.slane %v4600_v33, 2  ;;  %vm6037_vm13 = vmmov %vm6035_vm2 }
 0x303   :  { %v707_v52 = vmul.f32 %v694_v31, %v4571_v46  ;;  %v727_v35 = vsel %vm397_vm8, %v721_v44, %v722_v45  ;;  %v748_v53 = vsel %vm423_vm9, %v742_v47, %v743_v48  ;;  %v769_v60 = vsel %vm449_vm10, %v763_v56, %v764_v17 }
 0x304   :  { %v698_v57 = vmul.f32 0.5, %v697_v50  ;;  %v735_v8 = vmul.f32 %v4605_v28, %v727_v35  ;;  %v756_v63 = vmul.f32 %v4607_v40, %v748_v53  ;;  %v777_v2 = vmul.f32 %v4625_v61, %v769_v60 }
 0x305   :  { %v712_v54 = vmul.f32 %v4592_v19, %v707_v52  ;;  %vm6036_vm0 = vcmask 261120  }
 0x306   :  { %v699_v36 = vsub.f32 1.5, %v698_v57  ;;  %v760_v39 = vadd.f32 %v756_v63, %v735_v8  ;;  %vm6038_vm15 = vmmov %vm6036_vm0 }
 0x307   :  { %v4623_v46 = vadd.f32 %v3572_v23, %v712_v54 }
 0x308   :  { %v700_v58 = vmul.f32 %v3603_v26, %v699_v36  ;;  %v781_v18 = vadd.f32 %v777_v2, %v760_v39 }
 0x309   :  { %v799_v7 = vrot.slane %v4623_v46, 1  ;;  %v820_v41 = vrot.slane %v4623_v46, 2  ;;  %v723_v22 = vrot.slane %v4623_v46, 5  ;;  %v744_v0 = vrot.slane %v4623_v46, 6 }
 0x30a   :  { %v704_v9 = vsel %vm703_vm1, %v3603_v26, %v700_v58  ;;  %v841_v42 = vrot.slane %v4623_v46, 3  ;;  %v794_v10 = vadd.f32 %v790_v27, %v781_v18  ;;  %v765_v11 = vrot.slane %v4623_v46, 7  ;;  %vm6039_vm1 = vmmov %vm6036_vm0 }
 0x30b   :  { %v708_v62 = vmul.f32 %v704_v9, %v4578_v51  ;;  %v797_v51 = vrot.slane %v4597_v32, 1  ;;  %v823_v38 = vsel %vm518_vm11, %v819_v29, %v820_v41  ;;  %v726_v43 = vsel %vm397_vm8, %v722_v45, %v723_v22 }
 0x30c   :  { %v747_v35 = vsel %vm423_vm9, %v743_v48, %v744_v0  ;;  %v827_v63 = vsel %vm275_vm7, %v823_v38, 0.0  ;;  %v731_v36 = vsel %vm242_vm3, %v726_v43, 0.0  ;;  %v768_v18 = vsel %vm449_vm10, %v764_v17, %v765_v11 }
 0x30d   :  { %v713_v12 = vmul.f32 %v4592_v19, %v708_v62  ;;  %v802_v19 = vsel %vm492_vm14, %v798_v37, %v799_v7  ;;  %v803_v14 = vsel %vm492_vm14, %v797_v51, %v798_v37  ;;  %v752_v58 = vsel %vm248_vm4, %v747_v35, 0.0 }
 0x30e   :  { %v806_v26 = vsel %vm269_vm6, %v802_v19, 0.0  ;;  %v810_v2 = vmul.f32 %v4637_v5, %v803_v14  ;;  %v824_v37 = vsel %vm518_vm11, %v818_v13, %v819_v29  ;;  %v736_v19 = vmul.f32 %v4605_v28, %v731_v36 }
 0x30f   :  { %v4650_v24 = vadd.f32 %v3572_v23, %v713_v12  ;;  %v840_v23 = vrot.slane %v4600_v33, 3  ;;  %v811_v8 = vmul.f32 %v4637_v5, %v806_v26  ;;  %v839_v12 = vrot.slane %v4597_v32, 3 }
 0x310   :  { %v832_v14 = vmul.f32 %v4639_v16, %v827_v63  ;;  %v773_v17 = vsel %vm254_vm5, %v768_v18, 0.0 }
 0x311   :  { %v724_v30 = vrot.slane %v4650_v24, 5  ;;  %v745_v25 = vrot.slane %v4650_v24, 6  ;;  %v766_v15 = vrot.slane %v4650_v24, 7  ;;  %v844_v48 = vsel %vm544_vm12, %v840_v23, %v841_v42 }
 0x312   :  { %v815_v27 = vadd.f32 %v811_v8, %v794_v10  ;;  %v848_v29 = vsel %vm6035_vm2, %v844_v48, 0.0  ;;  %v821_v35 = vrot.slane %v4650_v24, 2  ;;  %v842_v63 = vrot.slane %v4650_v24, 3  ;;  %vm6040_vm2 = vmmov %vm6036_vm0 }
 0x313   :  { %v728_v31 = vsel %vm397_vm8, %v724_v30, %v721_v44  ;;  %v749_v50 = vsel %vm423_vm9, %v745_v25, %v742_v47  ;;  %v770_v52 = vsel %vm449_vm10, %v766_v15, %v763_v56  ;;  %v725_v44 = vsel %vm397_vm8, %v723_v22, %v724_v30 }
 0x314   :  { %v729_v53 = vsel %vm242_vm3, %v728_v31, 0.0  ;;  %v750_v45 = vsel %vm248_vm4, %v749_v50, 0.0  ;;  %v771_v57 = vsel %vm254_vm5, %v770_v52, 0.0  ;;  %v746_v56 = vsel %vm423_vm9, %v744_v0, %v745_v25 }
 0x315   :  { %v734_v47 = vmul.f32 %v4605_v28, %v729_v53  ;;  %v755_v54 = vmul.f32 %v4607_v40, %v750_v45  ;;  %v776_v39 = vmul.f32 %v4625_v61, %v771_v57  ;;  %v737_v9 = vmul.f32 %v4605_v28, %v725_v44 }
 0x316   :  { %v758_v62 = vmul.f32 %v4607_v40, %v746_v56  ;;  %v757_v0 = vmul.f32 %v4607_v40, %v752_v58  ;;  %v845_v30 = vsel %vm544_vm12, %v839_v12, %v840_v23  ;;  %v767_v33 = vsel %vm449_vm10, %v765_v11, %v766_v15 }
 0x317   :  { %v759_v60 = vadd.f32 %v755_v54, %v734_v47  ;;  %v800_v28 = vrot.slane %v4650_v24, 1  ;;  %v831_v40 = vmul.f32 %v4639_v16, %v824_v37  ;;  %v836_v38 = vadd.f32 %v832_v14, %v815_v27  ;;  %v3573_v27 = vld [vmem:[#allocation11 + $0x1] ss:$0 sm:$0xff] }
 0x318   :  { %v762_v26 = vadd.f32 %v758_v62, %v737_v9  ;;  %v761_v43 = vadd.f32 %v757_v0, %v736_v19  ;;  %v779_v23 = vmul.f32 %v4625_v61, %v767_v33  ;;  %v852_v31 = vmul.f32 %v4644_v21, %v845_v30 }
 0x319   :  { %v780_v22 = vadd.f32 %v776_v39, %v759_v60  ;;  %v853_v50 = vmul.f32 %v4644_v21, %v848_v29  ;;  %v778_v15 = vmul.f32 %v4625_v61, %v773_v17  ;;  %v804_v52 = vsel %vm492_vm14, %v800_v28, %v797_v51 }
 0x31a   :  { %v783_v11 = vadd.f32 %v779_v23, %v762_v26  ;;  %v792_v44 = vmul.f32 %v4631_v59, %v4650_v24  ;;  %v791_v47 = vmul.f32 %v4631_v59, %v4623_v46  ;;  %v801_v61 = vsel %vm492_vm14, %v799_v7, %v800_v28 }
 0x31b   :  { %v793_v25 = vadd.f32 %v789_v55, %v780_v22  ;;  %v857_v45 = vadd.f32 %v853_v50, %v836_v38  ;;  %v782_v57 = vadd.f32 %v778_v15, %v761_v43  ;;  %v808_v54 = vsel %vm269_vm6, %v804_v52, 0.0 }
 0x31c   :  { %v796_v8 = vadd.f32 %v792_v44, %v783_v11  ;;  %v825_v48 = vsel %vm518_vm11, %v821_v35, %v818_v13  ;;  %v812_v36 = vmul.f32 %v4637_v5, %v801_v61  ;;  %v813_v56 = vmul.f32 %v4637_v5, %v808_v54 }
 0x31d   :  { %v814_v10 = vadd.f32 %v810_v2, %v793_v25  ;;  %v795_v59 = vadd.f32 %v791_v47, %v782_v57  ;;  %v829_v7 = vsel %vm275_vm7, %v825_v48, 0.0  ;;  %v846_v60 = vsel %vm544_vm12, %v842_v63, %v839_v12 }
 0x31e   :  { %v817_v58 = vadd.f32 %v813_v56, %v796_v8  ;;  %v822_v32 = vsel %vm518_vm11, %v820_v41, %v821_v35  ;;  %v834_v24 = vmul.f32 %v4639_v16, %v829_v7  ;;  %v850_v39 = vsel %vm6037_vm13, %v846_v60, 0.0  ;;  %vm6041_vm13 = vmmov %vm6036_vm0 }
 0x31f   :  { %v835_v55 = vadd.f32 %v831_v40, %v814_v10  ;;  %v816_v13 = vadd.f32 %v812_v36, %v795_v59  ;;  %v833_v5 = vmul.f32 %v4639_v16, %v822_v32  ;;  %v843_v62 = vsel %vm544_vm12, %v841_v42, %v842_v63 }
 0x320   :  { %v838_v9 = vadd.f32 %v834_v24, %v817_v58  ;;  %v855_v37 = vmul.f32 %v4644_v21, %v850_v39  ;;  %v854_v12 = vmul.f32 %v4644_v21, %v843_v62 }
 0x321   :  { %v856_v53 = vadd.f32 %v852_v31, %v835_v55  ;;  %v837_v2 = vadd.f32 %v833_v5, %v816_v13 }
 0x322   :  { %v859_v41 = vadd.f32 %v855_v37, %v838_v9  ;;  %v3524_v37 = vld [vmem:[%s6009_s6 + $0x28] sm:$0xff] }
 0x323   :  { %v860_v51 = vpack.c.bf16 %v857_v45, %v856_v53  ;;  %v858_v18 = vadd.f32 %v854_v12, %v837_v2  ;;  %1188 = vmatpush.bf16.msra.mxu2 %v3524_v37 }
 0x325   :  { %3405 = vmatmul.msk.bf16.vlgmr.msra.gmra.mxu1 %vm6036_vm0, %v860_v51  ;;  %v861_v22 = vpack.c.bf16 %v859_v41, %v858_v18  ;;  %v3523_v18 = vld [vmem:[%s6009_s6 + $0x20] sm:$0xff] }
 0x327   :  { %1189 = vmatpush.bf16.msra.mxu2 %v3523_v18 }
 0x335   :  { %3406 = vmatmul.msk.bf16.gmra.mxu1 %vm6038_vm15, %v861_v22  ;;  %vm6042_vm15 = vmmov %vm6036_vm0 }
 0x3a2   :  { %v896_v19 = vpop.f32.mrf.mxu1 }
 0x3a3   :  { %v897_v0 = vadd.f32 %v3573_v27, %v896_v19 }
 0x3a5   :  { %v906_v16 = vmax.f32 %v897_v0, 0.0 }
 0x3a7   :  { %v4782_v14 = vadd.f32 %v906_v16, %v4540_v49  ;;  %v4834_v16 = vld [vmem:[#allocation8 + $0x2] ss:$0 sm:$0xff] }
 0x3a9   :  { %v916_v46 = vsel %vm6039_vm1, %v4782_v14, 0.0  ;;  %vm6043_vm1 = vmmov %vm6036_vm0 }
 0x3aa   :  { %v898_v42 = vpop.f32.mrf.mxu1  ;;  %917 = vadd.xlane.f32.xlu1 %v916_v46 }
 0x3ab   :  { %v899_v30 = vadd.f32 %v3573_v27, %v898_v42 }
 0x3ad   :  { %v907_v29 = vmax.f32 %v899_v30, 0.0 }
 0x3af   :  { %v4787_v21 = vadd.f32 %v907_v29, %v4545_v4 }
 0x3b1   :  { %v919_v33 = vsel %vm6040_vm2, %v4787_v21, 0.0  ;;  %vm6044_vm2 = vmmov %vm6036_vm0 }
 0x3b2   :  { %920 = vadd.xlane.f32.xlu0 %v919_v33  ;;  %v901_v25 = vpop.f32.mrf.mxu1 }
 0x3b3   :  { %v902_v26 = vadd.f32 %v3573_v27, %v901_v25 }
 0x3b5   :  { %v908_v17 = vmax.f32 %v902_v26, 0.0 }
 0x3b7   :  { %v4792_v49 = vadd.f32 %v908_v17, %v4550_v6  ;;  %v3575_v17 = vld [vmem:[#allocation10 + $0x2] ss:$0 sm:$0xff] }
 0x3b9   :  { %v922_v28 = vsel %vm6036_vm0, %v4792_v49, 0.0 }
 0x3ba   :  { %v903_v40 = vpop.f32.mrf.mxu1  ;;  %923 = vadd.xlane.f32.xlu1 %v922_v28 }
 0x3bb   :  { %v904_v10 = vadd.f32 %v3573_v27, %v903_v40 }
 0x3bd   :  { %v909_v38 = vmax.f32 %v904_v10, 0.0 }
 0x3bf   :  { %v4797_v4 = vadd.f32 %v909_v38, %v4555_v3 }
 0x3c1   :  { %v925_v43 = vsel %vm6041_vm13, %v4797_v4, 0.0 }
 0x3c2   :  { %926 = vadd.xlane.f32.xlu2 %v925_v43 }
 0x41d   :  { %v918_v23 = vpop.xlane.xlu1 %917 }
 0x41e   :  { %v928_v31 = vmul.f32 %v918_v23, %v4277_v20 }
 0x420   :  { %v932_v6 = vsub.f32 %v4782_v14, %v928_v31 }
 0x422   :  { %v936_v50 = vmul.f32 %v932_v6, %v932_v6 }
 0x424   :  { %v940_v15 = vsel %vm6042_vm15, %v936_v50, 0.0 }
 0x425   :  { %v921_v55 = vpop.xlane.xlu0 %920  ;;  %941 = vadd.xlane.f32.xlu2 %v940_v15 }
 0x426   :  { %v929_v11 = vmul.f32 %v921_v55, %v4277_v20  ;;  %v3407_v55 = vld [vmem:[%s6008_s5 + $0x10] sm:$0x7f] }
 0x427   :  { %v4879_v18 = vperm.slane %v3407_v55, 4 }
 0x428   :  { %v4806_v52 = vsub.f32 %v4787_v21, %v929_v11 }
 0x42a   :  { %v937_v3 = vmul.f32 %v4806_v52, %v4806_v52 }
 0x42c   :  { %v943_v35 = vsel %vm6043_vm1, %v937_v3, 0.0 }
 0x42d   :  { %944 = vadd.xlane.f32.xlu1 %v943_v35  ;;  %v924_v53 = vpop.xlane.xlu1 %923  ;;  %v4847_v35 = vperm.slane %v3407_v55, 0 }
 0x42e   :  { %v930_v45 = vmul.f32 %v924_v53, %v4277_v20 }
 0x430   :  { %v4813_v57 = vsub.f32 %v4792_v49, %v930_v45 }
 0x432   :  { %v938_v44 = vmul.f32 %v4813_v57, %v4813_v57 }
 0x434   :  { %v946_v47 = vsel %vm6044_vm2, %v938_v44, 0.0 }
 0x435   :  { %v927_v61 = vpop.xlane.xlu2 %926  ;;  %947 = vadd.xlane.f32.xlu2 %v946_v47 }
 0x436   :  { %v931_v54 = vmul.f32 %v927_v61, %v4277_v20 }
 0x438   :  { %v4820_v51 = vsub.f32 %v4797_v4, %v931_v54 }
 0x43a   :  { %v939_v8 = vmul.f32 %v4820_v51, %v4820_v51 }
 0x43c   :  { %v949_v48 = vsel %vm6036_vm0, %v939_v8, 0.0 }
 0x43d   :  { %950 = vadd.xlane.f32.xlu0 %v949_v48 }
 0x498   :  { %v942_v63 = vpop.xlane.xlu2 %941 }
 0x499   :  { %v952_v59 = vmul.f32 %v942_v63, %v4277_v20 }
 0x49b   :  { %v956_v36 = vadd.f32 1e-05, %v952_v59 }
 0x49d   :  { %3604 = vrsqrt.f32 %v956_v36  ;;  %vm966_vm15 = vweird.f32 %v956_v36 }
 0x4a0   :  { %v945_v56 = vpop.xlane.xlu1 %944 }
 0x4a1   :  { %v953_v7 = vmul.f32 %v945_v56, %v4277_v20 }
 0x4a3   :  { %v3605_v58 = vpop.eup %3604  ;;  %v957_v60 = vadd.f32 1e-05, %v953_v7 }
 0x4a4   :  { %v961_v32 = vmul.f32 %v3605_v58, %v956_v36  ;;  %vm967_vm13 = vweird.f32 %v3605_v58 }
 0x4a5   :  { %3606 = vrsqrt.f32 %v957_v60  ;;  %vm968_vm1 = vmor %vm966_vm15, %vm967_vm13  ;;  %vm976_vm0 = vweird.f32 %v957_v60 }
 0x4a6   :  { %v962_v13 = vmul.f32 %v3605_v58, %v961_v32 }
 0x4a8   :  { %v963_v24 = vmul.f32 0.5, %v962_v13  ;;  %v948_v39 = vpop.xlane.xlu2 %947  ;;  %v4867_v13 = vperm.slane %v3407_v55, 2 }
 0x4a9   :  { %v954_v5 = vmul.f32 %v948_v39, %v4277_v20 }
 0x4aa   :  { %v964_v9 = vsub.f32 1.5, %v963_v24 }
 0x4ab   :  { %v3607_v62 = vpop.eup %3606  ;;  %v958_v2 = vadd.f32 1e-05, %v954_v5 }
 0x4ac   :  { %v965_v12 = vmul.f32 %v3605_v58, %v964_v9  ;;  %v971_v41 = vmul.f32 %v3607_v62, %v957_v60  ;;  %vm977_vm2 = vweird.f32 %v3607_v62  ;;  %v4873_v9 = vperm.slane %v3407_v55, 3 }
 0x4ad   :  { %3608 = vrsqrt.f32 %v958_v2  ;;  %vm978_vm13 = vmor %vm976_vm0, %vm977_vm2 }
 0x4ae   :  { %v969_v22 = vsel %vm968_vm1, %v3605_v58, %v965_v12  ;;  %v972_v27 = vmul.f32 %v3607_v62, %v971_v41  ;;  %vm986_vm1 = vweird.f32 %v958_v2 }
 0x4af   :  { %v1000_v46 = vmul.f32 %v969_v22, %v932_v6  ;;  %v4881_v22 = vperm.slane %v3407_v55, 5 }
 0x4b0   :  { %v973_v19 = vmul.f32 0.5, %v972_v27  ;;  %v951_v0 = vpop.xlane.xlu0 %950 }
 0x4b1   :  { %v955_v42 = vmul.f32 %v951_v0, %v4277_v20  ;;  %v1005_v28 = vmul.f32 %v4834_v16, %v1000_v46  ;;  %v4886_v46 = vperm.slane %v3407_v55, 6 }
 0x4b2   :  { %v974_v30 = vsub.f32 1.5, %v973_v19 }
 0x4b3   :  { %v3609_v29 = vpop.eup %3608  ;;  %v959_v33 = vadd.f32 1e-05, %v955_v42  ;;  %v4839_v23 = vadd.f32 %v3575_v17, %v1005_v28 }
 0x4b4   :  { %v975_v25 = vmul.f32 %v3607_v62, %v974_v30  ;;  %v981_v26 = vmul.f32 %v3609_v29, %v958_v2  ;;  %vm987_vm15 = vweird.f32 %v3609_v29 }
 0x4b5   :  { %3610 = vrsqrt.f32 %v959_v33  ;;  %vm988_vm2 = vmor %vm986_vm1, %vm987_vm15  ;;  %v1016_v53 = vrot.slane %v4839_v23, 5  ;;  %v1037_v44 = vrot.slane %v4839_v23, 6  ;;  %v1058_v32 = vrot.slane %v4839_v23, 7 }
 0x4b6   :  { %v979_v40 = vsel %vm978_vm13, %v3607_v62, %v975_v25  ;;  %v982_v10 = vmul.f32 %v3609_v29, %v981_v26  ;;  %vm996_vm13 = vweird.f32 %v959_v33  ;;  %v1084_v0 = vmul.f32 %v4873_v9, %v4839_v23 }
 0x4b7   :  { %v1001_v38 = vmul.f32 %v979_v40, %v4806_v52  ;;  %v4849_v52 = vperm.slane %v3407_v55, 1  ;;  %v1113_v42 = vrot.slane %v4839_v23, 2  ;;  %vm6045_vm1 = vcmp.lt.s32.totalorder %v4348_v34, 13 }
 0x4b8   :  { %v983_v43 = vmul.f32 0.5, %v982_v10 }
 0x4b9   :  { %v1006_v31 = vmul.f32 %v4834_v16, %v1001_v38 }
 0x4ba   :  { %v984_v6 = vsub.f32 1.5, %v983_v43 }
 0x4bb   :  { %v3611_v50 = vpop.eup %3610  ;;  %v4842_v15 = vadd.f32 %v3575_v17, %v1006_v31 }
 0x4bc   :  { %v985_v11 = vmul.f32 %v3609_v29, %v984_v6  ;;  %v991_v3 = vmul.f32 %v3611_v50, %v959_v33  ;;  %vm997_vm0 = vweird.f32 %v3611_v50 }
 0x4bd   :  { %v1017_v45 = vrot.slane %v4842_v15, 5  ;;  %v1038_v47 = vrot.slane %v4842_v15, 6  ;;  %v1059_v36 = vrot.slane %v4842_v15, 7  ;;  %vm998_vm15 = vmor %vm996_vm13, %vm997_vm0  ;;  %v1093_v41 = vrot.slane %v4842_v15, 1 }
 0x4be   :  { %v989_v61 = vsel %vm988_vm2, %v3609_v29, %v985_v11  ;;  %v992_v54 = vmul.f32 %v3611_v50, %v991_v3  ;;  %v1085_v25 = vmul.f32 %v4873_v9, %v4842_v15  ;;  %v1114_v40 = vrot.slane %v4842_v15, 2  ;;  %vm6047_vm0 = vmmov %vm6045_vm1 }
 0x4bf   :  { %v1002_v8 = vmul.f32 %v989_v61, %v4813_v57  ;;  %v1022_v48 = vsel %vm397_vm8, %v1016_v53, %v1017_v45  ;;  %v1043_v63 = vsel %vm423_vm9, %v1037_v44, %v1038_v47  ;;  %v1064_v39 = vsel %vm449_vm10, %v1058_v32, %v1059_v36 }
 0x4c0   :  { %v993_v59 = vmul.f32 0.5, %v992_v54  ;;  %v1030_v7 = vmul.f32 %v4847_v35, %v1022_v48  ;;  %v1051_v58 = vmul.f32 %v4849_v52, %v1043_v63  ;;  %v1072_v37 = vmul.f32 %v4867_v13, %v1064_v39 }
 0x4c1   :  { %v1007_v56 = vmul.f32 %v4834_v16, %v1002_v8  ;;  %vm6046_vm2 = vcmask 261120  }
 0x4c2   :  { %v994_v60 = vsub.f32 1.5, %v993_v59  ;;  %v1055_v5 = vadd.f32 %v1051_v58, %v1030_v7  ;;  %vm6048_vm13 = vmmov %vm6046_vm2 }
 0x4c3   :  { %v4865_v57 = vadd.f32 %v3575_v17, %v1007_v56 }
 0x4c4   :  { %v995_v24 = vmul.f32 %v3611_v50, %v994_v60  ;;  %v1076_v19 = vadd.f32 %v1072_v37, %v1055_v5 }
 0x4c5   :  { %v1094_v12 = vrot.slane %v4865_v57, 1  ;;  %v1115_v30 = vrot.slane %v4865_v57, 2  ;;  %v1018_v29 = vrot.slane %v4865_v57, 5  ;;  %v1039_v26 = vrot.slane %v4865_v57, 6 }
 0x4c6   :  { %v999_v62 = vsel %vm998_vm15, %v3611_v50, %v995_v24  ;;  %v1136_v10 = vrot.slane %v4865_v57, 3  ;;  %v1089_v6 = vadd.f32 %v1085_v25, %v1076_v19  ;;  %v1060_v3 = vrot.slane %v4865_v57, 7  ;;  %vm6049_vm15 = vmmov %vm6046_vm2 }
 0x4c7   :  { %v1003_v2 = vmul.f32 %v999_v62, %v4820_v51  ;;  %v1092_v51 = vrot.slane %v4839_v23, 1  ;;  %v1118_v55 = vsel %vm518_vm11, %v1114_v40, %v1115_v30  ;;  %v1021_v11 = vsel %vm397_vm8, %v1017_v45, %v1018_v29 }
 0x4c8   :  { %v1042_v48 = vsel %vm423_vm9, %v1038_v47, %v1039_v26  ;;  %v1122_v58 = vsel %vm275_vm7, %v1118_v55, 0.0  ;;  %v1026_v60 = vsel %vm242_vm3, %v1021_v11, 0.0  ;;  %v1063_v19 = vsel %vm449_vm10, %v1059_v36, %v1060_v3 }
 0x4c9   :  { %v1008_v27 = vmul.f32 %v4834_v16, %v1003_v2  ;;  %v1097_v16 = vsel %vm492_vm14, %v1093_v41, %v1094_v12  ;;  %v1098_v28 = vsel %vm492_vm14, %v1092_v51, %v1093_v41  ;;  %v1047_v24 = vsel %vm248_vm4, %v1042_v48, 0.0 }
 0x4ca   :  { %v1101_v50 = vsel %vm269_vm6, %v1097_v16, 0.0  ;;  %v1105_v37 = vmul.f32 %v4879_v18, %v1098_v28  ;;  %v1119_v41 = vsel %vm518_vm11, %v1113_v42, %v1114_v40  ;;  %v1031_v16 = vmul.f32 %v4847_v35, %v1026_v60 }
 0x4cb   :  { %v4892_v33 = vadd.f32 %v3575_v17, %v1008_v27  ;;  %v1135_v17 = vrot.slane %v4842_v15, 3  ;;  %v1106_v7 = vmul.f32 %v4879_v18, %v1101_v50  ;;  %v1134_v27 = vrot.slane %v4839_v23, 3 }
 0x4cc   :  { %v1127_v28 = vmul.f32 %v4881_v22, %v1122_v58  ;;  %v1068_v36 = vsel %vm254_vm5, %v1063_v19, 0.0 }
 0x4cd   :  { %v1019_v38 = vrot.slane %v4892_v33, 5  ;;  %v1040_v43 = vrot.slane %v4892_v33, 6  ;;  %v1061_v31 = vrot.slane %v4892_v33, 7  ;;  %v1139_v47 = vsel %vm544_vm12, %v1135_v17, %v1136_v10 }
 0x4ce   :  { %v1110_v25 = vadd.f32 %v1106_v7, %v1089_v6  ;;  %v1143_v40 = vsel %vm6045_vm1, %v1139_v47, 0.0  ;;  %v1116_v48 = vrot.slane %v4892_v33, 2  ;;  %v1137_v58 = vrot.slane %v4892_v33, 3  ;;  %vm6050_vm1 = vmmov %vm6046_vm2 }
 0x4cf   :  { %v1023_v61 = vsel %vm397_vm8, %v1019_v38, %v1016_v53  ;;  %v1044_v54 = vsel %vm423_vm9, %v1040_v43, %v1037_v44  ;;  %v1065_v8 = vsel %vm449_vm10, %v1061_v31, %v1058_v32  ;;  %v1020_v53 = vsel %vm397_vm8, %v1018_v29, %v1019_v38 }
 0x4d0   :  { %v1024_v63 = vsel %vm242_vm3, %v1023_v61, 0.0  ;;  %v1045_v45 = vsel %vm248_vm4, %v1044_v54, 0.0  ;;  %v1066_v59 = vsel %vm254_vm5, %v1065_v8, 0.0  ;;  %v1041_v32 = vsel %vm423_vm9, %v1039_v26, %v1040_v43 }
 0x4d1   :  { %v1029_v44 = vmul.f32 %v4847_v35, %v1024_v63  ;;  %v1050_v56 = vmul.f32 %v4849_v52, %v1045_v45  ;;  %v1071_v5 = vmul.f32 %v4867_v13, %v1066_v59  ;;  %v1032_v62 = vmul.f32 %v4847_v35, %v1020_v53 }
 0x4d2   :  { %v1053_v2 = vmul.f32 %v4849_v52, %v1041_v32  ;;  %v1052_v26 = vmul.f32 %v4849_v52, %v1047_v24  ;;  %v1140_v38 = vsel %vm544_vm12, %v1134_v27, %v1135_v17  ;;  %v1062_v15 = vsel %vm449_vm10, %v1060_v3, %v1061_v31 }
 0x4d3   :  { %v1054_v39 = vadd.f32 %v1050_v56, %v1029_v44  ;;  %v1095_v35 = vrot.slane %v4892_v33, 1  ;;  %v1126_v52 = vmul.f32 %v4881_v22, %v1119_v41  ;;  %v1131_v55 = vadd.f32 %v1127_v28, %v1110_v25  ;;  %v3576_v25 = vld [vmem:[#allocation11 + $0x2] ss:$0 sm:$0xff] }
 0x4d4   :  { %v1057_v50 = vadd.f32 %v1053_v2, %v1032_v62  ;;  %v1056_v11 = vadd.f32 %v1052_v26, %v1031_v16  ;;  %v1074_v17 = vmul.f32 %v4867_v13, %v1062_v15  ;;  %v1147_v61 = vmul.f32 %v4886_v46, %v1140_v38 }
 0x4d5   :  { %v1075_v29 = vadd.f32 %v1071_v5, %v1054_v39  ;;  %v1148_v54 = vmul.f32 %v4886_v46, %v1143_v40  ;;  %v1073_v31 = vmul.f32 %v4867_v13, %v1068_v36  ;;  %v1099_v8 = vsel %vm492_vm14, %v1095_v35, %v1092_v51 }
 0x4d6   :  { %v1078_v3 = vadd.f32 %v1074_v17, %v1057_v50  ;;  %v1087_v53 = vmul.f32 %v4873_v9, %v4892_v33  ;;  %v1086_v44 = vmul.f32 %v4873_v9, %v4865_v57  ;;  %v1096_v13 = vsel %vm492_vm14, %v1094_v12, %v1095_v35 }
 0x4d7   :  { %v1088_v43 = vadd.f32 %v1084_v0, %v1075_v29  ;;  %v1152_v45 = vadd.f32 %v1148_v54, %v1131_v55  ;;  %v1077_v59 = vadd.f32 %v1073_v31, %v1056_v11  ;;  %v1103_v56 = vsel %vm269_vm6, %v1099_v8, 0.0 }
 0x4d8   :  { %v1091_v7 = vadd.f32 %v1087_v53, %v1078_v3  ;;  %v1120_v47 = vsel %vm518_vm11, %v1116_v48, %v1113_v42  ;;  %v1107_v60 = vmul.f32 %v4879_v18, %v1096_v13  ;;  %v1108_v32 = vmul.f32 %v4879_v18, %v1103_v56 }
 0x4d9   :  { %v1109_v6 = vadd.f32 %v1105_v37, %v1088_v43  ;;  %v1090_v9 = vadd.f32 %v1086_v44, %v1077_v59  ;;  %v1124_v12 = vsel %vm275_vm7, %v1120_v47, 0.0  ;;  %v1141_v39 = vsel %vm544_vm12, %v1137_v58, %v1134_v27 }
 0x4da   :  { %v1112_v24 = vadd.f32 %v1108_v32, %v1091_v7  ;;  %v1117_v23 = vsel %vm518_vm11, %v1115_v30, %v1116_v48  ;;  %v1129_v33 = vmul.f32 %v4881_v22, %v1124_v12  ;;  %v1145_v5 = vsel %vm6047_vm0, %v1141_v39, 0.0  ;;  %vm6052_vm0 = vmmov %vm6050_vm1 }
 0x4db   :  { %v1130_v0 = vadd.f32 %v1126_v52, %v1109_v6  ;;  %v1111_v42 = vadd.f32 %v1107_v60, %v1090_v9  ;;  %v1128_v18 = vmul.f32 %v4881_v22, %v1117_v23  ;;  %v1138_v2 = vsel %vm544_vm12, %v1136_v10, %v1137_v58 }
 0x4dc   :  { %v1133_v62 = vadd.f32 %v1129_v33, %v1112_v24  ;;  %v1150_v41 = vmul.f32 %v4886_v46, %v1145_v5  ;;  %v1149_v27 = vmul.f32 %v4886_v46, %v1138_v2 }
 0x4dd   :  { %v1151_v63 = vadd.f32 %v1147_v61, %v1130_v0  ;;  %v1132_v37 = vadd.f32 %v1128_v18, %v1111_v42 }
 0x4de   :  { %v1154_v30 = vadd.f32 %v1150_v41, %v1133_v62  ;;  %v3526_v41 = vld [vmem:[%s6009_s6 + $0x38] sm:$0xff] }
 0x4df   :  { %v1155_v51 = vpack.c.bf16 %v1152_v45, %v1151_v63  ;;  %v1153_v19 = vadd.f32 %v1149_v27, %v1132_v37  ;;  %1483 = vmatpush.bf16.msra.mxu3 %v3526_v41 }
 0x4e1   :  { %3420 = vmatmul.msk.bf16.vlgmr.msra.gmra.mxu2 %vm6046_vm2, %v1155_v51  ;;  %v1156_v29 = vpack.c.bf16 %v1154_v30, %v1153_v19  ;;  %vm6051_vm2 = vmmov %vm6050_vm1  ;;  %v3525_v19 = vld [vmem:[%s6009_s6 + $0x30] sm:$0xff] }
 0x4e3   :  { %1484 = vmatpush.bf16.msra.mxu3 %v3525_v19 }
 0x4f1   :  { %3421 = vmatmul.msk.bf16.gmra.mxu2 %vm6048_vm13, %v1156_v29  ;;  %vm6053_vm13 = vmmov %vm6052_vm0 }
 0x564   :  { %v1191_v16 = vpop.f32.mrf.mxu2 }
 0x565   :  { %v1192_v26 = vadd.f32 %v3576_v25, %v1191_v16 }
 0x567   :  { %v1201_v22 = vmax.f32 %v1192_v26, 0.0 }
 0x569   :  { %v5024_v28 = vadd.f32 %v1201_v22, %v4782_v14  ;;  %v5076_v22 = vld [vmem:[#allocation8 + $0x3] ss:$0 sm:$0xff] }
 0x56b   :  { %v1211_v57 = vsel %vm6049_vm15, %v5024_v28, 0.0  ;;  %vm6054_vm15 = vmmov %vm6052_vm0 }
 0x56c   :  { %v1193_v10 = vpop.f32.mrf.mxu2  ;;  %1212 = vadd.xlane.f32.xlu0 %v1211_v57 }
 0x56d   :  { %v1194_v38 = vadd.f32 %v3576_v25, %v1193_v10 }
 0x56f   :  { %v1202_v40 = vmax.f32 %v1194_v38, 0.0 }
 0x571   :  { %v5029_v46 = vadd.f32 %v1202_v40, %v4787_v21 }
 0x573   :  { %v1214_v15 = vsel %vm6050_vm1, %v5029_v46, 0.0  ;;  %vm6055_vm1 = vmmov %vm6052_vm0 }
 0x574   :  { %1215 = vadd.xlane.f32.xlu2 %v1214_v15  ;;  %v1196_v43 = vpop.f32.mrf.mxu2 }
 0x575   :  { %v1197_v50 = vadd.f32 %v3576_v25, %v1196_v43 }
 0x577   :  { %v1203_v36 = vmax.f32 %v1197_v50, 0.0 }
 0x579   :  { %v5034_v14 = vadd.f32 %v1203_v36, %v4792_v49  ;;  %v3578_v36 = vld [vmem:[#allocation10 + $0x3] ss:$0 sm:$0xff] }
 0x57b   :  { %v1217_v35 = vsel %vm6051_vm2, %v5034_v14, 0.0  ;;  %vm6056_vm2 = vmmov %vm6052_vm0 }
 0x57c   :  { %v1198_v52 = vpop.f32.mrf.mxu2  ;;  %1218 = vadd.xlane.f32.xlu0 %v1217_v35 }
 0x57d   :  { %v1199_v6 = vadd.f32 %v3576_v25, %v1198_v52 }
 0x57f   :  { %v1204_v55 = vmax.f32 %v1199_v6, 0.0 }
 0x581   :  { %v5039_v21 = vadd.f32 %v1204_v55, %v4797_v4 }
 0x583   :  { %v1220_v11 = vsel %vm6052_vm0, %v5039_v21, 0.0 }
 0x584   :  { %1221 = vadd.xlane.f32.xlu1 %v1220_v11 }
 0x5df   :  { %v1213_v17 = vpop.xlane.xlu0 %1212 }
 0x5e0   :  { %v1223_v61 = vmul.f32 %v1213_v17, %v4277_v20 }
 0x5e2   :  { %v1227_v49 = vsub.f32 %v5024_v28, %v1223_v61 }
 0x5e4   :  { %v1231_v54 = vmul.f32 %v1227_v49, %v1227_v49 }
 0x5e6   :  { %v1235_v31 = vsel %vm6053_vm13, %v1231_v54, 0.0 }
 0x5e7   :  { %v1216_v0 = vpop.xlane.xlu2 %1215  ;;  %1236 = vadd.xlane.f32.xlu1 %v1235_v31 }
 0x5e8   :  { %v1224_v3 = vmul.f32 %v1216_v0, %v4277_v20  ;;  %v3422_v0 = vld [vmem:[%s6008_s5 + $0x18] sm:$0x7f]  ;;  %s3364_s5 = sshll.u32 %s6022_s19, 4  ;;  %s3365_s5 = int_to_ptr.hbm [resolvable:$true] %s3364_s5 }
 0x5e9   :  { %v5121_v19 = vperm.slane %v3422_v0, 4 }
 0x5ea   :  { %v5048_v8 = vsub.f32 %v5029_v46, %v1224_v3 }
 0x5ec   :  { %v1232_v4 = vmul.f32 %v5048_v8, %v5048_v8 }
 0x5ee   :  { %v1238_v48 = vsel %vm6054_vm15, %v1232_v4, 0.0 }
 0x5ef   :  { %1239 = vadd.xlane.f32.xlu0 %v1238_v48  ;;  %v1219_v63 = vpop.xlane.xlu0 %1218  ;;  %v5089_v48 = vperm.slane %v3422_v0, 0 }
 0x5f0   :  { %v1225_v45 = vmul.f32 %v1219_v63, %v4277_v20 }
 0x5f2   :  { %v5055_v59 = vsub.f32 %v5034_v14, %v1225_v45 }
 0x5f4   :  { %v1233_v53 = vmul.f32 %v5055_v59, %v5055_v59 }
 0x5f6   :  { %v1241_v44 = vsel %vm6055_vm1, %v1233_v53, 0.0 }
 0x5f7   :  { %v1222_v13 = vpop.xlane.xlu1 %1221  ;;  %1242 = vadd.xlane.f32.xlu1 %v1241_v44 }
 0x5f8   :  { %v1226_v56 = vmul.f32 %v1222_v13, %v4277_v20 }
 0x5fa   :  { %v5062_v51 = vsub.f32 %v5039_v21, %v1226_v56 }
 0x5fc   :  { %v1234_v7 = vmul.f32 %v5062_v51, %v5062_v51 }
 0x5fe   :  { %v1244_v47 = vsel %vm6056_vm2, %v1234_v7, 0.0 }
 0x5ff   :  { %1245 = vadd.xlane.f32.xlu2 %v1244_v47 }
 0x65a   :  { %v1237_v58 = vpop.xlane.xlu1 %1236 }
 0x65b   :  { %v1247_v9 = vmul.f32 %v1237_v58, %v4277_v20 }
 0x65d   :  { %v1251_v60 = vadd.f32 1e-05, %v1247_v9 }
 0x65f   :  { %3612 = vrsqrt.f32 %v1251_v60  ;;  %vm1261_vm13 = vweird.f32 %v1251_v60 }
 0x662   :  { %v1240_v32 = vpop.xlane.xlu0 %1239 }
 0x663   :  { %v1248_v12 = vmul.f32 %v1240_v32, %v4277_v20 }
 0x665   :  { %v3613_v24 = vpop.eup %3612  ;;  %v1252_v39 = vadd.f32 1e-05, %v1248_v12 }
 0x666   :  { %v1256_v23 = vmul.f32 %v3613_v24, %v1251_v60  ;;  %vm1262_vm0 = vweird.f32 %v3613_v24 }
 0x667   :  { %3614 = vrsqrt.f32 %v1252_v39  ;;  %vm1263_vm15 = vmor %vm1261_vm13, %vm1262_vm0  ;;  %vm1271_vm2 = vweird.f32 %v1252_v39 }
 0x668   :  { %v1257_v42 = vmul.f32 %v3613_v24, %v1256_v23 }
 0x66a   :  { %v1258_v33 = vmul.f32 0.5, %v1257_v42  ;;  %v1243_v5 = vpop.xlane.xlu1 %1242  ;;  %v5109_v42 = vperm.slane %v3422_v0, 2 }
 0x66b   :  { %v1249_v18 = vmul.f32 %v1243_v5, %v4277_v20 }
 0x66c   :  { %v1259_v62 = vsub.f32 1.5, %v1258_v33 }
 0x66d   :  { %v3615_v2 = vpop.eup %3614  ;;  %v1253_v37 = vadd.f32 1e-05, %v1249_v18 }
 0x66e   :  { %v1260_v27 = vmul.f32 %v3613_v24, %v1259_v62  ;;  %v1266_v30 = vmul.f32 %v3615_v2, %v1252_v39  ;;  %vm1272_vm1 = vweird.f32 %v3615_v2  ;;  %v5115_v62 = vperm.slane %v3422_v0, 3 }
 0x66f   :  { %3616 = vrsqrt.f32 %v1253_v37  ;;  %vm1273_vm0 = vmor %vm1271_vm2, %vm1272_vm1 }
 0x670   :  { %v1264_v29 = vsel %vm1263_vm15, %v3613_v24, %v1260_v27  ;;  %v1267_v25 = vmul.f32 %v3615_v2, %v1266_v30  ;;  %vm1281_vm15 = vweird.f32 %v1253_v37 }
 0x671   :  { %v1295_v57 = vmul.f32 %v1264_v29, %v1227_v49  ;;  %v5123_v29 = vperm.slane %v3422_v0, 5 }
 0x672   :  { %v1268_v16 = vmul.f32 0.5, %v1267_v25  ;;  %v1246_v26 = vpop.xlane.xlu2 %1245 }
 0x673   :  { %v1250_v10 = vmul.f32 %v1246_v26, %v4277_v20  ;;  %v1300_v35 = vmul.f32 %v5076_v22, %v1295_v57  ;;  %v5128_v57 = vperm.slane %v3422_v0, 6 }
 0x674   :  { %v1269_v38 = vsub.f32 1.5, %v1268_v16 }
 0x675   :  { %v3617_v40 = vpop.eup %3616  ;;  %v1254_v15 = vadd.f32 1e-05, %v1250_v10  ;;  %v5081_v17 = vadd.f32 %v3578_v36, %v1300_v35 }
 0x676   :  { %v1270_v43 = vmul.f32 %v3615_v2, %v1269_v38  ;;  %v1276_v50 = vmul.f32 %v3617_v40, %v1253_v37  ;;  %vm1282_vm13 = vweird.f32 %v3617_v40 }
 0x677   :  { %3618 = vrsqrt.f32 %v1254_v15  ;;  %vm1283_vm1 = vmor %vm1281_vm15, %vm1282_vm13  ;;  %v1311_v63 = vrot.slane %v5081_v17, 5  ;;  %v1332_v53 = vrot.slane %v5081_v17, 6  ;;  %v1353_v23 = vrot.slane %v5081_v17, 7 }
 0x678   :  { %v1274_v52 = vsel %vm1273_vm0, %v3615_v2, %v1270_v43  ;;  %v1277_v6 = vmul.f32 %v3617_v40, %v1276_v50  ;;  %vm1291_vm0 = vweird.f32 %v1254_v15  ;;  %v1379_v26 = vmul.f32 %v5115_v62, %v5081_v17 }
 0x679   :  { %v1296_v55 = vmul.f32 %v1274_v52, %v5048_v8  ;;  %v5091_v8 = vperm.slane %v3422_v0, 1  ;;  %v1408_v10 = vrot.slane %v5081_v17, 2 }
 0x67a   :  { %v1278_v11 = vmul.f32 0.5, %v1277_v6 }
 0x67b   :  { %v1301_v61 = vmul.f32 %v5076_v22, %v1296_v55 }
 0x67c   :  { %v1279_v49 = vsub.f32 1.5, %v1278_v11 }
 0x67d   :  { %v3619_v54 = vpop.eup %3618  ;;  %v5084_v31 = vadd.f32 %v3578_v36, %v1301_v61 }
 0x67e   :  { %v1280_v3 = vmul.f32 %v3617_v40, %v1279_v49  ;;  %v1286_v4 = vmul.f32 %v3619_v54, %v1254_v15  ;;  %vm1292_vm2 = vweird.f32 %v3619_v54 }
 0x67f   :  { %v1312_v45 = vrot.slane %v5084_v31, 5  ;;  %v1333_v44 = vrot.slane %v5084_v31, 6  ;;  %v1354_v60 = vrot.slane %v5084_v31, 7  ;;  %vm1293_vm13 = vmor %vm1291_vm0, %vm1292_vm2  ;;  %v1388_v30 = vrot.slane %v5084_v31, 1 }
 0x680   :  { %v1284_v13 = vsel %vm1283_vm1, %v3617_v40, %v1280_v3  ;;  %v1287_v56 = vmul.f32 %v3619_v54, %v1286_v4  ;;  %v1380_v43 = vmul.f32 %v5115_v62, %v5084_v31  ;;  %v1409_v52 = vrot.slane %v5084_v31, 2 }
 0x681   :  { %v1297_v7 = vmul.f32 %v1284_v13, %v5055_v59  ;;  %v1317_v47 = vsel %vm397_vm8, %v1311_v63, %v1312_v45  ;;  %v1338_v58 = vsel %vm423_vm9, %v1332_v53, %v1333_v44  ;;  %v1359_v5 = vsel %vm449_vm10, %v1353_v23, %v1354_v60 }
 0x682   :  { %v1288_v9 = vmul.f32 0.5, %v1287_v56  ;;  %v1325_v12 = vmul.f32 %v5089_v48, %v1317_v47  ;;  %v1346_v24 = vmul.f32 %v5091_v8, %v1338_v58  ;;  %v1367_v41 = vmul.f32 %v5109_v42, %v1359_v5 }
 0x683   :  { %v1302_v32 = vmul.f32 %v5076_v22, %v1297_v7 }
 0x684   :  { %v1289_v39 = vsub.f32 1.5, %v1288_v9  ;;  %v1350_v18 = vadd.f32 %v1346_v24, %v1325_v12 }
 0x685   :  { %v5107_v59 = vadd.f32 %v3578_v36, %v1302_v32 }
 0x686   :  { %v1290_v33 = vmul.f32 %v3619_v54, %v1289_v39  ;;  %v1371_v16 = vadd.f32 %v1367_v41, %v1350_v18 }
 0x687   :  { %v1389_v27 = vrot.slane %v5107_v59, 1  ;;  %v1410_v38 = vrot.slane %v5107_v59, 2  ;;  %v1313_v40 = vrot.slane %v5107_v59, 5  ;;  %v1334_v50 = vrot.slane %v5107_v59, 6 }
 0x688   :  { %v1294_v2 = vsel %vm1293_vm13, %v3619_v54, %v1290_v33  ;;  %v1431_v6 = vrot.slane %v5107_v59, 3  ;;  %v1384_v49 = vadd.f32 %v1380_v43, %v1371_v16  ;;  %v1355_v4 = vrot.slane %v5107_v59, 7 }
 0x689   :  { %v1298_v37 = vmul.f32 %v1294_v2, %v5062_v51  ;;  %v1387_v51 = vrot.slane %v5081_v17, 1  ;;  %v1413_v0 = vsel %vm518_vm11, %v1409_v52, %v1410_v38  ;;  %v1316_v3 = vsel %vm397_vm8, %v1312_v45, %v1313_v40 }
 0x68a   :  { %v1337_v47 = vsel %vm423_vm9, %v1333_v44, %v1334_v50  ;;  %v1417_v24 = vsel %vm275_vm7, %v1413_v0, 0.0  ;;  %v1321_v39 = vsel %vm242_vm3, %v1316_v3, 0.0  ;;  %v1358_v16 = vsel %vm449_vm10, %v1354_v60, %v1355_v4 }
 0x68b   :  { %v1303_v25 = vmul.f32 %v5076_v22, %v1298_v37  ;;  %v1392_v22 = vsel %vm492_vm14, %v1388_v30, %v1389_v27  ;;  %v1393_v35 = vsel %vm492_vm14, %v1387_v51, %v1388_v30  ;;  %v1342_v33 = vsel %vm248_vm4, %v1337_v47, 0.0 }
 0x68c   :  { %v1396_v54 = vsel %vm269_vm6, %v1392_v22, 0.0  ;;  %v1400_v41 = vmul.f32 %v5121_v19, %v1393_v35  ;;  %v1414_v30 = vsel %vm518_vm11, %v1408_v10, %v1409_v52  ;;  %v1326_v22 = vmul.f32 %v5089_v48, %v1321_v39 }
 0x68d   :  { %v5134_v15 = vadd.f32 %v3578_v36, %v1303_v25  ;;  %v1430_v36 = vrot.slane %v5084_v31, 3  ;;  %v1401_v12 = vmul.f32 %v5121_v19, %v1396_v54  ;;  %v1429_v25 = vrot.slane %v5081_v17, 3 }
 0x68e   :  { %v1422_v35 = vmul.f32 %v5123_v29, %v1417_v24  ;;  %v1363_v60 = vsel %vm254_vm5, %v1358_v16, 0.0 }
 0x68f   :  { %v1314_v55 = vrot.slane %v5134_v15, 5  ;;  %v1335_v11 = vrot.slane %v5134_v15, 6  ;;  %v1356_v61 = vrot.slane %v5134_v15, 7  ;;  %v1434_v44 = vsel %vm544_vm12, %v1430_v36, %v1431_v6 }
 0x690   :  { %v1405_v43 = vadd.f32 %v1401_v12, %v1384_v49  ;;  %v1411_v47 = vrot.slane %v5134_v15, 2  ;;  %v1432_v24 = vrot.slane %v5134_v15, 3 }
 0x691   :  { %v1318_v13 = vsel %vm397_vm8, %v1314_v55, %v1311_v63  ;;  %v1339_v56 = vsel %vm423_vm9, %v1335_v11, %v1332_v53  ;;  %v1360_v7 = vsel %vm449_vm10, %v1356_v61, %v1353_v23  ;;  %v1315_v63 = vsel %vm397_vm8, %v1313_v40, %v1314_v55 }
 0x692   :  { %v1319_v58 = vsel %vm242_vm3, %v1318_v13, 0.0  ;;  %v1340_v45 = vsel %vm248_vm4, %v1339_v56, 0.0  ;;  %v1361_v9 = vsel %vm254_vm5, %v1360_v7, 0.0  ;;  %v1336_v23 = vsel %vm423_vm9, %v1334_v50, %v1335_v11 }
 0x693   :  { %v1324_v53 = vmul.f32 %v5089_v48, %v1319_v58  ;;  %v1345_v32 = vmul.f32 %v5091_v8, %v1340_v45  ;;  %v1366_v18 = vmul.f32 %v5109_v42, %v1361_v9  ;;  %v1327_v2 = vmul.f32 %v5089_v48, %v1315_v63 }
 0x694   :  { %v1348_v37 = vmul.f32 %v5091_v8, %v1336_v23  ;;  %v1347_v50 = vmul.f32 %v5091_v8, %v1342_v33  ;;  %v1435_v55 = vsel %vm544_vm12, %v1429_v25, %v1430_v36  ;;  %vm6057_vm8 = vcmp.lt.s32.totalorder %v4348_v34, 13  ;;  %v3579_v34 = vld [vmem:[#allocation11 + $0x3] ss:$0 sm:$0xff] }
 0x695   :  { %v1349_v5 = vadd.f32 %v1345_v32, %v1324_v53  ;;  %v1438_v52 = vsel %vm6057_vm8, %v1434_v44, 0.0  ;;  %v1357_v31 = vsel %vm449_vm10, %v1355_v4, %v1356_v61  ;;  %v1390_v48 = vrot.slane %v5134_v15, 1  ;;  %vm6059_vm10 = vmmov %vm6057_vm8 }
 0x696   :  { %v1352_v54 = vadd.f32 %v1348_v37, %v1327_v2  ;;  %v1421_v8 = vmul.f32 %v5123_v29, %v1414_v30  ;;  %v1426_v0 = vadd.f32 %v1422_v35, %v1405_v43  ;;  %v1351_v3 = vadd.f32 %v1347_v50, %v1326_v22 }
 0x697   :  { %v1370_v40 = vadd.f32 %v1366_v18, %v1349_v5  ;;  %v1369_v36 = vmul.f32 %v5109_v42, %v1357_v31  ;;  %v1442_v13 = vmul.f32 %v5128_v57, %v1435_v55  ;;  %v1443_v56 = vmul.f32 %v5128_v57, %v1438_v52 }
 0x698   :  { %v1368_v61 = vmul.f32 %v5109_v42, %v1363_v60  ;;  %v1394_v7 = vsel %vm492_vm14, %v1390_v48, %v1387_v51  ;;  %v1382_v63 = vmul.f32 %v5115_v62, %v5134_v15  ;;  %v1381_v53 = vmul.f32 %v5115_v62, %v5107_v59 }
 0x699   :  { %v1383_v11 = vadd.f32 %v1379_v26, %v1370_v40  ;;  %v1373_v4 = vadd.f32 %v1369_v36, %v1352_v54  ;;  %v1447_v45 = vadd.f32 %v1443_v56, %v1426_v0  ;;  %v1391_v42 = vsel %vm492_vm14, %v1389_v27, %v1390_v48 }
 0x69a   :  { %v1372_v9 = vadd.f32 %v1368_v61, %v1351_v3  ;;  %v1398_v32 = vsel %vm269_vm6, %v1394_v7, 0.0  ;;  %v1415_v44 = vsel %vm518_vm11, %v1411_v47, %v1408_v10  ;;  %vm6058_vm9 = vcmask 261120  }
 0x69b   :  { %v1404_v49 = vadd.f32 %v1400_v41, %v1383_v11  ;;  %v1386_v12 = vadd.f32 %v1382_v63, %v1373_v4  ;;  %v1402_v39 = vmul.f32 %v5121_v19, %v1391_v42  ;;  %v1403_v23 = vmul.f32 %v5121_v19, %v1398_v32  ;;  %vm6060_vm14 = vmmov %vm6058_vm9 }
 0x69c   :  { %v1385_v62 = vadd.f32 %v1381_v53, %v1372_v9  ;;  %v1419_v27 = vsel %vm275_vm7, %v1415_v44, 0.0  ;;  %v1436_v5 = vsel %vm544_vm12, %v1432_v24, %v1429_v25  ;;  %v1412_v17 = vsel %vm518_vm11, %v1410_v38, %v1411_v47  ;;  %vm6061_vm3 = vmmov %vm6058_vm9 }
 0x69d   :  { %v1425_v26 = vadd.f32 %v1421_v8, %v1404_v49  ;;  %v1407_v33 = vadd.f32 %v1403_v23, %v1386_v12  ;;  %v1424_v15 = vmul.f32 %v5123_v29, %v1419_v27  ;;  %v1440_v18 = vsel %vm6059_vm10, %v1436_v5, 0.0  ;;  %vm6062_vm4 = vmmov %vm6061_vm3 }
 0x69e   :  { %v1406_v10 = vadd.f32 %v1402_v39, %v1385_v62  ;;  %v1423_v19 = vmul.f32 %v5123_v29, %v1412_v17  ;;  %v1433_v37 = vsel %vm544_vm12, %v1431_v6, %v1432_v24  ;;  %v1445_v30 = vmul.f32 %v5128_v57, %v1440_v18  ;;  %vm6063_vm5 = vmmov %vm6061_vm3  ;;  %v3528_v62 = vld [vmem:[#allocation13 + $0x8] sm:$0xff]  ;;  %v3527_v18 = vld [vmem:[#allocation13] sm:$0xff] }
 0x69f   :  { %v1446_v58 = vadd.f32 %v1442_v13, %v1425_v26  ;;  %v1428_v2 = vadd.f32 %v1424_v15, %v1407_v33  ;;  %v1444_v25 = vmul.f32 %v5128_v57, %v1433_v37  ;;  %vm6064_vm6 = vmmov %vm6061_vm3  ;;  %1638 = vmatpush.bf16.msrb.mxu0 %v3528_v62  ;;  %v3530_v15 = vld [vmem:[#allocation14 + $0x8] sm:$0xff] }
 0x6a0   :  { %v1427_v41 = vadd.f32 %v1423_v19, %v1406_v10  ;;  %vm6065_vm7 = vmmov %vm6061_vm3  ;;  %v3532_v10 = vld [vmem:[#allocation16 + $0x8] sm:$0xff]  ;;  %1673 = vmatpush.bf16.msrb.mxu1 %v3530_v15 }
 0x6a1   :  { %v1450_v51 = vpack.c.bf16 %v1447_v45, %v1446_v58  ;;  %v1449_v38 = vadd.f32 %v1445_v30, %v1428_v2  ;;  %vm6066_vm11 = vmmov %vm6061_vm3  ;;  %1708 = vmatpush.bf16.msrb.mxu2 %v3532_v10  ;;  %v3531_v30 = vld [vmem:[#allocation16] sm:$0xff] }
 0x6a2   :  { %v1448_v16 = vadd.f32 %v1444_v25, %v1427_v41  ;;  %vm6067_vm12 = vmmov %vm6061_vm3  ;;  %v3529_v41 = vld [vmem:[#allocation14] sm:$0xff] }
 0x6a3   :  { %3435 = vmatmul.msk.bf16.vlgmr.msra.gmra.mxu3 %vm6058_vm9, %v1450_v51  ;;  %vm6068_vm15 = vmmov %vm6061_vm3  ;;  %1639 = vmatpush.bf16.msrb.mxu0 %v3527_v18 }
 0x6a4   :  { %v1451_v40 = vpack.c.bf16 %v1449_v38, %v1448_v16  ;;  %1674 = vmatpush.bf16.msrb.mxu1 %v3529_v41 }
 0x6a5   :  { %1709 = vmatpush.bf16.msrb.mxu2 %v3531_v30 }
 0x6b3   :  { %3436 = vmatmul.msk.bf16.gmra.mxu3 %vm6060_vm14, %v1451_v40 }
 0x726   :  { %v1486_v43 = vpop.f32.mrf.mxu3 }
 0x727   :  { %v1487_v22 = vadd.f32 %v3579_v34, %v1486_v43 }
 0x729   :  { %v1496_v29 = vmax.f32 %v1487_v22, 0.0 }
 0x72b   :  { %v5266_v50 = vadd.f32 %v1496_v29, %v5024_v28 }
 0x72d   :  { %v1506_v1 = vsel %vm6061_vm3, %v5266_v50, 0.0 }
 0x72e   :  { %v1488_v59 = vpop.f32.mrf.mxu3  ;;  %1507 = vadd.xlane.f32.xlu2 %v1506_v1 }
 0x72f   :  { %v1489_v6 = vadd.f32 %v3579_v34, %v1488_v59 }
 0x731   :  { %v1497_v35 = vmax.f32 %v1489_v6, 0.0 }
 0x733   :  { %v5271_v57 = vadd.f32 %v1497_v35, %v5029_v46 }
 0x735   :  { %v1509_v55 = vsel %vm6062_vm4, %v5271_v57, 0.0 }
 0x736   :  { %1510 = vadd.xlane.f32.xlu0 %v1509_v55  ;;  %v1491_v52 = vpop.f32.mrf.mxu3 }
 0x737   :  { %v1492_v31 = vadd.f32 %v3579_v34, %v1491_v52 }
 0x739   :  { %v1498_v11 = vmax.f32 %v1492_v31, 0.0  ;;  %v3580_v31 = vld [vmem:[%s6011_s8] ss:$0 sm:$0xff]  ;;  %s4092_s8 = smov 120  }
 0x73b   :  { %v5276_v28 = vadd.f32 %v1498_v11, %v5034_v14 }
 0x73d   :  { %v1512_v54 = vsel %vm6063_vm5, %v5276_v28, 0.0  ;;  %vm6069_vm5 = vmmov %vm6062_vm4 }
 0x73e   :  { %v1493_v60 = vpop.f32.mrf.mxu3  ;;  %1513 = vadd.xlane.f32.xlu1 %v1512_v54 }
 0x73f   :  { %v1494_v48 = vadd.f32 %v3579_v34, %v1493_v60 }
 0x741   :  { %v1499_v8 = vmax.f32 %v1494_v48, 0.0 }
 0x743   :  { %v5281_v46 = vadd.f32 %v1499_v8, %v5039_v21 }
 0x745   :  { %v1515_v49 = vsel %vm6064_vm6, %v5281_v46, 0.0  ;;  %vm6070_vm6 = vmmov %vm6062_vm4 }
 0x746   :  { %1516 = vadd.xlane.f32.xlu2 %v1515_v49 }
 0x7a1   :  { %v1508_v0 = vpop.xlane.xlu2 %1507 }
 0x7a2   :  { %v1518_v3 = vmul.f32 %v1508_v0, %v4277_v20  ;;  %v3581_v0 = vld [vmem:[%s6012_s9] ss:$0 sm:$0xff]  ;;  %s4093_s9 = smov 124  }
 0x7a4   :  { %v5287_v14 = vsub.f32 %v5266_v50, %v1518_v3 }
 0x7a6   :  { %v1526_v36 = vmul.f32 %v5287_v14, %v5287_v14 }
 0x7a8   :  { %v1530_v13 = vsel %vm6065_vm7, %v1526_v36, 0.0 }
 0x7a9   :  { %v1511_v56 = vpop.xlane.xlu0 %1510  ;;  %1531 = vadd.xlane.f32.xlu0 %v1530_v13 }
 0x7aa   :  { %v1519_v21 = vmul.f32 %v1511_v56, %v4277_v20 }
 0x7ac   :  { %v5294_v61 = vsub.f32 %v5271_v57, %v1519_v21 }
 0x7ae   :  { %v1527_v26 = vmul.f32 %v5294_v61, %v5294_v61 }
 0x7b0   :  { %v1533_v4 = vsel %vm6066_vm11, %v1527_v26, 0.0 }
 0x7b1   :  { %1534 = vadd.xlane.f32.xlu1 %v1533_v4  ;;  %v1514_v7 = vpop.xlane.xlu1 %1513 }
 0x7b2   :  { %v1520_v47 = vmul.f32 %v1514_v7, %v4277_v20 }
 0x7b4   :  { %v5301_v58 = vsub.f32 %v5276_v28, %v1520_v47 }
 0x7b6   :  { %v1528_v45 = vmul.f32 %v5301_v58, %v5301_v58 }
 0x7b8   :  { %v1536_v9 = vsel %vm6067_vm12, %v1528_v45, 0.0 }
 0x7b9   :  { %v1517_v63 = vpop.xlane.xlu2 %1516  ;;  %1537 = vadd.xlane.f32.xlu2 %v1536_v9 }
 0x7ba   :  { %v1521_v53 = vmul.f32 %v1517_v63, %v4277_v20 }
 0x7bc   :  { %v5308_v42 = vsub.f32 %v5281_v46, %v1521_v53 }
 0x7be   :  { %v1529_v32 = vmul.f32 %v5308_v42, %v5308_v42 }
 0x7c0   :  { %v1539_v51 = vsel %vm6068_vm15, %v1529_v32, 0.0  ;;  %vm6071_vm15 = vmmov %vm6062_vm4 }
 0x7c1   :  { %1540 = vadd.xlane.f32.xlu0 %v1539_v51 }
 0x81c   :  { %v1532_v12 = vpop.xlane.xlu0 %1531 }
 0x81d   :  { %v1542_v44 = vmul.f32 %v1532_v12, %v4277_v20 }
 0x81f   :  { %v1546_v24 = vadd.f32 1e-05, %v1542_v44 }
 0x821   :  { %3620 = vrsqrt.f32 %v1546_v24  ;;  %vm1556_vm2 = vweird.f32 %v1546_v24 }
 0x824   :  { %v1535_v39 = vpop.xlane.xlu1 %1534 }
 0x825   :  { %v1543_v23 = vmul.f32 %v1535_v39, %v4277_v20 }
 0x827   :  { %v3621_v27 = vpop.eup %3620  ;;  %v1547_v33 = vadd.f32 1e-05, %v1543_v23 }
 0x828   :  { %v1551_v5 = vmul.f32 %v3621_v27, %v1546_v24  ;;  %vm1557_vm1 = vweird.f32 %v3621_v27 }
 0x829   :  { %3622 = vrsqrt.f32 %v1547_v33  ;;  %vm1558_vm0 = vmor %vm1556_vm2, %vm1557_vm1  ;;  %vm1566_vm8 = vweird.f32 %v1547_v33 }
 0x82a   :  { %v1552_v17 = vmul.f32 %v3621_v27, %v1551_v5  ;;  %vm6072_vm1 = vmmov %vm6062_vm4 }
 0x82b   :  { %vm6073_vm2 = vmmov %vm6072_vm1 }
 0x82c   :  { %v1553_v19 = vmul.f32 0.5, %v1552_v17  ;;  %v1538_v2 = vpop.xlane.xlu2 %1537 }
 0x82d   :  { %v1544_v37 = vmul.f32 %v1538_v2, %v4277_v20 }
 0x82e   :  { %v1554_v25 = vsub.f32 1.5, %v1553_v19 }
 0x82f   :  { %v3623_v38 = vpop.eup %3622  ;;  %v1548_v16 = vadd.f32 1e-05, %v1544_v37 }
 0x830   :  { %v1555_v40 = vmul.f32 %v3621_v27, %v1554_v25  ;;  %v1561_v34 = vmul.f32 %v3623_v38, %v1547_v33  ;;  %vm1567_vm13 = vweird.f32 %v3623_v38 }
 0x831   :  { %3624 = vrsqrt.f32 %v1548_v16  ;;  %vm1568_vm9 = vmor %vm1566_vm8, %vm1567_vm13  ;;  %vm1576_vm14 = vweird.f32 %v1548_v16 }
 0x832   :  { %v1562_v43 = vmul.f32 %v3623_v38, %v1561_v34  ;;  %v1559_v22 = vsel %vm1558_vm0, %v3621_v27, %v1555_v40  ;;  %vm1757_vm0 = vcmask 31744  }
 0x833   :  { %v1590_v55 = vmul.f32 %v1559_v22, %v5287_v14 }
 0x834   :  { %v1563_v29 = vmul.f32 0.5, %v1562_v43  ;;  %v1541_v1 = vpop.xlane.xlu0 %1540 }
 0x835   :  { %v1545_v59 = vmul.f32 %v1541_v1, %v4277_v20  ;;  %v1597_v49 = vmul.f32 %v3580_v31, %v1590_v55 }
 0x836   :  { %v1564_v6 = vsub.f32 1.5, %v1563_v29 }
 0x837   :  { %v3625_v35 = vpop.eup %3624  ;;  %v1549_v52 = vadd.f32 1e-05, %v1545_v59  ;;  %v1604_v56 = vadd.f32 %v3581_v0, %v1597_v49 }
 0x838   :  { %v1565_v11 = vmul.f32 %v3623_v38, %v1564_v6  ;;  %v1571_v54 = vmul.f32 %v3625_v35, %v1548_v16  ;;  %vm1577_vm10 = vweird.f32 %v3625_v35 }
 0x839   :  { %3626 = vrsqrt.f32 %v1549_v52  ;;  %vm1578_vm3 = vmor %vm1576_vm14, %vm1577_vm10  ;;  %vm1586_vm11 = vweird.f32 %v1549_v52 }
 0x83a   :  { %v1569_v60 = vsel %vm1568_vm9, %v3623_v38, %v1565_v11  ;;  %v1572_v48 = vmul.f32 %v3625_v35, %v1571_v54  ;;  %vm1812_vm9 = vcmask 130048  }
 0x83b   :  { %v1591_v8 = vmul.f32 %v1569_v60, %v5294_v61 }
 0x83c   :  { %v1573_v3 = vmul.f32 0.5, %v1572_v48 }
 0x83d   :  { %v1598_v14 = vmul.f32 %v3580_v31, %v1591_v8 }
 0x83e   :  { %v1574_v36 = vsub.f32 1.5, %v1573_v3 }
 0x83f   :  { %v3627_v13 = vpop.eup %3626  ;;  %v1605_v21 = vadd.f32 %v3581_v0, %v1598_v14 }
 0x840   :  { %v1575_v26 = vmul.f32 %v3625_v35, %v1574_v36  ;;  %v1581_v4 = vmul.f32 %v3627_v13, %v1549_v52  ;;  %vm1587_vm7 = vweird.f32 %v3627_v13 }
 0x841   :  { %v1608_v7 = vpack.c.bf16 %v1605_v21, %v1604_v56  ;;  %vm1588_vm12 = vmor %vm1586_vm11, %vm1587_vm7  ;;  %vm3102_vm7 = vcmask 195584  }
 0x842   :  { %v1582_v47 = vmul.f32 %v3627_v13, %v1581_v4  ;;  %v1579_v61 = vsel %vm1578_vm3, %v3625_v35, %v1575_v26  ;;  %vm3083_vm3 = vcmask 64512   ;;  %vm6079_vm11 = vmmov %vm6072_vm1 }
 0x843   :  { %3445 = vmatmul.msk.bf16.vlgmr.msrb.gmra.mxu0 %vm6062_vm4, %v1608_v7  ;;  %3455 = vmatmul.msk.bf16.vlgmr.msrb.gmra.mxu1 %vm6069_vm5, %v1608_v7  ;;  %v1592_v63 = vmul.f32 %v1579_v61, %v5301_v58  ;;  %vm3088_vm4 = vcmask 97280   ;;  %vm3097_vm5 = vcmask 162816  }
 0x844   :  { %v1583_v45 = vmul.f32 0.5, %v1582_v47  ;;  %3465 = vmatmul.msk.bf16.vlgmr.msrb.gmra.mxu2 %vm6070_vm6, %v1608_v7  ;;  %vm3107_vm6 = vcmask 228352  }
 0x845   :  { %v1599_v12 = vmul.f32 %v3580_v31, %v1592_v63 }
 0x846   :  { %v1584_v9 = vsub.f32 1.5, %v1583_v45 }
 0x847   :  { %v1606_v24 = vadd.f32 %v3581_v0, %v1599_v12 }
 0x848   :  { %v1585_v53 = vmul.f32 %v3627_v13, %v1584_v9 }
 0x84a   :  { %v1589_v32 = vsel %vm1588_vm12, %v3627_v13, %v1585_v53  ;;  %vm6080_vm12 = vmmov %vm6072_vm1 }
 0x84b   :  { %v1593_v51 = vmul.f32 %v1589_v32, %v5308_v42 }
 0x84d   :  { %v1600_v44 = vmul.f32 %v3580_v31, %v1593_v51 }
 0x84f   :  { %v1607_v62 = vadd.f32 %v3581_v0, %v1600_v44 }
 0x851   :  { %v1609_v39 = vpack.c.bf16 %v1607_v62, %v1606_v24  ;;  %v1725_v62 = vld [vmem:[#allocation5] sm:$0x1] }
 0x852   :  { %vm1727_vm13 = vcmp.gt.f32.partialorder %v1725_v62, 0.0 }
 0x853   :  { %3446 = vmatmul.msk.bf16.gmra.mxu0 %vm6071_vm15, %v1609_v39  ;;  %3456 = vmatmul.msk.bf16.gmra.mxu1 %vm6072_vm1, %v1609_v39  ;;  %vm6081_vm15 = vmmov %vm6072_vm1 }
 0x854   :  { %3466 = vmatmul.msk.bf16.gmra.mxu2 %vm6073_vm2, %v1609_v39  ;;  %vm6082_vm2 = vmmov %vm6072_vm1 }
 0x8c0   :  { %v1641_v23 = vpop.f32.mrf.mxu0  ;;  %v1676_v27 = vpop.f32.mrf.mxu1 }
 0x8c1   :  { %v1739_v58 = vpack.c.bf16 %v1641_v23, %v1641_v23  ;;  %v1743_v33 = vpack.c.bf16 %v1676_v27, %v1676_v27 }
 0x8c3   :  { %v1754_v18 = vunpack.c.l.b16 %v1739_v58  ;;  %v1868_v19 = vunpack.c.l.b16 %v1743_v33 }
 0x8c7   :  { %v1711_v5 = vpop.f32.mrf.mxu2 }
 0x8c8   :  { %v1643_v17 = vpop.f32.mrf.mxu0  ;;  %v1678_v10 = vpop.f32.mrf.mxu1  ;;  %v1721_v41 = vmul.f32 0.5, %v1711_v5  ;;  %v4099_v5 = vmov 0  }
 0x8c9   :  { %v1740_v15 = vpack.c.bf16 %v1643_v17, %v1643_v17  ;;  %v1744_v42 = vpack.c.bf16 %v1678_v10, %v1678_v10  ;;  %v1729_v17 = vsel %vm1727_vm13, 1, %v4099_v5 }
 0x8ca   :  { %v1735_v40 = vpack.c.bf16 %v1721_v41, %v1721_v41  ;;  %v1731_v10 = vperm.slane %v1729_v17, 0  ;;  %v1726_v41 = vld [vmem:[#allocation5 + $0x1] sm:$0x1] }
 0x8cb   :  { %v1755_v2 = vunpack.c.l.b16 %v1740_v15  ;;  %v1869_v37 = vunpack.c.l.b16 %v1744_v42  ;;  %vm1728_vm10 = vcmp.gt.f32.partialorder %v1726_v41, 0.0 }
 0x8cc   :  { %v1749_v1 = vunpack.c.l.b16 %v1735_v40  ;;  %vm5405_vm8 = vcmp.eq.s32.totalorder %v1731_v10, 1 }
 0x8cd   :  { %v5333_v30 = vpack.c.b16 %v1755_v2, %v1754_v18  ;;  %v5335_v25 = vpack.c.b16 %v1869_v37, %v1868_v19 }
 0x8cf   :  { %v1713_v38 = vpop.f32.mrf.mxu2  ;;  %1882 = vmatpush.bf16.msra.mxu0 %v5335_v25  ;;  %2069 = vrot.lane.b32.xlu2 %v5333_v30, %s4092_s8  ;;  %v1762_v16 = vsel %vm1757_vm0, %v5333_v30, 0 }
 0x8d0   :  { %v1722_v34 = vmul.f32 0.5, %v1713_v38  ;;  %1919 = vrot.lane.b32.xlu1 %v5333_v30, %s4093_s9  ;;  %v1646_v43 = vpop.f32.mrf.mxu0  ;;  %v1681_v22 = vpop.f32.mrf.mxu1  ;;  %1771 = vmatpush.bf16.xpose.msrb.mxu3 %v1762_v16 }
 0x8d1   :  { %v1741_v35 = vpack.c.bf16 %v1646_v43, %v1646_v43  ;;  %v1745_v55 = vpack.c.bf16 %v1681_v22, %v1681_v22  ;;  %v1730_v43 = vsel %vm1728_vm10, 1, %v4099_v5 }
 0x8d2   :  { %v1736_v29 = vpack.c.bf16 %v1722_v34, %v1722_v34 }
 0x8d3   :  { %v1785_v48 = vunpack.c.l.b16 %v1741_v35  ;;  %v1896_v8 = vunpack.c.l.b16 %v1745_v55 }
 0x8d4   :  { %v1750_v59 = vunpack.c.l.b16 %v1736_v29 }
 0x8d6   :  { %v1751_v6 = vpack.c.b16 %v1750_v59, %v1749_v1 }
 0x8d7   :  { %v1716_v52 = vpop.f32.mrf.mxu2 }
 0x8d8   :  { %1917 = vrot.lane.b32.xlu2 %v1751_v6, %s4093_s9  ;;  %2219 = vrot.lane.b32.xlu1 %v5333_v30, %s4094_s24  ;;  %v1648_v31 = vpop.f32.mrf.mxu0  ;;  %v1683_v11 = vpop.f32.mrf.mxu1  ;;  %v1723_v3 = vmul.f32 0.5, %v1716_v52 }
 0x8d9   :  { %3467 = vmatmul.msk.bf16.vlgmr.msrb.gmra.mxu3 %vm1757_vm0, %v1751_v6  ;;  %v1742_v54 = vpack.c.bf16 %v1648_v31, %v1648_v31  ;;  %v1746_v60 = vpack.c.bf16 %v1683_v11, %v1683_v11 }
 0x8da   :  { %v1737_v21 = vpack.c.bf16 %v1723_v3, %v1723_v3 }
 0x8db   :  { %v1786_v49 = vunpack.c.l.b16 %v1742_v54  ;;  %v1897_v0 = vunpack.c.l.b16 %v1746_v60 }
 0x8dc   :  { %v1780_v7 = vunpack.c.l.b16 %v1737_v21 }
 0x8dd   :  { %v1787_v14 = vpack.c.b16 %v1786_v49, %v1785_v48  ;;  %v5348_v36 = vpack.c.b16 %v1897_v0, %v1896_v8 }
 0x8df   :  { %v1718_v13 = vpop.f32.mrf.mxu2  ;;  %1910 = vmatpush.bf16.msra.mxu1 %v5348_v36  ;;  %1943 = vrot.lane.b32.xlu0 %v1787_v14, %s4093_s9  ;;  %v1792_v56 = vsel %vm1757_vm0, %v1787_v14, 0 }
 0x8e0   :  { %v1724_v26 = vmul.f32 0.5, %v1718_v13  ;;  %2217 = vrot.lane.b32.xlu2 %v1751_v6, %s4094_s24  ;;  %2367 = vrot.lane.b32.xlu1 %v1751_v6, %s4095_s21 }
 0x8e1   :  { %1801 = vmatpush.bf16.xpose.msra.mxu3 %v1792_v56 }
 0x8e2   :  { %v1738_v4 = vpack.c.bf16 %v1724_v26, %v1724_v26 }
 0x8e4   :  { %v1781_v47 = vunpack.c.l.b16 %v1738_v4 }
 0x8e6   :  { %v1782_v61 = vpack.c.b16 %v1781_v47, %v1780_v7 }
 0x8e7   :  { %2067 = vrot.lane.b32.xlu0 %v1751_v6, %s4092_s8 }
 0x8e8   :  { %2243 = vrot.lane.b32.xlu1 %v1787_v14, %s4094_s24  ;;  %2093 = vrot.lane.b32.xlu2 %v1787_v14, %s4092_s8 }
 0x8e9   :  { %3468 = vmatmul.msk.bf16.vlgmr.msra.gmra.mxu3 %vm1757_vm0, %v1782_v61 }
 0x8ef   :  { %2369 = vrot.lane.b32.xlu0 %v5333_v30, %s4095_s21 }
 0x8f0   :  { %1941 = vrot.lane.b32.xlu1 %v1782_v61, %s4093_s9  ;;  %2519 = vrot.lane.b32.xlu2 %v5333_v30, %s4096_s22 }
 0x8f7   :  { %2091 = vrot.lane.b32.xlu0 %v1782_v61, %s4092_s8 }
 0x8f8   :  { %2669 = vrot.lane.b32.xlu1 %v5333_v30, %s4097_s27  ;;  %2543 = vrot.lane.b32.xlu2 %v1787_v14, %s4096_s22 }
 0x8ff   :  { %2393 = vrot.lane.b32.xlu0 %v1787_v14, %s4095_s21 }
 0x900   :  { %2693 = vrot.lane.b32.xlu1 %v1787_v14, %s4097_s27  ;;  %2667 = vrot.lane.b32.xlu2 %v1751_v6, %s4097_s27 }
 0x907   :  { %2517 = vrot.lane.b32.xlu0 %v1751_v6, %s4096_s22 }
 0x908   :  { %2817 = vrot.lane.b32.xlu1 %v1751_v6, %s4098_s4  ;;  %2172 = vrot.lane.b32.xlu2 %v5335_v25, %s4092_s8  ;;  %v1732_v6 = vperm.slane %v1730_v43, 0 }
 0x90a   :  { %vm5425_vm14 = vcmp.eq.s32.totalorder %v1732_v6, 1 }
 0x90f   :  { %2819 = vrot.lane.b32.xlu0 %v5333_v30, %s4098_s4 }
 0x910   :  { %2047 = vrot.lane.b32.xlu1 %v5348_v36, %s4093_s9  ;;  %2197 = vrot.lane.b32.xlu2 %v5348_v36, %s4092_s8 }
 0x917   :  { %2843 = vrot.lane.b32.xlu0 %v1787_v14, %s4098_s4 }
 0x918   :  { %2391 = vrot.lane.b32.xlu1 %v1782_v61, %s4095_s21  ;;  %2241 = vrot.lane.b32.xlu2 %v1782_v61, %s4094_s24 }
 0x91f   :  { %2022 = vrot.lane.b32.xlu0 %v5335_v25, %s4093_s9 }
 0x920   :  { %2347 = vrot.lane.b32.xlu1 %v5348_v36, %s4094_s24  ;;  %2497 = vrot.lane.b32.xlu2 %v5348_v36, %s4095_s21 }
 0x927   :  { %2541 = vrot.lane.b32.xlu0 %v1782_v61, %s4096_s22 }
 0x928   :  { %2472 = vrot.lane.b32.xlu1 %v5335_v25, %s4095_s21  ;;  %2691 = vrot.lane.b32.xlu2 %v1782_v61, %s4097_s27 }
 0x929   :  { %v2070_v45 = vpop.permute.xlu2 %2069 }
 0x92a   :  { %v2075_v51 = vsel %vm1757_vm0, %v2070_v45, 0 }
 0x92f   :  { %2322 = vrot.lane.b32.xlu0 %v5335_v25, %s4094_s24 }
 0x930   :  { %2841 = vrot.lane.b32.xlu2 %v1782_v61, %s4098_s4 }
 0x932   :  { %v1918_v9 = vpop.permute.xlu2 %1917 }
 0x937   :  { %2622 = vrot.lane.b32.xlu0 %v5335_v25, %s4096_s22 }
 0x93a   :  { %v2218_v63 = vpop.permute.xlu2 %2217 }
 0x942   :  { %v1920_v53 = vpop.permute.xlu1 %1919  ;;  %v2094_v12 = vpop.permute.xlu2 %2093 }
 0x943   :  { %v1925_v32 = vsel %vm1757_vm0, %v1920_v53, 0  ;;  %v2099_v33 = vsel %vm1757_vm0, %v2094_v12, 0 }
 0x944   :  { %1934 = vmatpush.bf16.xpose.msra.mxu2 %v1925_v32 }
 0x94a   :  { %v2220_v44 = vpop.permute.xlu1 %2219  ;;  %v2520_v39 = vpop.permute.xlu2 %2519 }
 0x94b   :  { %v2225_v24 = vsel %vm1757_vm0, %v2220_v44, 0  ;;  %3471 = vmatmul.msk.bf16.vlgmr.msra.gmra.mxu2 %vm1757_vm0, %v1918_v9  ;;  %v2525_v31 = vsel %vm1757_vm0, %v2520_v39, 0 }
 0x94c   :  { %2084 = vmatpush.bf16.xpose.msrb.mxu2 %v2075_v51 }
 0x951   :  { %v1944_v23 = vpop.permute.xlu0 %1943 }
 0x952   :  { %v2368_v27 = vpop.permute.xlu1 %2367  ;;  %v1949_v58 = vsel %vm1757_vm0, %v1944_v23, 0  ;;  %v2544_v42 = vpop.permute.xlu2 %2543 }
 0x953   :  { %1958 = vmatpush.bf16.xpose.msrb.mxu3 %v1949_v58  ;;  %v2549_v45 = vsel %vm1757_vm0, %v2544_v42, 0 }
 0x954   :  { %2234 = vmatpush.bf16.xpose.msra.mxu2 %v2225_v24 }
 0x959   :  { %v2068_v15 = vpop.permute.xlu0 %2067 }
 0x95a   :  { %v2244_v18 = vpop.permute.xlu1 %2243  ;;  %v2668_v22 = vpop.permute.xlu2 %2667 }
 0x95b   :  { %2108 = vmatpush.bf16.xpose.msra.mxu3 %v2099_v33  ;;  %3475 = vmatmul.msk.bf16.vlgmr.msrb.gmra.mxu2 %vm1757_vm0, %v2068_v15  ;;  %v2249_v34 = vsel %vm1757_vm0, %v2244_v18, 0 }
 0x95c   :  { %v1773_v2 = vpop.f32.mrf.mxu3 }
 0x95d   :  { %v5412_v37 = vsel %vm5405_vm8, %v1773_v2, -1e+30 }
 0x95e   :  { %v1813_v30 = vsel %vm1812_vm9, %v5412_v37, -inf }
 0x95f   :  { %1814 = vmax.xlane.f32.xlu1 %v1813_v30 }
 0x961   :  { %v2370_v38 = vpop.permute.xlu0 %2369 }
 0x962   :  { %v1942_v16 = vpop.permute.xlu1 %1941  ;;  %v2375_v40 = vsel %vm1757_vm0, %v2370_v38, 0  ;;  %v5435_v60 = vpop.permute.xlu2 %2172 }
 0x963   :  { %3472 = vmatmul.msk.bf16.vlgmr.msrb.gmra.mxu3 %vm1757_vm0, %v1942_v16  ;;  %2384 = vmatpush.bf16.xpose.msrb.mxu2 %v2375_v40 }
 0x964   :  { %v1775_v29 = vpop.f32.mrf.mxu3  ;;  %2258 = vmatpush.bf16.xpose.msrb.mxu3 %v2249_v34 }
 0x965   :  { %v5421_v1 = vsel %vm5405_vm8, %v1775_v29, -1e+30 }
 0x966   :  { %v1816_v59 = vsel %vm1812_vm9, %v5421_v1, -inf }
 0x967   :  { %1817 = vmax.xlane.f32.xlu0 %v1816_v59 }
 0x969   :  { %v2092_v35 = vpop.permute.xlu0 %2091 }
 0x96a   :  { %v2670_v55 = vpop.permute.xlu1 %2669  ;;  %v5447_v56 = vpop.permute.xlu2 %2197 }
 0x96b   :  { %3479 = vmatmul.msk.bf16.vlgmr.msra.gmra.mxu2 %vm1757_vm0, %v2218_v63  ;;  %v2675_v4 = vsel %vm1757_vm0, %v2670_v55, 0 }
 0x96c   :  { %v1803_v11 = vpop.f32.mrf.mxu3  ;;  %2534 = vmatpush.bf16.xpose.msra.mxu2 %v2525_v31 }
 0x96d   :  { %v5433_v54 = vsel %vm5425_vm14, %v1803_v11, -1e+30 }
 0x96e   :  { %v1819_v48 = vsel %vm1812_vm9, %v5433_v54, -inf }
 0x96f   :  { %1820 = vmax.xlane.f32.xlu2 %v1819_v48 }
 0x971   :  { %v2394_v8 = vpop.permute.xlu0 %2393 }
 0x972   :  { %v2694_v49 = vpop.permute.xlu1 %2693  ;;  %v2399_v0 = vsel %vm1757_vm0, %v2394_v8, 0  ;;  %v2242_v47 = vpop.permute.xlu2 %2241 }
 0x973   :  { %3476 = vmatmul.msk.bf16.vlgmr.msra.gmra.mxu3 %vm1757_vm0, %v2092_v35  ;;  %v2699_v51 = vsel %vm1757_vm0, %v2694_v49, 0 }
 0x974   :  { %v1805_v3 = vpop.f32.mrf.mxu3  ;;  %2408 = vmatpush.bf16.xpose.msra.mxu3 %v2399_v0 }
 0x975   :  { %v5443_v14 = vsel %vm5425_vm14, %v1805_v3, -1e+30 }
 0x976   :  { %v1822_v13 = vsel %vm1812_vm9, %v5443_v14, -inf }
 0x977   :  { %1823 = vmax.xlane.f32.xlu1 %v1822_v13 }
 0x979   :  { %v2518_v21 = vpop.permute.xlu0 %2517 }
 0x97a   :  { %v2818_v26 = vpop.permute.xlu1 %2817  ;;  %v5460_v24 = vpop.permute.xlu2 %2497 }
 0x97b   :  { %3483 = vmatmul.msk.bf16.vlgmr.msrb.gmra.mxu2 %vm1757_vm0, %v2368_v27 }
 0x97c   :  { %2684 = vmatpush.bf16.xpose.msrb.mxu2 %v2675_v4 }
 0x981   :  { %v2820_v7 = vpop.permute.xlu0 %2819 }
 0x982   :  { %v2048_v61 = vpop.permute.xlu1 %2047  ;;  %v2825_v63 = vsel %vm1757_vm0, %v2820_v7, 0  ;;  %v2692_v62 = vpop.permute.xlu2 %2691 }
 0x983   :  { %2060 = vmatpush.bf16.msrb.mxu1 %v2048_v61  ;;  %3480 = vmatmul.msk.bf16.vlgmr.msrb.gmra.mxu3 %vm1757_vm0, %v2242_v47 }
 0x984   :  { %2558 = vmatpush.bf16.xpose.msrb.mxu3 %v2549_v45 }
 0x989   :  { %v2844_v9 = vpop.permute.xlu0 %2843 }
 0x98a   :  { %v2392_v32 = vpop.permute.xlu1 %2391  ;;  %v2849_v44 = vsel %vm1757_vm0, %v2844_v9, 0  ;;  %v2842_v23 = vpop.permute.xlu2 %2841 }
 0x98b   :  { %3487 = vmatmul.msk.bf16.vlgmr.msra.gmra.mxu2 %vm1757_vm0, %v2518_v21 }
 0x98c   :  { %2834 = vmatpush.bf16.xpose.msra.mxu2 %v2825_v63 }
 0x991   :  { %v2023_v53 = vpop.permute.xlu0 %2022 }
 0x992   :  { %2035 = vmatpush.bf16.msrb.mxu0 %v2023_v53  ;;  %v5464_v39 = vpop.permute.xlu1 %2347 }
 0x993   :  { %3484 = vmatmul.msk.bf16.vlgmr.msra.gmra.mxu3 %vm1757_vm0, %v2392_v32 }
 0x994   :  { %2708 = vmatpush.bf16.xpose.msra.mxu3 %v2699_v51 }
 0x999   :  { %v2542_v12 = vpop.permute.xlu0 %2541 }
 0x99a   :  { %v5467_v27 = vpop.permute.xlu1 %2472 }
 0x99b   :  { %3491 = vmatmul.msk.bf16.vlgmr.msrb.gmra.mxu2 %vm1757_vm0, %v2668_v22 }
 0x9a1   :  { %v5469_v58 = vpop.permute.xlu0 %2322 }
 0x9a3   :  { %3488 = vmatmul.msk.bf16.vlgmr.msrb.gmra.mxu3 %vm1757_vm0, %v2542_v12 }
 0x9a4   :  { %2858 = vmatpush.bf16.xpose.msrb.mxu3 %v2849_v44 }
 0x9a9   :  { %v5478_v42 = vpop.permute.xlu0 %2622 }
 0x9ab   :  { %3495 = vmatmul.msk.bf16.vlgmr.msra.gmra.mxu2 %vm1757_vm0, %v2818_v26 }
 0x9b3   :  { %3492 = vmatmul.msk.bf16.vlgmr.msra.gmra.mxu3 %vm1757_vm0, %v2692_v62 }
 0x9c3   :  { %3496 = vmatmul.msk.bf16.vlgmr.msrb.gmra.mxu3 %vm1757_vm0, %v2842_v23 }
 0x9ce   :  { %v1936_v33 = vpop.f32.mrf.mxu2 }
 0x9cf   :  { %v5473_v5 = vsel %vm5405_vm8, %v1936_v33, -1e+30 }
 0x9d0   :  { %v1969_v17 = vsel %vm1812_vm9, %v5473_v5, -inf }
 0x9d1   :  { %1970 = vmax.xlane.f32.xlu0 %v1969_v17 }
 0x9d2   :  { %v1815_v10 = vpop.xlane.xlu1 %1814 }
 0x9d3   :  { %v1825_v15 = vsub.f32 %v5412_v37, %v1815_v10 }
 0x9d5   :  { %v1829_v18 = vmul.f32 1.442695, %v1825_v15 }
 0x9d6   :  { %v1938_v2 = vpop.f32.mrf.mxu2 }
 0x9d7   :  { %3628 = vpow2.f32 %v1829_v18  ;;  %v5482_v41 = vsel %vm5405_vm8, %v1938_v2, -1e+30 }
 0x9d8   :  { %v1972_v30 = vsel %vm1812_vm9, %v5482_v41, -inf }
 0x9d9   :  { %1973 = vmax.xlane.f32.xlu2 %v1972_v30 }
 0x9da   :  { %v1818_v16 = vpop.xlane.xlu0 %1817 }
 0x9db   :  { %v1826_v34 = vsub.f32 %v5421_v1, %v1818_v16 }
 0x9dd   :  { %v5486_v38 = vpop.eup %3628  ;;  %v1831_v29 = vmul.f32 1.442695, %v1826_v34 }
 0x9de   :  { %v2086_v40 = vpop.f32.mrf.mxu2  ;;  %v1837_v37 = vsel %vm1812_vm9, %v5486_v38, 0.0 }
 0x9df   :  { %v5494_v59 = vsel %vm5405_vm8, %v2086_v40, -1e+30 }
 0x9e0   :  { %v2119_v1 = vsel %vm1812_vm9, %v5494_v59, -inf }
 0x9e1   :  { %1838 = vadd.xlane.f32.xlu2 %v1837_v37 }
 0x9e2   :  { %v1821_v43 = vpop.xlane.xlu2 %1820 }
 0x9e3   :  { %v1827_v22 = vsub.f32 %v5433_v54, %v1821_v43 }
 0x9e5   :  { %v1833_v6 = vmul.f32 1.442695, %v1827_v22 }
 0x9e6   :  { %v1960_v35 = vpop.f32.mrf.mxu3  ;;  %v2088_v55 = vpop.f32.mrf.mxu2 }
 0x9e7   :  { %3630 = vpow2.f32 %v1833_v6  ;;  %v5498_v31 = vsel %vm5425_vm14, %v1960_v35, -1e+30  ;;  %v5520_v4 = vsel %vm5405_vm8, %v2088_v55, -1e+30 }
 0x9e8   :  { %3632 = vpow2.f32 %v1831_v29  ;;  %v1975_v11 = vsel %vm1812_vm9, %v5498_v31, -inf  ;;  %v2122_v63 = vsel %vm1812_vm9, %v5520_v4, -inf }
 0x9e9   :  { %2120 = vmax.xlane.f32.xlu2 %v2119_v1  ;;  %1976 = vmax.xlane.f32.xlu1 %v1975_v11 }
 0x9ea   :  { %v1824_v26 = vpop.xlane.xlu1 %1823 }
 0x9eb   :  { %v1828_v45 = vsub.f32 %v5443_v14, %v1824_v26 }
 0x9ed   :  { %v5504_v54 = vpop.eup %3630  ;;  %v1835_v53 = vmul.f32 1.442695, %v1828_v45 }
 0x9ee   :  { %v5506_v48 = vpop.eup %3632  ;;  %v1962_v8 = vpop.f32.mrf.mxu3  ;;  %v1843_v3 = vsel %vm1812_vm9, %v5504_v54, 0.0 }
 0x9ef   :  { %v2236_v49 = vpop.f32.mrf.mxu2  ;;  %v5510_v0 = vsel %vm5425_vm14, %v1962_v8, -1e+30  ;;  %v1840_v21 = vsel %vm1812_vm9, %v5506_v48, 0.0  ;;  %3634 = vpow2.f32 %v1835_v53 }
 0x9f0   :  { %v1978_v13 = vsel %vm1812_vm9, %v5510_v0, -inf  ;;  %v5537_v51 = vsel %vm5405_vm8, %v2236_v49, -1e+30 }
 0x9f1   :  { %1844 = vadd.xlane.f32.xlu2 %v1843_v3  ;;  %1979 = vmax.xlane.f32.xlu0 %v1978_v13  ;;  %v2269_v33 = vsel %vm1812_vm9, %v5537_v51, -inf }
 0x9f2   :  { %1841 = vadd.xlane.f32.xlu1 %v1840_v21 }
 0x9f5   :  { %v5549_v17 = vpop.eup %3634 }
 0x9f6   :  { %v2110_v7 = vpop.f32.mrf.mxu3  ;;  %v1846_v30 = vsel %vm1812_vm9, %v5549_v17, 0.0 }
 0x9f7   :  { %v2238_v47 = vpop.f32.mrf.mxu2  ;;  %v5524_v61 = vsel %vm5425_vm14, %v2110_v7, -1e+30 }
 0x9f8   :  { %v2125_v9 = vsel %vm1812_vm9, %v5524_v61, -inf  ;;  %v5533_v32 = vsel %vm5405_vm8, %v2238_v47, -1e+30 }
 0x9f9   :  { %2126 = vmax.xlane.f32.xlu0 %v2125_v9  ;;  %v2272_v23 = vsel %vm1812_vm9, %v5533_v32, -inf }
 0x9fa   :  { %2123 = vmax.xlane.f32.xlu1 %v2122_v63 }
 0x9fe   :  { %v2112_v12 = vpop.f32.mrf.mxu3 }
 0x9ff   :  { %v2386_v44 = vpop.f32.mrf.mxu2  ;;  %v5541_v14 = vsel %vm5425_vm14, %v2112_v12, -1e+30 }
 0xa00   :  { %v2128_v62 = vsel %vm1812_vm9, %v5541_v14, -inf  ;;  %v5565_v40 = vsel %vm5405_vm8, %v2386_v44, -1e+30 }
 0xa01   :  { %2129 = vmax.xlane.f32.xlu2 %v2128_v62  ;;  %2273 = vmax.xlane.f32.xlu0 %v2272_v23  ;;  %v2419_v6 = vsel %vm1812_vm9, %v5565_v40, -inf }
 0xa02   :  { %2270 = vmax.xlane.f32.xlu1 %v2269_v33 }
 0xa06   :  { %v2260_v10 = vpop.f32.mrf.mxu3 }
 0xa07   :  { %v2388_v15 = vpop.f32.mrf.mxu2  ;;  %v5553_v18 = vsel %vm5425_vm14, %v2260_v10, -1e+30 }
 0xa08   :  { %v2275_v2 = vsel %vm1812_vm9, %v5553_v18, -inf  ;;  %v5561_v16 = vsel %vm5405_vm8, %v2388_v15, -1e+30 }
 0xa09   :  { %2276 = vmax.xlane.f32.xlu0 %v2275_v2  ;;  %v2422_v29 = vsel %vm1812_vm9, %v5561_v16, -inf }
 0xa0a   :  { %1847 = vadd.xlane.f32.xlu1 %v1846_v30 }
 0xa0e   :  { %v2262_v34 = vpop.f32.mrf.mxu3 }
 0xa0f   :  { %v2536_v37 = vpop.f32.mrf.mxu2  ;;  %v5569_v43 = vsel %vm5425_vm14, %v2262_v34, -1e+30 }
 0xa10   :  { %v2278_v22 = vsel %vm1812_vm9, %v5569_v43, -inf  ;;  %v5579_v35 = vsel %vm5405_vm8, %v2536_v37, -1e+30 }
 0xa11   :  { %2279 = vmax.xlane.f32.xlu2 %v2278_v22  ;;  %2423 = vmax.xlane.f32.xlu0 %v2422_v29  ;;  %v2569_v8 = vsel %vm1812_vm9, %v5579_v35, -inf }
 0xa12   :  { %2420 = vmax.xlane.f32.xlu1 %v2419_v6 }
 0xa16   :  { %v2410_v55 = vpop.f32.mrf.mxu3 }
 0xa17   :  { %v2538_v1 = vpop.f32.mrf.mxu2  ;;  %v5583_v11 = vsel %vm5425_vm14, %v2410_v55, -1e+30 }
 0xa18   :  { %v2425_v49 = vsel %vm1812_vm9, %v5583_v11, -inf  ;;  %v5591_v3 = vsel %vm5405_vm8, %v2538_v1, -1e+30 }
 0xa19   :  { %2570 = vmax.xlane.f32.xlu2 %v2569_v8  ;;  %v2572_v47 = vsel %vm1812_vm9, %v5591_v3, -inf }
 0xa1a   :  { %2426 = vmax.xlane.f32.xlu1 %v2425_v49 }
 0xa1e   :  { %v2412_v13 = vpop.f32.mrf.mxu3 }
 0xa1f   :  { %v2686_v21 = vpop.f32.mrf.mxu2  ;;  %v5595_v26 = vsel %vm5425_vm14, %v2412_v13, -1e+30 }
 0xa20   :  { %v2428_v7 = vsel %vm1812_vm9, %v5595_v26, -inf  ;;  %v5603_v45 = vsel %vm5405_vm8, %v2686_v21, -1e+30 }
 0xa21   :  { %2429 = vmax.xlane.f32.xlu0 %v2428_v7  ;;  %v2719_v44 = vsel %vm1812_vm9, %v5603_v45, -inf }
 0xa22   :  { %2573 = vmax.xlane.f32.xlu1 %v2572_v47 }
 0xa26   :  { %v2560_v9 = vpop.f32.mrf.mxu3 }
 0xa27   :  { %v2688_v63 = vpop.f32.mrf.mxu2  ;;  %v5607_v53 = vsel %vm5425_vm14, %v2560_v9, -1e+30 }
 0xa28   :  { %v2575_v12 = vsel %vm1812_vm9, %v5607_v53, -inf  ;;  %v5615_v62 = vsel %vm5405_vm8, %v2688_v63, -1e+30 }
 0xa29   :  { %2576 = vmax.xlane.f32.xlu2 %v2575_v12  ;;  %v2722_v15 = vsel %vm1812_vm9, %v5615_v62, -inf }
 0xa2a   :  { %2720 = vmax.xlane.f32.xlu1 %v2719_v44 }
 0xa2e   :  { %v2562_v23 = vpop.f32.mrf.mxu3 }
 0xa2f   :  { %v2836_v33 = vpop.f32.mrf.mxu2  ;;  %v5619_v10 = vsel %vm5425_vm14, %v2562_v23, -1e+30 }
 0xa30   :  { %v2578_v2 = vsel %vm1812_vm9, %v5619_v10, -inf  ;;  %v5639_v55 = vsel %vm5405_vm8, %v2836_v33, -1e+30 }
 0xa31   :  { %2723 = vmax.xlane.f32.xlu2 %v2722_v15  ;;  %2579 = vmax.xlane.f32.xlu0 %v2578_v2  ;;  %v2869_v8 = vsel %vm1812_vm9, %v5639_v55, -inf }
 0xa36   :  { %v2710_v30 = vpop.f32.mrf.mxu3 }
 0xa37   :  { %v2838_v34 = vpop.f32.mrf.mxu2  ;;  %v5627_v37 = vsel %vm5425_vm14, %v2710_v30, -1e+30 }
 0xa38   :  { %v5631_v22 = vsel %vm5405_vm8, %v2838_v34, -1e+30  ;;  %v2725_v29 = vsel %vm1812_vm9, %v5627_v37, -inf }
 0xa39   :  { %v2872_v6 = vsel %vm1812_vm9, %v5631_v22, -inf  ;;  %2726 = vmax.xlane.f32.xlu0 %v2725_v29 }
 0xa3a   :  { %2873 = vmax.xlane.f32.xlu1 %v2872_v6 }
 0xa3e   :  { %v2712_v1 = vpop.f32.mrf.mxu3 }
 0xa3f   :  { %v5645_v13 = vsel %vm5425_vm14, %v2712_v1, -1e+30 }
 0xa40   :  { %v2728_v63 = vsel %vm1812_vm9, %v5645_v13, -inf }
 0xa41   :  { %2870 = vmax.xlane.f32.xlu0 %v2869_v8 }
 0xa44   :  { %v1971_v49 = vpop.xlane.xlu0 %1970 }
 0xa45   :  { %v1981_v21 = vsub.f32 %v5473_v5, %v1971_v49 }
 0xa46   :  { %v2860_v7 = vpop.f32.mrf.mxu3 }
 0xa47   :  { %v1985_v47 = vmul.f32 1.442695, %v1981_v21  ;;  %v5650_v9 = vsel %vm5425_vm14, %v2860_v7, -1e+30 }
 0xa48   :  { %v2875_v19 = vsel %vm1812_vm9, %v5650_v9, -inf }
 0xa49   :  { %3636 = vpow2.f32 %v1985_v47  ;;  %2876 = vmax.xlane.f32.xlu2 %v2875_v19  ;;  %2729 = vmax.xlane.f32.xlu0 %v2728_v63 }
 0xa4c   :  { %v1974_v12 = vpop.xlane.xlu2 %1973 }
 0xa4d   :  { %v1982_v44 = vsub.f32 %v5482_v41, %v1974_v12 }
 0xa4e   :  { %v2862_v23 = vpop.f32.mrf.mxu3 }
 0xa4f   :  { %v5657_v5 = vpop.eup %3636  ;;  %v1987_v33 = vmul.f32 1.442695, %v1982_v44  ;;  %v5661_v15 = vsel %vm5425_vm14, %v2862_v23, -1e+30 }
 0xa50   :  { %v1993_v2 = vsel %vm1812_vm9, %v5657_v5, 0.0  ;;  %v2878_v30 = vsel %vm1812_vm9, %v5661_v15, -inf }
 0xa51   :  { %3638 = vpow2.f32 %v1987_v33  ;;  %1994 = vadd.xlane.f32.xlu0 %v1993_v2  ;;  %2879 = vmax.xlane.f32.xlu1 %v2878_v30 }
 0xa54   :  { %v1839_v34 = vpop.xlane.xlu2 %1838 }
 0xa55   :  { %3640 = vrcp.f32 %v1839_v34 }
 0xa57   :  { %v5667_v29 = vpop.eup %3638 }
 0xa58   :  { %v1996_v41 = vsel %vm1812_vm9, %v5667_v29, 0.0 }
 0xa59   :  { %1997 = vadd.xlane.f32.xlu2 %v1996_v41 }
 0xa5b   :  { %v3641_v63 = vpop.eup %3640 }
 0xa5c   :  { %v1977_v6 = vpop.xlane.xlu1 %1976  ;;  %v2121_v52 = vpop.xlane.xlu2 %2120  ;;  %v1853_v23 = vmul.f32 %v3641_v63, %v5486_v38 }
 0xa5d   :  { %v1983_v1 = vsub.f32 %v5498_v31, %v1977_v6  ;;  %v2131_v49 = vsub.f32 %v5494_v59, %v2121_v52 }
 0xa5e   :  { %v1857_v30 = vpack.c.bf16 %v1853_v23, %v1853_v23 }
 0xa5f   :  { %v1989_v8 = vmul.f32 1.442695, %v1983_v1  ;;  %v2135_v21 = vmul.f32 1.442695, %v2131_v49 }
 0xa61   :  { %3642 = vpow2.f32 %v1989_v8 }
 0xa64   :  { %v1980_v7 = vpop.xlane.xlu0 %1979  ;;  %v1845_v33 = vpop.xlane.xlu2 %1844 }
 0xa65   :  { %v1984_v47 = vsub.f32 %v5510_v0, %v1980_v7  ;;  %v1842_v19 = vpop.xlane.xlu1 %1841 }
 0xa66   :  { %3644 = vrcp.f32 %v1842_v19 }
 0xa67   :  { %v1991_v12 = vmul.f32 1.442695, %v1984_v47  ;;  %v5674_v44 = vpop.eup %3642  ;;  %3646 = vpow2.f32 %v2135_v21  ;;  %v1863_v21 = vunpack.c.l.b16 %v1857_v30 }
 0xa68   :  { %v1999_v31 = vsel %vm1812_vm9, %v5674_v44, 0.0 }
 0xa69   :  { %3648 = vpow2.f32 %v1991_v12  ;;  %2000 = vadd.xlane.f32.xlu2 %v1999_v31 }
 0xa6c   :  { %v3645_v59 = vpop.eup %3644  ;;  %v2127_v2 = vpop.xlane.xlu0 %2126 }
 0xa6d   :  { %v1854_v0 = vmul.f32 %v3645_v59, %v5506_v48  ;;  %v2124_v34 = vpop.xlane.xlu1 %2123  ;;  %v5680_v41 = vpop.eup %3646  ;;  %v2133_v38 = vsub.f32 %v5524_v61, %v2127_v2 }
 0xa6e   :  { %v2132_v6 = vsub.f32 %v5520_v4, %v2124_v34  ;;  %v2143_v48 = vsel %vm1812_vm9, %v5680_v41, 0.0 }
 0xa6f   :  { %v5683_v52 = vpop.eup %3648  ;;  %v1858_v1 = vpack.c.bf16 %v1854_v0, %v1854_v0  ;;  %v2139_v19 = vmul.f32 1.442695, %v2133_v38 }
 0xa70   :  { %v2137_v8 = vmul.f32 1.442695, %v2132_v6  ;;  %v2002_v49 = vsel %vm1812_vm9, %v5683_v52, 0.0 }
 0xa71   :  { %v1864_v7 = vunpack.c.l.b16 %v1858_v1  ;;  %2003 = vadd.xlane.f32.xlu1 %v2002_v49  ;;  %2144 = vadd.xlane.f32.xlu2 %v2143_v48 }
 0xa72   :  { %3650 = vpow2.f32 %v2137_v8 }
 0xa73   :  { %v1865_v47 = vpack.c.b16 %v1864_v7, %v1863_v21  ;;  %3652 = vrcp.f32 %v1845_v33 }
 0xa74   :  { %v2130_v4 = vpop.xlane.xlu2 %2129  ;;  %v2274_v63 = vpop.xlane.xlu0 %2273  ;;  %3654 = vpow2.f32 %v2139_v19 }
 0xa75   :  { %v2134_v12 = vsub.f32 %v5541_v14, %v2130_v4  ;;  %3469 = vmatmul.msk.bf16.vlgmr.msra.gmra.mxu0 %vm1812_vm9, %v1865_v47  ;;  %v2271_v61 = vpop.xlane.xlu1 %2270  ;;  %v2282_v2 = vsub.f32 %v5533_v32, %v2274_v63 }
 0xa76   :  { %2185 = vmatpush.bf16.msra.mxu0 %v5435_v60  ;;  %v2281_v23 = vsub.f32 %v5537_v51, %v2271_v61 }
 0xa77   :  { %v2141_v31 = vmul.f32 1.442695, %v2134_v12  ;;  %v2287_v14 = vmul.f32 1.442695, %v2282_v2 }
 0xa78   :  { %v5694_v59 = vpop.eup %3650  ;;  %v2285_v30 = vmul.f32 1.442695, %v2281_v23 }
 0xa79   :  { %3656 = vpow2.f32 %v2141_v31  ;;  %v2146_v0 = vsel %vm1812_vm9, %v5694_v59, 0.0  ;;  %v3653_v6 = vpop.eup %3652 }
 0xa7a   :  { %2147 = vadd.xlane.f32.xlu1 %v2146_v0  ;;  %3658 = vpow2.f32 %v2285_v30  ;;  %v5700_v33 = vpop.eup %3654  ;;  %v1855_v49 = vmul.f32 %v3653_v6, %v5504_v54 }
 0xa7c   :  { %v2277_v34 = vpop.xlane.xlu0 %2276  ;;  %v1859_v47 = vpack.c.bf16 %v1855_v49, %v1855_v49 }
 0xa7d   :  { %v2283_v60 = vsub.f32 %v5553_v18, %v2277_v34  ;;  %v1848_v51 = vpop.xlane.xlu1 %1847  ;;  %v2149_v18 = vsel %vm1812_vm9, %v5700_v33, 0.0 }
 0xa7e   :  { %3660 = vrcp.f32 %v1848_v51 }
 0xa7f   :  { %v5702_v1 = vpop.eup %3656  ;;  %v2289_v38 = vmul.f32 1.442695, %v2283_v60  ;;  %3662 = vpow2.f32 %v2287_v14  ;;  %v1891_v14 = vunpack.c.l.b16 %v1859_v47 }
 0xa80   :  { %v2152_v32 = vsel %vm1812_vm9, %v5702_v1, 0.0  ;;  %v5706_v8 = vpop.eup %3658 }
 0xa81   :  { %3664 = vpow2.f32 %v2289_v38  ;;  %2153 = vadd.xlane.f32.xlu2 %v2152_v32  ;;  %v2293_v21 = vsel %vm1812_vm9, %v5706_v8, 0.0 }
 0xa82   :  { %2150 = vadd.xlane.f32.xlu1 %v2149_v18  ;;  %2294 = vadd.xlane.f32.xlu0 %v2293_v21 }
 0xa84   :  { %v3661_v7 = vpop.eup %3660  ;;  %v2424_v48 = vpop.xlane.xlu0 %2423 }
 0xa85   :  { %v1856_v19 = vmul.f32 %v3661_v7, %v5549_v17  ;;  %v2432_v4 = vsub.f32 %v5561_v16, %v2424_v48  ;;  %v2421_v63 = vpop.xlane.xlu1 %2420  ;;  %v5715_v12 = vpop.eup %3662 }
 0xa86   :  { %v2280_v54 = vpop.xlane.xlu2 %2279  ;;  %v2431_v61 = vsub.f32 %v5565_v40, %v2421_v63  ;;  %v2296_v16 = vsel %vm1812_vm9, %v5715_v12, 0.0 }
 0xa87   :  { %v5718_v23 = vpop.eup %3664  ;;  %v1860_v31 = vpack.c.bf16 %v1856_v19, %v1856_v19  ;;  %v2437_v2 = vmul.f32 1.442695, %v2432_v4  ;;  %v2284_v17 = vsub.f32 %v5569_v43, %v2280_v54 }
 0xa88   :  { %v2435_v30 = vmul.f32 1.442695, %v2431_v61  ;;  %v2299_v0 = vsel %vm1812_vm9, %v5718_v23, 0.0 }
 0xa89   :  { %v1892_v34 = vunpack.c.l.b16 %v1860_v31  ;;  %3666 = vpow2.f32 %v2437_v2  ;;  %v2291_v40 = vmul.f32 1.442695, %v2284_v17 }
 0xa8a   :  { %2300 = vadd.xlane.f32.xlu1 %v2299_v0  ;;  %3668 = vpow2.f32 %v2435_v30  ;;  %2297 = vadd.xlane.f32.xlu0 %v2296_v16 }
 0xa8b   :  { %v1893_v6 = vpack.c.b16 %v1892_v34, %v1891_v14  ;;  %3670 = vpow2.f32 %v2291_v40 }
 0xa8d   :  { %3470 = vmatmul.msk.bf16.vlgmr.msra.gmra.mxu1 %vm1812_vm9, %v1893_v6  ;;  %v2427_v60 = vpop.xlane.xlu1 %2426 }
 0xa8e   :  { %2210 = vmatpush.bf16.msra.mxu1 %v5447_v56  ;;  %v2433_v51 = vsub.f32 %v5583_v11, %v2427_v60  ;;  %v2571_v2 = vpop.xlane.xlu2 %2570 }
 0xa8f   :  { %v5728_v38 = vpop.eup %3666 }
 0xa90   :  { %v2439_v32 = vmul.f32 1.442695, %v2433_v51  ;;  %v5730_v43 = vpop.eup %3668  ;;  %v2446_v49 = vsel %vm1812_vm9, %v5728_v38, 0.0 }
 0xa91   :  { %v2443_v18 = vsel %vm1812_vm9, %v5730_v43, 0.0  ;;  %v5737_v7 = vpop.eup %3670 }
 0xa92   :  { %3672 = vpow2.f32 %v2439_v32  ;;  %2447 = vadd.xlane.f32.xlu0 %v2446_v49  ;;  %2444 = vadd.xlane.f32.xlu1 %v2443_v18  ;;  %v2302_v19 = vsel %vm1812_vm9, %v5737_v7, 0.0 }
 0xa94   :  { %v2430_v4 = vpop.xlane.xlu0 %2429 }
 0xa95   :  { %v2574_v21 = vpop.xlane.xlu1 %2573  ;;  %v2434_v17 = vsub.f32 %v5595_v26, %v2430_v4 }
 0xa96   :  { %v2582_v56 = vsub.f32 %v5591_v3, %v2574_v21 }
 0xa97   :  { %v2441_v40 = vmul.f32 1.442695, %v2434_v17 }
 0xa98   :  { %v5739_v11 = vpop.eup %3672  ;;  %v2587_v48 = vmul.f32 1.442695, %v2582_v56 }
 0xa99   :  { %2772 = vrot.lane.b32.xlu2 %v5335_v25, %s4097_s27  ;;  %v2449_v47 = vsel %vm1812_vm9, %v5739_v11, 0.0 }
 0xa9a   :  { %3674 = vpow2.f32 %v2587_v48  ;;  %2303 = vadd.xlane.f32.xlu1 %v2302_v19  ;;  %2450 = vadd.xlane.f32.xlu0 %v2449_v47 }
 0xa9c   :  { %v2577_v6 = vpop.xlane.xlu2 %2576 }
 0xa9d   :  { %v2721_v60 = vpop.xlane.xlu1 %2720 }
 0xaa0   :  { %v5747_v63 = vpop.eup %3674 }
 0xaa1   :  { %v2596_v3 = vsel %vm1812_vm9, %v5747_v63, 0.0 }
 0xaa2   :  { %2597 = vadd.xlane.f32.xlu0 %v2596_v3 }
 0xaa4   :  { %v2580_v54 = vpop.xlane.xlu0 %2579  ;;  %v2724_v49 = vpop.xlane.xlu2 %2723 }
 0xaa5   :  { %v2584_v61 = vsub.f32 %v5619_v10, %v2580_v54 }
 0xaa7   :  { %v2591_v31 = vmul.f32 1.442695, %v2584_v61 }
 0xaa9   :  { %3676 = vpow2.f32 %v2591_v31 }
 0xaac   :  { %v2727_v30 = vpop.xlane.xlu0 %2726 }
 0xaad   :  { %v2733_v0 = vsub.f32 %v5627_v37, %v2727_v30  ;;  %v2583_v37 = vsub.f32 %v5607_v53, %v2577_v6  ;;  %v2874_v21 = vpop.xlane.xlu1 %2873  ;;  %v2581_v30 = vsub.f32 %v5579_v35, %v2571_v2 }
 0xaae   :  { %v2882_v19 = vsub.f32 %v5631_v22, %v2874_v21 }
 0xaaf   :  { %v2739_v14 = vmul.f32 1.442695, %v2733_v0  ;;  %v5753_v34 = vpop.eup %3676  ;;  %v2589_v32 = vmul.f32 1.442695, %v2583_v37 }
 0xab0   :  { %v2602_v16 = vsel %vm1812_vm9, %v5753_v34, 0.0  ;;  %v2887_v53 = vmul.f32 1.442695, %v2882_v19 }
 0xab1   :  { %3678 = vpow2.f32 %v2739_v14  ;;  %2603 = vadd.xlane.f32.xlu0 %v2602_v16  ;;  %v2585_v16 = vmul.f32 1.442695, %v2581_v30 }
 0xab2   :  { %3680 = vpow2.f32 %v2441_v40 }
 0xab3   :  { %2647 = vrot.lane.b32.xlu1 %v5348_v36, %s4096_s22  ;;  %3682 = vpow2.f32 %v2589_v32 }
 0xab4   :  { %v5760_v10 = vpop.xlane.xlu0 %2870 }
 0xab7   :  { %v5762_v51 = vpop.eup %3678 }
 0xab8   :  { %v2749_v26 = vsel %vm1812_vm9, %v5762_v51, 0.0  ;;  %v5768_v48 = vpop.eup %3680 }
 0xab9   :  { %2750 = vadd.xlane.f32.xlu0 %v2749_v26  ;;  %v2452_v4 = vsel %vm1812_vm9, %v5768_v48, 0.0  ;;  %v5775_v61 = vpop.eup %3682  ;;  %v2731_v26 = vsub.f32 %v5603_v45, %v2721_v60 }
 0xaba   :  { %v2599_v22 = vsel %vm1812_vm9, %v5775_v61, 0.0 }
 0xabb   :  { %v2735_v2 = vmul.f32 1.442695, %v2731_v26 }
 0xabc   :  { %v2730_v18 = vpop.xlane.xlu0 %2729  ;;  %v5773_v3 = vpop.xlane.xlu2 %2876 }
 0xabd   :  { %v2734_v56 = vsub.f32 %v5645_v13, %v2730_v18 }
 0xabf   :  { %v2741_v47 = vmul.f32 1.442695, %v2734_v56 }
 0xac1   :  { %3684 = vpow2.f32 %v2741_v47 }
 0xac2   :  { %2453 = vadd.xlane.f32.xlu2 %v2452_v4 }
 0xac4   :  { %v1995_v54 = vpop.xlane.xlu0 %1994  ;;  %v5794_v4 = vpop.xlane.xlu1 %2879 }
 0xac5   :  { %3686 = vrcp.f32 %v1995_v54 }
 0xac6   :  { %3688 = vpow2.f32 %v2887_v53 }
 0xac7   :  { %v5777_v31 = vpop.eup %3684 }
 0xac8   :  { %v2752_v13 = vsel %vm1812_vm9, %v5777_v31, 0.0 }
 0xac9   :  { %2753 = vadd.xlane.f32.xlu0 %v2752_v13 }
 0xaca   :  { %2600 = vadd.xlane.f32.xlu2 %v2599_v22 }
 0xacb   :  { %v3687_v14 = vpop.eup %3686 }
 0xacc   :  { %v1998_v0 = vpop.xlane.xlu2 %1997  ;;  %v5784_v17 = vpop.eup %3688  ;;  %v2009_v6 = vmul.f32 %v3687_v14, %v5657_v5  ;;  %v2732_v5 = vsub.f32 %v5615_v62, %v2724_v49  ;;  %v2881_v62 = vsub.f32 %v5639_v55, %v5760_v10 }
 0xacd   :  { %3690 = vrcp.f32 %v1998_v0  ;;  %v2896_v40 = vsel %vm1812_vm9, %v5784_v17, 0.0 }
 0xace   :  { %3692 = vpow2.f32 %v2585_v16  ;;  %v2013_v32 = vpack.c.bf16 %v2009_v6, %v2009_v6  ;;  %v2885_v22 = vmul.f32 1.442695, %v2881_v62 }
 0xacf   :  { %3694 = vpow2.f32 %v2735_v2 }
 0xad0   :  { %v2019_v21 = vunpack.c.l.b16 %v2013_v32 }
 0xad1   :  { %2897 = vadd.xlane.f32.xlu0 %v2896_v40 }
 0xad3   :  { %v3691_v37 = vpop.eup %3690 }
 0xad4   :  { %v2010_v18 = vmul.f32 %v3691_v37, %v5667_v29  ;;  %v5791_v47 = vpop.eup %3692  ;;  %v2737_v29 = vmul.f32 1.442695, %v2732_v5 }
 0xad5   :  { %v2593_v45 = vsel %vm1812_vm9, %v5791_v47, 0.0  ;;  %v5800_v60 = vpop.eup %3694 }
 0xad6   :  { %v2014_v35 = vpack.c.bf16 %v2010_v18, %v2010_v18 }
 0xad8   :  { %v2020_v56 = vunpack.c.l.b16 %v2014_v35 }
 0xada   :  { %v2021_v19 = vpack.c.b16 %v2020_v56, %v2019_v21 }
 0xadc   :  { %3473 = vmatmul.msk.bf16.vlgmr.msrb.gmra.mxu0 %vm1812_vm9, %v2021_v19  ;;  %v2001_v53 = vpop.xlane.xlu2 %2000 }
 0xadd   :  { %2335 = vmatpush.bf16.msrb.mxu0 %v5469_v58  ;;  %2594 = vadd.xlane.f32.xlu1 %v2593_v45  ;;  %3696 = vrcp.f32 %v2001_v53  ;;  %v2743_v58 = vsel %vm1812_vm9, %v5800_v60, 0.0  ;;  %v2883_v53 = vsub.f32 %v5650_v9, %v5773_v3 }
 0xade   :  { %3698 = vpow2.f32 %v2737_v29 }
 0xae2   :  { %2797 = vrot.lane.b32.xlu2 %v5348_v36, %s4097_s27 }
 0xae3   :  { %v3697_v54 = vpop.eup %3696 }
 0xae4   :  { %v2004_v49 = vpop.xlane.xlu1 %2003  ;;  %v2145_v13 = vpop.xlane.xlu2 %2144  ;;  %v2011_v30 = vmul.f32 %v3697_v54, %v5674_v44 }
 0xae5   :  { %3700 = vrcp.f32 %v2004_v49  ;;  %2744 = vadd.xlane.f32.xlu1 %v2743_v58  ;;  %2922 = vrot.lane.b32.xlu0 %v5335_v25, %s4098_s4  ;;  %v5811_v0 = vpop.eup %3698 }
 0xae6   :  { %3702 = vrcp.f32 %v2145_v13  ;;  %v2015_v55 = vpack.c.bf16 %v2011_v30, %v2011_v30  ;;  %v2746_v16 = vsel %vm1812_vm9, %v5811_v0, 0.0  ;;  %v2889_v13 = vmul.f32 1.442695, %v2883_v53 }
 0xae7   :  { %3704 = vpow2.f32 %v2885_v22  ;;  %v2884_v22 = vsub.f32 %v5661_v15, %v5794_v4 }
 0xae8   :  { %v2044_v25 = vunpack.c.l.b16 %v2015_v55 }
 0xaeb   :  { %v3701_v14 = vpop.eup %3700 }
 0xaec   :  { %v2012_v10 = vmul.f32 %v3701_v14, %v5683_v52  ;;  %v3703_v40 = vpop.eup %3702 }
 0xaed   :  { %v2148_v6 = vpop.xlane.xlu1 %2147  ;;  %2747 = vadd.xlane.f32.xlu1 %v2746_v16  ;;  %v2159_v44 = vmul.f32 %v3703_v40, %v5680_v41  ;;  %v5817_v32 = vpop.eup %3704 }
 0xaee   :  { %v2016_v37 = vpack.c.bf16 %v2012_v10, %v2012_v10  ;;  %3706 = vrcp.f32 %v2148_v6  ;;  %v2893_v56 = vsel %vm1812_vm9, %v5817_v32, 0.0 }
 0xaef   :  { %v2163_v52 = vpack.c.bf16 %v2159_v44, %v2159_v44 }
 0xaf0   :  { %v2045_v26 = vunpack.c.l.b16 %v2016_v37 }
 0xaf1   :  { %v2169_v45 = vunpack.c.l.b16 %v2163_v52 }
 0xaf2   :  { %v2046_v18 = vpack.c.b16 %v2045_v26, %v2044_v25 }
 0xaf4   :  { %v3707_v35 = vpop.eup %3706  ;;  %v2154_v2 = vpop.xlane.xlu2 %2153  ;;  %3474 = vmatmul.msk.bf16.vlgmr.msrb.gmra.mxu1 %vm1812_vm9, %v2046_v18 }
 0xaf5   :  { %v2160_v21 = vmul.f32 %v3707_v35, %v5694_v59  ;;  %3708 = vrcp.f32 %v2154_v2  ;;  %2360 = vmatpush.bf16.msrb.mxu1 %v5464_v39  ;;  %v2151_v19 = vpop.xlane.xlu1 %2150  ;;  %v2295_v5 = vpop.xlane.xlu0 %2294  ;;  %2894 = vadd.xlane.f32.xlu1 %v2893_v56 }
 0xaf6   :  { %3710 = vrcp.f32 %v2151_v19 }
 0xaf7   :  { %v2164_v41 = vpack.c.bf16 %v2160_v21, %v2160_v21  ;;  %3712 = vrcp.f32 %v2295_v5 }
 0xaf9   :  { %v2170_v29 = vunpack.c.l.b16 %v2164_v41 }
 0xafb   :  { %v3709_v62 = vpop.eup %3708  ;;  %v2171_v49 = vpack.c.b16 %v2170_v29, %v2169_v45 }
 0xafc   :  { %v3711_v59 = vpop.eup %3710  ;;  %v2162_v54 = vmul.f32 %v3709_v62, %v5702_v1  ;;  %v2891_v1 = vmul.f32 1.442695, %v2884_v22 }
 0xafd   :  { %v2161_v58 = vmul.f32 %v3711_v59, %v5700_v33  ;;  %3477 = vmatmul.msk.bf16.vlgmr.msra.gmra.mxu0 %vm1812_vm9, %v2171_v49  ;;  %v2301_v39 = vpop.xlane.xlu1 %2300  ;;  %v2298_v14 = vpop.xlane.xlu0 %2297 }
 0xafe   :  { %v2166_v30 = vpack.c.bf16 %v2162_v54, %v2162_v54  ;;  %2485 = vmatpush.bf16.msra.mxu0 %v5467_v27  ;;  %v3713_v9 = vpop.eup %3712  ;;  %3714 = vrcp.f32 %v2298_v14 }
 0xaff   :  { %v2165_v3 = vpack.c.bf16 %v2161_v58, %v2161_v58  ;;  %3716 = vpow2.f32 %v2889_v13  ;;  %v2309_v16 = vmul.f32 %v3713_v9, %v5706_v8 }
 0xb00   :  { %v2195_v55 = vunpack.c.l.b16 %v2166_v30  ;;  %3718 = vpow2.f32 %v2891_v1 }
 0xb01   :  { %v2194_v10 = vunpack.c.l.b16 %v2165_v3  ;;  %v2313_v40 = vpack.c.bf16 %v2309_v16, %v2309_v16 }
 0xb03   :  { %v2196_v33 = vpack.c.b16 %v2195_v55, %v2194_v10  ;;  %v2319_v26 = vunpack.c.l.b16 %v2313_v40 }
 0xb04   :  { %v3715_v6 = vpop.eup %3714 }
 0xb05   :  { %3478 = vmatmul.msk.bf16.vlgmr.msra.gmra.mxu1 %vm1812_vm9, %v2196_v33  ;;  %v2310_v15 = vmul.f32 %v3715_v6, %v5715_v12  ;;  %v2448_v4 = vpop.xlane.xlu0 %2447  ;;  %v2445_v27 = vpop.xlane.xlu1 %2444 }
 0xb06   :  { %2510 = vmatpush.bf16.msra.mxu1 %v5460_v24  ;;  %v5836_v37 = vpop.eup %3716  ;;  %3720 = vrcp.f32 %v2448_v4 }
 0xb07   :  { %v2314_v25 = vpack.c.bf16 %v2310_v15, %v2310_v15  ;;  %3722 = vrcp.f32 %v2445_v27  ;;  %v2899_v8 = vsel %vm1812_vm9, %v5836_v37, 0.0  ;;  %v5840_v18 = vpop.eup %3718 }
 0xb08   :  { %3724 = vrcp.f32 %v2301_v39  ;;  %v2902_v52 = vsel %vm1812_vm9, %v5840_v18, 0.0 }
 0xb09   :  { %v2320_v44 = vunpack.c.l.b16 %v2314_v25 }
 0xb0b   :  { %2900 = vadd.xlane.f32.xlu2 %v2899_v8  ;;  %v2321_v35 = vpack.c.b16 %v2320_v44, %v2319_v26 }
 0xb0c   :  { %v3721_v12 = vpop.eup %3720 }
 0xb0d   :  { %v3723_v2 = vpop.eup %3722  ;;  %3481 = vmatmul.msk.bf16.vlgmr.msrb.gmra.mxu0 %vm1812_vm9, %v2321_v35  ;;  %v2304_v24 = vpop.xlane.xlu1 %2303  ;;  %v2460_v56 = vmul.f32 %v3721_v12, %v5728_v38 }
 0xb0e   :  { %2635 = vmatpush.bf16.msrb.mxu0 %v5478_v42  ;;  %2947 = vrot.lane.b32.xlu1 %v5348_v36, %s4098_s4  ;;  %v3725_v21 = vpop.eup %3724  ;;  %v2459_v19 = vmul.f32 %v3723_v2, %v5730_v43  ;;  %3726 = vrcp.f32 %v2304_v24  ;;  %v2773_v38 = vpop.permute.xlu2 %2772 }
 0xb0f   :  { %2903 = vadd.xlane.f32.xlu0 %v2902_v52  ;;  %v2311_v5 = vmul.f32 %v3725_v21, %v5718_v23  ;;  %v2464_v41 = vpack.c.bf16 %v2460_v56, %v2460_v56  ;;  %v2451_v43 = vpop.xlane.xlu0 %2450 }
 0xb10   :  { %v2463_v53 = vpack.c.bf16 %v2459_v19, %v2459_v19  ;;  %3728 = vrcp.f32 %v2451_v43 }
 0xb11   :  { %v2315_v29 = vpack.c.bf16 %v2311_v5, %v2311_v5  ;;  %v2470_v62 = vunpack.c.l.b16 %v2464_v41 }
 0xb12   :  { %v2469_v36 = vunpack.c.l.b16 %v2463_v53 }
 0xb13   :  { %v2344_v59 = vunpack.c.l.b16 %v2315_v29 }
 0xb14   :  { %v3727_v45 = vpop.eup %3726  ;;  %v2471_v13 = vpack.c.b16 %v2470_v62, %v2469_v36 }
 0xb15   :  { %v2312_v42 = vmul.f32 %v3727_v45, %v5737_v7 }
 0xb16   :  { %v3729_v7 = vpop.eup %3728 }
 0xb17   :  { %v2316_v49 = vpack.c.bf16 %v2312_v42, %v2312_v42  ;;  %v2598_v39 = vpop.xlane.xlu0 %2597  ;;  %v2461_v30 = vmul.f32 %v3729_v7, %v5739_v11  ;;  %v5857_v11 = vpop.f32.mrf.mxu0 }
 0xb19   :  { %v2345_v54 = vunpack.c.l.b16 %v2316_v49  ;;  %v2465_v3 = vpack.c.bf16 %v2461_v30, %v2461_v30 }
 0xb1b   :  { %v2346_v58 = vpack.c.b16 %v2345_v54, %v2344_v59  ;;  %v2494_v16 = vunpack.c.l.b16 %v2465_v3 }
 0xb1d   :  { %3485 = vmatmul.msk.bf16.vlgmr.msra.gmra.mxu0 %vm1812_vm9, %v2471_v13  ;;  %3482 = vmatmul.msk.bf16.vlgmr.msrb.gmra.mxu1 %vm1812_vm9, %v2346_v58  ;;  %v5869_v13 = vpop.f32.mrf.mxu1 }
 0xb1e   :  { %2785 = vmatpush.bf16.msra.mxu0 %v2773_v38 }
 0xb1f   :  { %v5861_v12 = vpop.f32.mrf.mxu0 }
 0xb24   :  { %v2604_v14 = vpop.xlane.xlu0 %2603 }
 0xb25   :  { %v2648_v23 = vpop.permute.xlu1 %2647  ;;  %v5875_v30 = vpop.f32.mrf.mxu1 }
 0xb26   :  { %2660 = vmatpush.bf16.msrb.mxu1 %v2648_v23 }
 0xb2c   :  { %v2751_v6 = vpop.xlane.xlu0 %2750 }
 0xb35   :  { %v2454_v22 = vpop.xlane.xlu2 %2453 }
 0xb36   :  { %3730 = vrcp.f32 %v2454_v22 }
 0xb3c   :  { %v3731_v9 = vpop.eup %3730  ;;  %v2754_v26 = vpop.xlane.xlu0 %2753 }
 0xb3d   :  { %v2462_v55 = vmul.f32 %v3731_v9, %v5768_v48  ;;  %v2601_v10 = vpop.xlane.xlu2 %2600 }
 0xb3e   :  { %3732 = vrcp.f32 %v2601_v10 }
 0xb3f   :  { %v2466_v1 = vpack.c.bf16 %v2462_v55, %v2462_v55  ;;  %3734 = vrcp.f32 %v2604_v14 }
 0xb40   :  { %3736 = vrcp.f32 %v2598_v39 }
 0xb41   :  { %v2495_v33 = vunpack.c.l.b16 %v2466_v1  ;;  %3738 = vrcp.f32 %v2754_v26 }
 0xb42   :  { %3740 = vrcp.f32 %v2751_v6 }
 0xb43   :  { %v2496_v40 = vpack.c.b16 %v2495_v33, %v2494_v16 }
 0xb44   :  { %v3733_v15 = vpop.eup %3732  ;;  %v2898_v41 = vpop.xlane.xlu0 %2897 }
 0xb45   :  { %v2798_v4 = vpop.permute.xlu2 %2797  ;;  %3486 = vmatmul.msk.bf16.vlgmr.msra.gmra.mxu1 %vm1812_vm9, %v2496_v40  ;;  %v3735_v27 = vpop.eup %3734  ;;  %v2611_v25 = vmul.f32 %v3733_v15, %v5775_v61 }
 0xb46   :  { %2810 = vmatpush.bf16.msra.mxu1 %v2798_v4  ;;  %v2612_v48 = vmul.f32 %v3735_v27, %v5753_v34  ;;  %v3737_v52 = vpop.eup %3736 }
 0xb47   :  { %v2615_v44 = vpack.c.bf16 %v2611_v25, %v2611_v25  ;;  %v3739_v56 = vpop.eup %3738  ;;  %v2610_v19 = vmul.f32 %v3737_v52, %v5747_v63 }
 0xb48   :  { %v2616_v8 = vpack.c.bf16 %v2612_v48, %v2612_v48  ;;  %v3741_v34 = vpop.eup %3740  ;;  %v2762_v61 = vmul.f32 %v3739_v56, %v5777_v31 }
 0xb49   :  { %v2644_v35 = vunpack.c.l.b16 %v2615_v44  ;;  %v2614_v53 = vpack.c.bf16 %v2610_v19, %v2610_v19  ;;  %v2761_v45 = vmul.f32 %v3741_v34, %v5762_v51 }
 0xb4a   :  { %v2645_v2 = vunpack.c.l.b16 %v2616_v8  ;;  %v2766_v36 = vpack.c.bf16 %v2762_v61, %v2762_v61 }
 0xb4b   :  { %v2620_v63 = vunpack.c.l.b16 %v2614_v53  ;;  %v2765_v59 = vpack.c.bf16 %v2761_v45, %v2761_v45 }
 0xb4c   :  { %v2646_v21 = vpack.c.b16 %v2645_v2, %v2644_v35  ;;  %v2795_v31 = vunpack.c.l.b16 %v2766_v36 }
 0xb4d   :  { %v2794_v23 = vunpack.c.l.b16 %v2765_v59 }
 0xb4f   :  { %v2796_v39 = vpack.c.b16 %v2795_v31, %v2794_v23 }
 0xb50   :  { %v2595_v24 = vpop.xlane.xlu1 %2594 }
 0xb51   :  { %3742 = vrcp.f32 %v2595_v24 }
 0xb55   :  { %3490 = vmatmul.msk.bf16.vlgmr.msrb.gmra.mxu1 %vm1812_vm9, %v2646_v21 }
 0xb57   :  { %v3743_v5 = vpop.eup %3742  ;;  %v2923_v38 = vpop.permute.xlu0 %2922 }
 0xb58   :  { %v2609_v29 = vmul.f32 %v3743_v5, %v5791_v47  ;;  %v2745_v42 = vpop.xlane.xlu1 %2744 }
 0xb59   :  { %v2037_v62 = vpop.f32.mrf.mxu0  ;;  %3744 = vrcp.f32 %v2745_v42 }
 0xb5a   :  { %2971 = vrot.lane.b32.xlu2 %v2037_v62, %s4081_s29  ;;  %v2613_v49 = vpack.c.bf16 %v2609_v29, %v2609_v29 }
 0xb5c   :  { %v2619_v54 = vunpack.c.l.b16 %v2613_v49 }
 0xb5e   :  { %v2621_v58 = vpack.c.b16 %v2620_v63, %v2619_v54 }
 0xb5f   :  { %v3745_v43 = vpop.eup %3744 }
 0xb60   :  { %3489 = vmatmul.msk.bf16.vlgmr.msrb.gmra.mxu0 %vm1812_vm9, %v2621_v58  ;;  %v2748_v51 = vpop.xlane.xlu1 %2747  ;;  %v2759_v22 = vmul.f32 %v3745_v43, %v5800_v60 }
 0xb61   :  { %v2039_v47 = vpop.f32.mrf.mxu0  ;;  %2935 = vmatpush.bf16.msrb.mxu0 %v2923_v38  ;;  %3746 = vrcp.f32 %v2748_v51 }
 0xb62   :  { %2973 = vrot.lane.b32.xlu1 %v2039_v47, %s4081_s29  ;;  %v2763_v14 = vpack.c.bf16 %v2759_v22, %v2759_v22 }
 0xb64   :  { %v2769_v10 = vunpack.c.l.b16 %v2763_v14 }
 0xb65   :  { %3494 = vmatmul.msk.bf16.vlgmr.msra.gmra.mxu1 %vm1812_vm9, %v2796_v39 }
 0xb67   :  { %v3747_v7 = vpop.eup %3746 }
 0xb68   :  { %v2760_v9 = vmul.f32 %v3747_v7, %v5811_v0  ;;  %v2895_v3 = vpop.xlane.xlu1 %2894 }
 0xb69   :  { %3748 = vrcp.f32 %v2895_v3 }
 0xb6a   :  { %v2764_v55 = vpack.c.bf16 %v2760_v9, %v2760_v9  ;;  %3750 = vrcp.f32 %v2898_v41 }
 0xb6c   :  { %v2770_v1 = vunpack.c.l.b16 %v2764_v55 }
 0xb6e   :  { %v2771_v16 = vpack.c.b16 %v2770_v1, %v2769_v10 }
 0xb6f   :  { %v3749_v33 = vpop.eup %3748 }
 0xb70   :  { %3493 = vmatmul.msk.bf16.vlgmr.msra.gmra.mxu0 %vm1812_vm9, %v2771_v16  ;;  %v3751_v60 = vpop.eup %3750  ;;  %v2909_v40 = vmul.f32 %v3749_v33, %v5817_v32 }
 0xb71   :  { %v2062_v6 = vpop.f32.mrf.mxu1  ;;  %v2910_v15 = vmul.f32 %v3751_v60, %v5784_v17 }
 0xb72   :  { %2975 = vrot.lane.b32.xlu0 %v2062_v6, %s4081_s29  ;;  %v2913_v4 = vpack.c.bf16 %v2909_v40, %v2909_v40 }
 0xb73   :  { %v2914_v0 = vpack.c.bf16 %v2910_v15, %v2910_v15 }
 0xb74   :  { %v2919_v48 = vunpack.c.l.b16 %v2913_v4 }
 0xb75   :  { %v2920_v26 = vunpack.c.l.b16 %v2914_v0 }
 0xb77   :  { %v2921_v8 = vpack.c.b16 %v2920_v26, %v2919_v48 }
 0xb79   :  { %v2064_v27 = vpop.f32.mrf.mxu1 }
 0xb7a   :  { %v2187_v25 = vpop.f32.mrf.mxu0 }
 0xb7b   :  { %2987 = vrot.lane.b32.xlu1 %v2187_v25, %s4085_s23 }
 0xb7e   :  { %v2901_v44 = vpop.xlane.xlu2 %2900 }
 0xb7f   :  { %3752 = vrcp.f32 %v2901_v44 }
 0xb80   :  { %3497 = vmatmul.msk.bf16.vlgmr.msrb.gmra.mxu0 %vm1812_vm9, %v2921_v8  ;;  %v2948_v35 = vpop.permute.xlu1 %2947 }
 0xb81   :  { %2960 = vmatpush.bf16.msrb.mxu1 %v2948_v35 }
 0xb82   :  { %v2189_v2 = vpop.f32.mrf.mxu0  ;;  %v2212_v24 = vpop.f32.mrf.mxu1 }
 0xb83   :  { %v2904_v32 = vpop.xlane.xlu0 %2903  ;;  %2977 = vrot.lane.b32.xlu1 %v2064_v27, %s4081_s29  ;;  %2989 = vrot.lane.b32.xlu0 %v2189_v2, %s4085_s23  ;;  %s6078_s29 = smov 16  }
 0xb84   :  { %3754 = vrcp.f32 %v2904_v32  ;;  %2991 = vrot.lane.b32.xlu2 %v2212_v24, %s4085_s23 }
 0xb85   :  { %v3753_v17 = vpop.eup %3752 }
 0xb86   :  { %v2911_v52 = vmul.f32 %v3753_v17, %v5836_v37 }
 0xb88   :  { %v2915_v19 = vpack.c.bf16 %v2911_v52, %v2911_v52 }
 0xb8a   :  { %v3755_v21 = vpop.eup %3754  ;;  %v2214_v56 = vpop.f32.mrf.mxu1  ;;  %v2944_v41 = vunpack.c.l.b16 %v2915_v19 }
 0xb8b   :  { %v2912_v34 = vmul.f32 %v3755_v21, %v5840_v18  ;;  %v2337_v61 = vpop.f32.mrf.mxu0  ;;  %2993 = vrot.lane.b32.xlu0 %v2214_v56, %s4085_s23 }
 0xb8c   :  { %3003 = vrot.lane.b32.xlu1 %v2337_v61, %s4100_s26 }
 0xb8d   :  { %v2916_v5 = vpack.c.bf16 %v2912_v34, %v2912_v34 }
 0xb8f   :  { %v2945_v53 = vunpack.c.l.b16 %v2916_v5 }
 0xb91   :  { %v2946_v45 = vpack.c.b16 %v2945_v53, %v2944_v41 }
 0xb93   :  { %v2339_v29 = vpop.f32.mrf.mxu0  ;;  %3498 = vmatmul.msk.bf16.vlgmr.msrb.gmra.mxu1 %vm1812_vm9, %v2946_v45 }
 0xb94   :  { %3005 = vrot.lane.b32.xlu2 %v2339_v29, %s4100_s26 }
 0xb9a   :  { %v2362_v37 = vpop.f32.mrf.mxu1 }
 0xb9b   :  { %v2487_v42 = vpop.f32.mrf.mxu0 }
 0xb9c   :  { %3019 = vrot.lane.b32.xlu1 %v2487_v42, %s6078_s29 }
 0xba2   :  { %v2364_v18 = vpop.f32.mrf.mxu1 }
 0xba3   :  { %v2489_v62 = vpop.f32.mrf.mxu0 }
 0xba4   :  { %3021 = vrot.lane.b32.xlu2 %v2489_v62, %s6078_s29  ;;  %3007 = vrot.lane.b32.xlu1 %v2362_v37, %s4100_s26 }
 0xbac   :  { %3009 = vrot.lane.b32.xlu2 %v2364_v18, %s4100_s26 }
 0xbb4   :  { %v2972_v9 = vpop.permute.xlu2 %2971 }
 0xbb5   :  { %v3079_v32 = vsel %vm1757_vm0, %v5857_v11, %v2972_v9 }
 0xbc2   :  { %v2512_v36 = vpop.f32.mrf.mxu1 }
 0xbca   :  { %v2514_v63 = vpop.f32.mrf.mxu1 }
 0xbd2   :  { %v2662_v54 = vpop.f32.mrf.mxu1 }
 0xbd4   :  { %v2974_v7 = vpop.permute.xlu1 %2973 }
 0xbd5   :  { %v3080_v48 = vsel %vm1757_vm0, %v5861_v12, %v2974_v7 }
 0xbda   :  { %v2664_v58 = vpop.f32.mrf.mxu1 }
 0xbdd   :  { %v2637_v49 = vpop.f32.mrf.mxu0 }
 0xbde   :  { %3035 = vrot.lane.b32.xlu0 %v2637_v49, %s4101_s25  ;;  %v2992_v55 = vpop.permute.xlu2 %2991 }
 0xbe2   :  { %v2812_v23 = vpop.f32.mrf.mxu1 }
 0xbe4   :  { %v2976_v1 = vpop.permute.xlu0 %2975 }
 0xbe5   :  { %v2639_v59 = vpop.f32.mrf.mxu0  ;;  %v3081_v42 = vsel %vm1757_vm0, %v5869_v13, %v2976_v1 }
 0xbe6   :  { %3037 = vrot.lane.b32.xlu1 %v2639_v59, %s4101_s25  ;;  %v3086_v62 = vsel %vm3083_vm3, %v3081_v42, %v2992_v55 }
 0xbea   :  { %v2814_v43 = vpop.f32.mrf.mxu1 }
 0xbed   :  { %v2787_v31 = vpop.f32.mrf.mxu0  ;;  %v2988_v14 = vpop.permute.xlu1 %2987 }
 0xbee   :  { %3025 = vrot.lane.b32.xlu1 %v2514_v63, %s6078_s29  ;;  %3051 = vrot.lane.b32.xlu2 %v2787_v31, %s4102_s28  ;;  %v3006_v16 = vpop.permute.xlu2 %3005  ;;  %v3084_v52 = vsel %vm3083_vm3, %v3079_v32, %v2988_v14 }
 0xbf5   :  { %v2789_v38 = vpop.f32.mrf.mxu0  ;;  %v2978_v3 = vpop.permute.xlu1 %2977 }
 0xbf6   :  { %3053 = vrot.lane.b32.xlu0 %v2789_v38, %s4102_s28  ;;  %v2990_v6 = vpop.permute.xlu0 %2989  ;;  %v3082_v31 = vsel %vm1757_vm0, %v5875_v30, %v2978_v3  ;;  %vm6083_vm0 = vmmov %vm6072_vm1 }
 0xbf7   :  { %v3085_v26 = vsel %vm3083_vm3, %v3080_v48, %v2990_v6  ;;  %vm6084_vm13 = vmmov %vm6083_vm0 }
 0xbf8   :  { %v3090_v44 = vsel %vm3088_vm4, %v3085_v26, %v3006_v16  ;;  %vm6085_vm8 = vmmov %vm6083_vm0 }
 0xbfd   :  { %v2937_v51 = vpop.f32.mrf.mxu0 }
 0xbfe   :  { %3023 = vrot.lane.b32.xlu0 %v2512_v36, %s6078_s29  ;;  %3067 = vrot.lane.b32.xlu1 %v2937_v51, %s4103_s0  ;;  %v3004_v10 = vpop.permute.xlu1 %3003  ;;  %v3022_v60 = vpop.permute.xlu2 %3021 }
 0xbff   :  { %v2994_v15 = vpop.permute.xlu0 %2993  ;;  %v3094_v8 = vsel %vm1812_vm9, %v3090_v44, %v3022_v60  ;;  %v3089_v56 = vsel %vm3088_vm4, %v3084_v52, %v3004_v10 }
 0xc00   :  { %v3087_v13 = vsel %vm3083_vm3, %v3082_v31, %v2994_v15  ;;  %v3583_v31 = vld [vmem:[%s6017_s14] ss:$0 sm:$0xff] }
 0xc05   :  { %v2939_v47 = vpop.f32.mrf.mxu0 }
 0xc06   :  { %3041 = vrot.lane.b32.xlu0 %v2664_v58, %s4101_s25  ;;  %3055 = vrot.lane.b32.xlu1 %v2812_v23, %s4102_s28  ;;  %v3010_v4 = vpop.permute.xlu2 %3009 }
 0xc07   :  { %3069 = vrot.lane.b32.xlu2 %v2939_v47, %s4103_s0  ;;  %v3092_v23 = vsel %vm3088_vm4, %v3087_v13, %v3010_v4 }
 0xc0e   :  { %v3020_v33 = vpop.permute.xlu1 %3019 }
 0xc0f   :  { %3039 = vrot.lane.b32.xlu2 %v2662_v54, %s4101_s25  ;;  %v3093_v34 = vsel %vm1812_vm9, %v3089_v56, %v3020_v33 }
 0xc10   :  { %v2962_v39 = vpop.f32.mrf.mxu1 }
 0xc11   :  { %3071 = vrot.lane.b32.xlu0 %v2962_v39, %s4103_s0 }
 0xc16   :  { %v3008_v40 = vpop.permute.xlu1 %3007 }
 0xc17   :  { %3057 = vrot.lane.b32.xlu2 %v2814_v43, %s4102_s28  ;;  %v3091_v18 = vsel %vm3088_vm4, %v3086_v62, %v3008_v40 }
 0xc18   :  { %v2964_v22 = vpop.f32.mrf.mxu1 }
 0xc19   :  { %3073 = vrot.lane.b32.xlu1 %v2964_v22, %s4103_s0 }
 0xc48   :  { %v3052_v25 = vpop.permute.xlu2 %3051 }
 0xc50   :  { %v3036_v27 = vpop.permute.xlu0 %3035 }
 0xc51   :  { %v3098_v61 = vsel %vm3097_vm5, %v3093_v34, %v3036_v27 }
 0xc52   :  { %v3103_v41 = vsel %vm3102_vm7, %v3098_v61, %v3052_v25  ;;  %v3533_v61 = vld [vmem:[#allocation17] sm:$0xff] }
 0xc58   :  { %v3038_v0 = vpop.permute.xlu1 %3037 }
 0xc59   :  { %v3099_v35 = vsel %vm3097_vm5, %v3094_v8, %v3038_v0 }
 0xc60   :  { %v3026_v2 = vpop.permute.xlu1 %3025 }
 0xc61   :  { %v3070_v17 = vpop.permute.xlu2 %3069  ;;  %v3096_v51 = vsel %vm1812_vm9, %v3092_v23, %v3026_v2 }
 0xc68   :  { %v3054_v24 = vpop.permute.xlu0 %3053 }
 0xc69   :  { %v3104_v12 = vsel %vm3102_vm7, %v3099_v35, %v3054_v24  ;;  %v3040_v49 = vpop.permute.xlu2 %3039 }
 0xc6a   :  { %v3109_v21 = vsel %vm3107_vm6, %v3104_v12, %v3070_v17 }
 0xc6b   :  { %v5908_v19 = vadd.f32 %v3109_v21, %v5271_v57  ;;  %v3534_v21 = vld [vmem:[#allocation17 + $0x8] sm:$0xff] }
 0xc6c   :  { %3254 = vmatpush.bf16.msrb.mxu2 %v3534_v21 }
 0xc6d   :  { %v3121_v5 = vsel %vm6079_vm11, %v5908_v19, 0.0 }
 0xc6e   :  { %3122 = vadd.xlane.f32.xlu0 %v3121_v5 }
 0xc70   :  { %v3024_v11 = vpop.permute.xlu0 %3023  ;;  %v3068_v53 = vpop.permute.xlu1 %3067  ;;  %3255 = vmatpush.bf16.msrb.mxu2 %v3533_v61 }
 0xc71   :  { %v3108_v45 = vsel %vm3107_vm6, %v3103_v41, %v3068_v53  ;;  %v3095_v36 = vsel %vm1812_vm9, %v3091_v18, %v3024_v11  ;;  %v3058_v39 = vpop.permute.xlu2 %3057 }
 0xc72   :  { %v5917_v29 = vadd.f32 %v3108_v45, %v5266_v50  ;;  %v3100_v59 = vsel %vm3097_vm5, %v3095_v36, %v3040_v49  ;;  %v3582_v36 = vld [vmem:[%s6016_s13] ss:$0 sm:$0xff] }
 0xc74   :  { %v3118_v57 = vsel %vm6080_vm12, %v5917_v29, 0.0 }
 0xc75   :  { %3119 = vadd.xlane.f32.xlu2 %v3118_v57 }
 0xc78   :  { %v3042_v37 = vpop.permute.xlu0 %3041  ;;  %v3056_v63 = vpop.permute.xlu1 %3055 }
 0xc79   :  { %v3105_v50 = vsel %vm3102_vm7, %v3100_v59, %v3056_v63  ;;  %v3101_v43 = vsel %vm3097_vm5, %v3096_v51, %v3042_v37 }
 0xc7a   :  { %v3106_v30 = vsel %vm3102_vm7, %v3101_v43, %v3058_v39 }
 0xc83   :  { %v3072_v54 = vpop.permute.xlu0 %3071 }
 0xc84   :  { %v3110_v58 = vsel %vm3107_vm6, %v3105_v50, %v3072_v54 }
 0xc85   :  { %v5933_v38 = vadd.f32 %v3110_v58, %v5276_v28 }
 0xc87   :  { %v3124_v47 = vsel %vm6081_vm15, %v5933_v38, 0.0 }
 0xc88   :  { %3125 = vadd.xlane.f32.xlu1 %v3124_v47 }
 0xc8b   :  { %v3074_v22 = vpop.permute.xlu1 %3073 }
 0xc8c   :  { %v3111_v7 = vsel %vm3107_vm6, %v3106_v30, %v3074_v22  ;;  %vm6086_vm6 = vmmov %vm6083_vm0 }
 0xc8d   :  { %v5943_v14 = vadd.f32 %v3111_v7, %v5281_v46 }
 0xc8f   :  { %v3127_v28 = vsel %vm6072_vm1, %v5943_v14, 0.0 }
 0xc90   :  { %3128 = vadd.xlane.f32.xlu2 %v3127_v28 }
 0xce1   :  { %v3123_v9 = vpop.xlane.xlu0 %3122 }
 0xce2   :  { %v3131_v3 = vmul.f32 %v3123_v9, %v4277_v20 }
 0xce4   :  { %v3135_v55 = vsub.f32 %v5908_v19, %v3131_v3 }
 0xce6   :  { %v3139_v10 = vmul.f32 %v3135_v55, %v3135_v55 }
 0xce8   :  { %v3120_v1 = vpop.xlane.xlu2 %3119  ;;  %v3145_v16 = vsel %vm6082_vm2, %v3139_v10, 0.0 }
 0xce9   :  { %v3130_v33 = vmul.f32 %v3120_v1, %v4277_v20  ;;  %3146 = vadd.xlane.f32.xlu2 %v3145_v16 }
 0xceb   :  { %v3134_v6 = vsub.f32 %v5917_v29, %v3130_v33 }
 0xced   :  { %v3138_v46 = vmul.f32 %v3134_v6, %v3134_v6 }
 0xcef   :  { %v3142_v60 = vsel %vm6083_vm0, %v3138_v46, 0.0 }
 0xcf0   :  { %3143 = vadd.xlane.f32.xlu0 %v3142_v60 }
 0xcfb   :  { %v3126_v40 = vpop.xlane.xlu1 %3125 }
 0xcfc   :  { %v3132_v15 = vmul.f32 %v3126_v40, %v4277_v20 }
 0xcfe   :  { %v5955_v4 = vsub.f32 %v5933_v38, %v3132_v15 }
 0xd00   :  { %v3140_v0 = vmul.f32 %v5955_v4, %v5955_v4 }
 0xd02   :  { %v3148_v27 = vsel %vm6084_vm13, %v3140_v0, 0.0  ;;  %vm6087_vm13 = vmmov %vm6083_vm0 }
 0xd03   :  { %v3129_v25 = vpop.xlane.xlu2 %3128  ;;  %3149 = vadd.xlane.f32.xlu1 %v3148_v27 }
 0xd04   :  { %v3133_v48 = vmul.f32 %v3129_v25, %v4277_v20 }
 0xd06   :  { %v5962_v26 = vsub.f32 %v5943_v14, %v3133_v48 }
 0xd08   :  { %v3141_v44 = vmul.f32 %v5962_v26, %v5962_v26 }
 0xd0a   :  { %v3151_v8 = vsel %vm6085_vm8, %v3141_v44, 0.0  ;;  %vm6088_vm8 = vmmov %vm6083_vm0 }
 0xd0b   :  { %3152 = vadd.xlane.f32.xlu0 %v3151_v8 }
 0xd5c   :  { %v3147_v35 = vpop.xlane.xlu2 %3146 }
 0xd5d   :  { %v3155_v2 = vmul.f32 %v3147_v35, %v4277_v20  ;;  %v3584_v35 = vld [vmem:[%s6019_s16] ss:$0 sm:$0xff] }
 0xd5f   :  { %v3159_v24 = vadd.f32 1e-05, %v3155_v2 }
 0xd61   :  { %3756 = vrsqrt.f32 %v3159_v24  ;;  %vm3178_vm10 = vweird.f32 %v3159_v24 }
 0xd63   :  { %v3144_v32 = vpop.xlane.xlu0 %3143 }
 0xd64   :  { %v3154_v17 = vmul.f32 %v3144_v32, %v4277_v20 }
 0xd66   :  { %v3158_v12 = vadd.f32 1e-05, %v3154_v17 }
 0xd67   :  { %v3757_v52 = vpop.eup %3756 }
 0xd68   :  { %v3173_v56 = vmul.f32 %v3757_v52, %v3159_v24  ;;  %3758 = vrsqrt.f32 %v3158_v12  ;;  %vm3179_vm9 = vweird.f32 %v3757_v52  ;;  %vm3168_vm4 = vweird.f32 %v3158_v12 }
 0xd69   :  { %vm3180_vm14 = vmor %vm3178_vm10, %vm3179_vm9 }
 0xd6a   :  { %v3174_v34 = vmul.f32 %v3757_v52, %v3173_v56  ;;  %vm6089_vm9 = vmmov %vm6083_vm0 }
 0xd6b   :  { %vm6090_vm10 = vmmov %vm6083_vm0 }
 0xd6c   :  { %v3175_v5 = vmul.f32 0.5, %v3174_v34 }
 0xd6e   :  { %v3759_v11 = vpop.eup %3758  ;;  %v3176_v41 = vsub.f32 1.5, %v3175_v5  ;;  %v3535_v5 = vld [vmem:[#allocation19] sm:$0xff] }
 0xd6f   :  { %v3163_v53 = vmul.f32 %v3759_v11, %v3158_v12  ;;  %vm3169_vm3 = vweird.f32 %v3759_v11 }
 0xd70   :  { %v3177_v45 = vmul.f32 %v3757_v52, %v3176_v41  ;;  %vm3170_vm5 = vmor %vm3168_vm4, %vm3169_vm3 }
 0xd71   :  { %v3164_v57 = vmul.f32 %v3759_v11, %v3163_v53  ;;  %vm6092_vm3 = vmmov %vm6083_vm0 }
 0xd72   :  { %v3181_v42 = vsel %vm3180_vm14, %v3757_v52, %v3177_v45  ;;  %vm6091_vm14 = vmmov %vm6083_vm0 }
 0xd73   :  { %v3165_v37 = vmul.f32 0.5, %v3164_v57  ;;  %v3203_v49 = vmul.f32 %v3181_v42, %v3135_v55 }
 0xd75   :  { %v3166_v62 = vsub.f32 1.5, %v3165_v37  ;;  %v3210_v58 = vmul.f32 %v3582_v36, %v3203_v49 }
 0xd76   :  { %v3150_v18 = vpop.xlane.xlu1 %3149 }
 0xd77   :  { %v3156_v63 = vmul.f32 %v3150_v18, %v4277_v20  ;;  %v3167_v59 = vmul.f32 %v3759_v11, %v3166_v62  ;;  %v3217_v47 = vadd.f32 %v3583_v31, %v3210_v58 }
 0xd79   :  { %v3160_v50 = vadd.f32 1e-05, %v3156_v63  ;;  %v3171_v54 = vsel %vm3170_vm5, %v3759_v11, %v3167_v59 }
 0xd7a   :  { %v3202_v13 = vmul.f32 %v3171_v54, %v3134_v6 }
 0xd7b   :  { %3760 = vrsqrt.f32 %v3160_v50  ;;  %vm3188_vm11 = vweird.f32 %v3160_v50 }
 0xd7c   :  { %v3209_v23 = vmul.f32 %v3582_v36, %v3202_v13 }
 0xd7e   :  { %v3153_v51 = vpop.xlane.xlu0 %3152  ;;  %v3216_v43 = vadd.f32 %v3583_v31, %v3209_v23 }
 0xd7f   :  { %v3157_v39 = vmul.f32 %v3153_v51, %v4277_v20 }
 0xd80   :  { %v3220_v7 = vpack.c.bf16 %v3217_v47, %v3216_v43 }
 0xd81   :  { %v3761_v30 = vpop.eup %3760  ;;  %v3161_v22 = vadd.f32 1e-05, %v3157_v39 }
 0xd82   :  { %v3183_v28 = vmul.f32 %v3761_v30, %v3160_v50  ;;  %3507 = vmatmul.msk.bf16.vlgmr.msrb.gmra.mxu2 %vm6086_vm6, %v3220_v7  ;;  %vm3189_vm7 = vweird.f32 %v3761_v30 }
 0xd83   :  { %3762 = vrsqrt.f32 %v3161_v22  ;;  %vm3190_vm12 = vmor %vm3188_vm11, %vm3189_vm7  ;;  %vm3198_vm1 = vweird.f32 %v3161_v22 }
 0xd84   :  { %v3184_v9 = vmul.f32 %v3761_v30, %v3183_v28 }
 0xd86   :  { %v3185_v3 = vmul.f32 0.5, %v3184_v9 }
 0xd88   :  { %v3186_v55 = vsub.f32 1.5, %v3185_v3 }
 0xd89   :  { %v3763_v10 = vpop.eup %3762 }
 0xd8a   :  { %v3187_v1 = vmul.f32 %v3761_v30, %v3186_v55  ;;  %v3193_v16 = vmul.f32 %v3763_v10, %v3161_v22  ;;  %vm3199_vm15 = vweird.f32 %v3763_v10 }
 0xd8b   :  { %vm3200_vm2 = vmor %vm3198_vm1, %vm3199_vm15 }
 0xd8c   :  { %v3194_v33 = vmul.f32 %v3763_v10, %v3193_v16  ;;  %v3191_v6 = vsel %vm3190_vm12, %v3761_v30, %v3187_v1 }
 0xd8d   :  { %v3204_v60 = vmul.f32 %v3191_v6, %v5955_v4 }
 0xd8e   :  { %v3195_v46 = vmul.f32 0.5, %v3194_v33 }
 0xd8f   :  { %v3211_v27 = vmul.f32 %v3582_v36, %v3204_v60 }
 0xd90   :  { %v3196_v20 = vsub.f32 1.5, %v3195_v46  ;;  %v3585_v46 = vld [vmem:[%s6021_s18] ss:$0 sm:$0xff]  ;;  %s4104_s18 = smov [#allocation20]  }
 0xd91   :  { %v3218_v48 = vadd.f32 %v3583_v31, %v3211_v27  ;;  %s3362_s30 = sshll.u32 %s4104_s18, 4  ;;  %s3363_s30 = int_to_ptr.vmem [resolvable:$true] %s3362_s30 }
 0xd92   :  { %v3197_v40 = vmul.f32 %v3763_v10, %v3196_v20 }
 0xd94   :  { %v3201_v15 = vsel %vm3200_vm2, %v3763_v10, %v3197_v40 }
 0xd95   :  { %v3205_v0 = vmul.f32 %v3201_v15, %v5962_v26  ;;  %v3536_v26 = vld [vmem:[#allocation19 + $0x8] sm:$0xff] }
 0xd96   :  { %3337 = vmatpush.bf16.msra.mxu3 %v3536_v26 }
 0xd97   :  { %v3212_v25 = vmul.f32 %v3582_v36, %v3205_v0 }
 0xd99   :  { %v3219_v44 = vadd.f32 %v3583_v31, %v3212_v25 }
 0xd9a   :  { %3338 = vmatpush.bf16.msra.mxu3 %v3535_v5 }
 0xd9b   :  { %v3221_v8 = vpack.c.bf16 %v3219_v44, %v3218_v48 }
 0xd9d   :  { %3508 = vmatmul.msk.bf16.gmra.mxu2 %vm6083_vm0, %v3221_v8 }
 0xe05   :  { %v3257_v2 = vpop.f32.mrf.mxu2 }
 0xe06   :  { %v3258_v24 = vadd.f32 %v3584_v35, %v3257_v2 }
 0xe08   :  { %v3267_v4 = vmul.f32 %v3258_v24, %v3258_v24 }
 0xe0a   :  { %v3271_v32 = vmul.f32 %v3267_v4, %v3258_v24 }
 0xe0c   :  { %v3275_v17 = vmul.f32 0.044715, %v3271_v32 }
 0xe0d   :  { %v3259_v12 = vpop.f32.mrf.mxu2 }
 0xe0e   :  { %v3279_v52 = vadd.f32 %v3275_v17, %v3258_v24  ;;  %v3260_v21 = vadd.f32 %v3584_v35, %v3259_v12 }
 0xe10   :  { %v3283_v56 = vmul.f32 0.7978846, %v3279_v52  ;;  %v3268_v34 = vmul.f32 %v3260_v21, %v3260_v21 }
 0xe12   :  { %v3272_v61 = vmul.f32 %v3268_v34, %v3260_v21  ;;  %3764 = vtanh.f32 %v3283_v56 }
 0xe14   :  { %v3276_v11 = vmul.f32 0.044715, %v3272_v61 }
 0xe16   :  { %v3280_v41 = vadd.f32 %v3276_v11, %v3260_v21 }
 0xe18   :  { %v3284_v53 = vmul.f32 0.7978846, %v3280_v41  ;;  %v3765_v45 = vpop.eup %3764 }
 0xe19   :  { %v3291_v57 = vadd.f32 1.0, %v3765_v45 }
 0xe1a   :  { %3766 = vtanh.f32 %v3284_v53 }
 0xe1b   :  { %v3295_v18 = vmul.f32 0.5, %v3291_v57 }
 0xe1d   :  { %v3299_v50 = vmul.f32 %v3295_v18, %v3258_v24 }
 0xe20   :  { %v3262_v42 = vpop.f32.mrf.mxu2  ;;  %v3767_v37 = vpop.eup %3766 }
 0xe21   :  { %v3263_v62 = vadd.f32 %v3584_v35, %v3262_v42  ;;  %v3292_v36 = vadd.f32 1.0, %v3767_v37 }
 0xe23   :  { %v3269_v49 = vmul.f32 %v3263_v62, %v3263_v62  ;;  %v3296_v63 = vmul.f32 0.5, %v3292_v36 }
 0xe25   :  { %v3273_v59 = vmul.f32 %v3269_v49, %v3263_v62  ;;  %v3300_v54 = vmul.f32 %v3296_v63, %v3260_v21 }
 0xe27   :  { %v3277_v31 = vmul.f32 0.044715, %v3273_v59  ;;  %v3303_v58 = vpack.c.bf16 %v3300_v54, %v3299_v50 }
 0xe28   :  { %v3264_v13 = vpop.f32.mrf.mxu2 }
 0xe29   :  { %v3281_v23 = vadd.f32 %v3277_v31, %v3263_v62  ;;  %v3265_v51 = vadd.f32 %v3584_v35, %v3264_v13  ;;  %3517 = vmatmul.msk.bf16.vlgmr.msra.gmra.mxu3 %vm6087_vm13, %v3303_v58 }
 0xe2b   :  { %v3285_v47 = vmul.f32 0.7978846, %v3281_v23  ;;  %v3270_v43 = vmul.f32 %v3265_v51, %v3265_v51 }
 0xe2d   :  { %v3274_v39 = vmul.f32 %v3270_v43, %v3265_v51  ;;  %3768 = vtanh.f32 %v3285_v47 }
 0xe2f   :  { %v3278_v30 = vmul.f32 0.044715, %v3274_v39 }
 0xe31   :  { %v3282_v22 = vadd.f32 %v3278_v30, %v3265_v51 }
 0xe33   :  { %v3286_v7 = vmul.f32 0.7978846, %v3282_v22  ;;  %v3769_v28 = vpop.eup %3768 }
 0xe34   :  { %v3293_v9 = vadd.f32 1.0, %v3769_v28 }
 0xe35   :  { %3770 = vtanh.f32 %v3286_v7 }
 0xe36   :  { %v3297_v55 = vmul.f32 0.5, %v3293_v9 }
 0xe38   :  { %v3301_v16 = vmul.f32 %v3297_v55, %v3263_v62 }
 0xe3b   :  { %v3771_v3 = vpop.eup %3770 }
 0xe3c   :  { %v3294_v10 = vadd.f32 1.0, %v3771_v3 }
 0xe3e   :  { %v3298_v1 = vmul.f32 0.5, %v3294_v10 }
 0xe40   :  { %v3302_v33 = vmul.f32 %v3298_v1, %v3265_v51 }
 0xe42   :  { %v3304_v6 = vpack.c.bf16 %v3302_v33, %v3301_v16 }
 0xe44   :  { %3518 = vmatmul.msk.bf16.gmra.mxu3 %vm6088_vm8, %v3304_v6 }
 0xeac   :  { %v3340_v20 = vpop.f32.mrf.mxu3 }
 0xead   :  { %v3341_v60 = vadd.f32 %v3585_v46, %v3340_v20 }
 0xeaf   :  { %v3350_v40 = vadd.f32 %v3341_v60, %v5917_v29 }
 0xeb1   :  { %3354 = vst.msk [vmem:[#allocation20] sm:$0xff] %vm6089_vm9, %v3350_v40 }
 0xeb4   :  { %v3342_v15 = vpop.f32.mrf.mxu3 }
 0xeb5   :  { %v3343_v0 = vadd.f32 %v3585_v46, %v3342_v15 }
 0xeb7   :  { %v3351_v27 = vadd.f32 %v3343_v0, %v5908_v19 }
 0xeb9   :  { %3355 = vst.msk [vmem:[#allocation20 + $0x8] sm:$0xff] %vm6090_vm10, %v3351_v27 }
 0xec7   :  { %v3345_v25 = vpop.f32.mrf.mxu3 }
 0xec8   :  { %v3346_v48 = vadd.f32 %v3585_v46, %v3345_v25 }
 0xeca   :  { %v3352_v44 = vadd.f32 %v3346_v48, %v5933_v38 }
 0xecc   :  { %3356 = vst.msk [vmem:[#allocation20 + $0x10] sm:$0xff] %vm6091_vm14, %v3352_v44 }
 0xecf   :  { %v3347_v8 = vpop.f32.mrf.mxu3 }
 0xed0   :  { %v3348_v29 = vadd.f32 %v3585_v46, %v3347_v8 }
 0xed2   :  { %v3353_v35 = vadd.f32 %v3348_v29, %v5943_v14 }
 0xed4   :  { %3357 = vst.msk [vmem:[#allocation20 + $0x18] sm:$0xff] %vm6092_vm3, %v3353_v35 }
 0xed5   :  { %3370 = dma.vmem_to_hbm [thread:$0]  %s3363_s30, 512, %s3365_s5, [#allocation4], %s4084_s2, %s4084_s2, %s4085_s23  }
 0xed6   :  { %4072 = dma.done.wait [#allocation4], 512  }
 0xed7   :  { %4073 = vsyncadd [#allocation4], 4294966784 }
 0xed8   :  { %3375 = vsyncpa [#allocation3], 1 }
 0xed9   :  { %3376 = vsyncpa [#allocation6], 1 }
 0xeda   :  { %3377 = vsyncpa [#allocation9], 1 }
 0xedb   :  { %3378 = vsyncpa [#allocation12], 1 }
 0xedc   :  { %3379 = vsyncpa [#allocation15], 1 }
 0xedd   :  { %3380 = vsyncpa [#allocation18], 1 }
 0xede   :  { %3381 = vsyncpa [#allocation4], 1 }

</bundles_post_ra>
